<compile_context>
chip_gen: v5e
topology: v5e:2x2
jax: 0.10.0
libtpu: 0.0.40
codegen_flags: <defaults>
</compile_context>

<pallas_src>
import functools

import numpy as np
import jax
import jax.numpy as jnp
from jax.experimental import pallas as pl
from jax.experimental.pallas import tpu as pltpu

LANE = 128
_VMEM_LIMIT = 48 * 1024 * 1024  # <= 64 MiB so it is valid on v7x as well
_BN_EPS = 1e-5


def _round_up(x, m):
    return ((x + m - 1) // m) * m


# ----------------------------------------------------------------------------
# Pallas kernels
# ----------------------------------------------------------------------------
def _mm_stats_kernel(x_ref, w_ref, y_ref, st_ref):
    """y = x @ w (bf16 in, f32 acc); also per-tile per-column sum / sum-of-squares."""
    y = jnp.dot(x_ref[...], w_ref[...], preferred_element_type=jnp.float32)
    y_ref[...] = y
    s1 = jnp.sum(y, axis=0, keepdims=True)          # (1, C)
    s2 = jnp.sum(y * y, axis=0, keepdims=True)      # (1, C)
    pad = jnp.zeros((6, y.shape[1]), jnp.float32)   # sublane-align to 8 rows
    st_ref[...] = jnp.concatenate([s1, s2, pad], axis=0)


def _mm_act_kernel(x_ref, w_ref, y_ref, *, act):
    """y = act(x @ w) for layers without BatchNorm (final tanh layer)."""
    y = jnp.dot(x_ref[...], w_ref[...], preferred_element_type=jnp.float32)
    if act == "relu":
        y = jnp.maximum(y, 0.0)
    elif act == "tanh":
        y = jnp.tanh(y)
    y_ref[...] = y.astype(y_ref.dtype)


def _affine_act_kernel(y_ref, sc_ref, sh_ref, o_ref, *, act):
    """BN normalize (folded into per-column scale/shift) + activation."""
    y = y_ref[...] * sc_ref[...] + sh_ref[...]
    if act == "relu":
        y = jnp.maximum(y, 0.0)
    elif act == "tanh":
        y = jnp.tanh(y)
    o_ref[...] = y.astype(o_ref.dtype)


# ----------------------------------------------------------------------------
# pallas_call wrappers (M-tiled, parallel grid, lane-dense C)
# ----------------------------------------------------------------------------
def _matmul_with_stats(x_cols, w_mat, *, tm):
    Mp, K = x_cols.shape
    C = w_mat.shape[1]
    T = Mp // tm
    return pl.pallas_call(
        _mm_stats_kernel,
        out_shape=(jax.ShapeDtypeStruct((Mp, C), jnp.float32),
                   jax.ShapeDtypeStruct((T * 8, C), jnp.float32)),
        grid=(T,),
        in_specs=[pl.BlockSpec((tm, K), lambda i: (i, 0)),
                  pl.BlockSpec((K, C), lambda i: (0, 0))],
        out_specs=(pl.BlockSpec((tm, C), lambda i: (i, 0)),
                   pl.BlockSpec((8, C), lambda i: (i, 0))),
        compiler_params=pltpu.CompilerParams(
            dimension_semantics=("parallel",),
            vmem_limit_bytes=_VMEM_LIMIT),
    )(x_cols, w_mat)


def _matmul_act(x_cols, w_mat, *, act, tm):
    Mp, K = x_cols.shape
    C = w_mat.shape[1]
    T = Mp // tm
    return pl.pallas_call(
        functools.partial(_mm_act_kernel, act=act),
        out_shape=jax.ShapeDtypeStruct((Mp, C), jnp.float32),
        grid=(T,),
        in_specs=[pl.BlockSpec((tm, K), lambda i: (i, 0)),
                  pl.BlockSpec((K, C), lambda i: (0, 0))],
        out_specs=pl.BlockSpec((tm, C), lambda i: (i, 0)),
        compiler_params=pltpu.CompilerParams(
            dimension_semantics=("parallel",),
            vmem_limit_bytes=_VMEM_LIMIT),
    )(x_cols, w_mat)


def _affine_act(y, scale, shift, *, act, tm):
    Mp, C = y.shape
    T = Mp // tm
    return pl.pallas_call(
        functools.partial(_affine_act_kernel, act=act),
        out_shape=jax.ShapeDtypeStruct((Mp, C), jnp.float32),
        grid=(T,),
        in_specs=[pl.BlockSpec((tm, C), lambda i: (i, 0)),
                  pl.BlockSpec((1, C), lambda i: (0, 0)),
                  pl.BlockSpec((1, C), lambda i: (0, 0))],
        out_specs=pl.BlockSpec((tm, C), lambda i: (i, 0)),
        compiler_params=pltpu.CompilerParams(
            dimension_semantics=("parallel",),
            vmem_limit_bytes=_VMEM_LIMIT),
    )(y, scale, shift)


# ----------------------------------------------------------------------------
# ConvTranspose2d lowering (plain-JAX glue: weight rearrangement, im2col, pads)
# ----------------------------------------------------------------------------
# For stride=2, k=4, pad=1:  out[2i+dy, 2j+dx] only uses kernel taps of one
# parity.  With window offset ry = ty-1 in {-1,0,+1}:  ky = _KY_TAB[dy][ty]
# (-1 means "no contribution").  Same table applies to the x/width axis.
_KY_TAB = ((3, 1, -1),   # dy == 0 : ry=-1 -> ky=3, ry=0 -> ky=1, ry=+1 -> none
           (-1, 2, 0))   # dy == 1 : ry=-1 -> none, ry=0 -> ky=2, ry=+1 -> ky=0


def _pad_last(a, target):
    pad = target - a.shape[-1]
    if pad == 0:
        return a
    return jnp.pad(a, [(0, 0)] * (a.ndim - 1) + [(0, pad)])


def _subpixel_weight(w_pt, cpad):
    """(Cin, Cout, 4, 4) PyTorch ConvTranspose2d weight -> (9*Cin, 4*cpad)."""
    Cin, Cout, k, _ = w_pt.shape
    assert k == 4
    Wm = jnp.zeros((3, 3, Cin, 2, 2, cpad), jnp.float32)
    for dy in range(2):
        for ty in range(3):
            ky = _KY_TAB[dy][ty]
            if ky < 0:
                continue
            for dx in range(2):
                for tx in range(3):
                    kx = _KY_TAB[dx][tx]
                    if kx < 0:
                        continue
                    Wm = Wm.at[ty, tx, :, dy, dx, :Cout].set(w_pt[:, :, ky, kx])
    return Wm.reshape(9 * Cin, 4 * cpad)


def _first_weight(w_pt, cpad):
    """(Cin, Cout, 4, 4) weight of the 1x1-input layer -> (Cin, 16*cpad)."""
    Cin, Cout, k, _ = w_pt.shape
    w = jnp.transpose(w_pt, (0, 2, 3, 1))       # (Cin, ky, kx, Cout)
    w = _pad_last(w, cpad)
    return w.reshape(Cin, k * k * cpad)


def conv_transpose_block(x_nhwc, w_pt, gamma, beta, *, first, use_bn, act):
    N, H, W, _ = x_nhwc.shape
    Cin, Cout, k, _ = w_pt.shape

    if first:
        # ConvTranspose2d(stride=1, pad=0) on a 1x1 input: pure matmul.
        taps_out = k * k                                       # 16 output pixels
        cpad = _round_up(Cout, max(1, LANE // taps_out))
        w_mat = _first_weight(w_pt, cpad)
        x_cols = x_nhwc.reshape(N, Cin)
        M = N
    else:
        # stride=2, pad=1: sub-pixel decomposition (4 output parities, 3x3 window).
        taps_out = 4
        cpad = _round_up(Cout, LANE // taps_out)               # multiple of 32
        w_mat = _subpixel_weight(w_pt, cpad)
        xp = jnp.pad(x_nhwc, ((0, 0), (1, 1), (1, 1), (0, 0)))
        taps = [xp[:, ty:ty + H, tx:tx + W, :] for ty in range(3) for tx in range(3)]
        x_cols = jnp.concatenate(taps, axis=-1).reshape(N * H * W, 9 * Cin)
        M = N * H * W

    Ctot = taps_out * cpad                                     # multiple of 128

    # Row tiling: TM = 512 (multiple of 16 for bf16 sublane packing); pad M with
    # zero rows (harmless for the BN sums, sliced off afterwards).
    tm = 512 if M >= 512 else _round_up(M, 16)
    Mp = _round_up(M, tm)
    if Mp != M:
        x_cols = jnp.pad(x_cols, ((0, Mp - M), (0, 0)))

    x_cols = x_cols.astype(jnp.bfloat16)                       # bf16 MXU feed
    w_mat = w_mat.astype(jnp.bfloat16)

    if use_bn:
        # Pass A: matmul + per-tile partial (sum, sum^2) per column.
        y, st = _matmul_with_stats(x_cols, w_mat, tm=tm)
        T = Mp // tm
        st = st.reshape(T, 8, Ctot)
        ssum = st[:, 0, :].sum(axis=0).reshape(taps_out, cpad).sum(axis=0)
        ssq = st[:, 1, :].sum(axis=0).reshape(taps_out, cpad).sum(axis=0)
        count = float(M * taps_out)                            # = N*Ho*Wo
        mean = ssum / count
        var = jnp.maximum(ssq / count - mean * mean, 0.0)      # biased, train mode
        gpad = jnp.pad(gamma.astype(jnp.float32), (0, cpad - Cout))
        bpad = jnp.pad(beta.astype(jnp.float32), (0, cpad - Cout))
        inv = jax.lax.rsqrt(var + _BN_EPS)
        scale_c = gpad * inv
        shift_c = bpad - mean * scale_c
        scale = jnp.tile(scale_c, taps_out).reshape(1, Ctot)
        shift = jnp.tile(shift_c, taps_out).reshape(1, Ctot)
        # Pass B: lane-dense normalize + activation.
        y = _affine_act(y, scale, shift, act=act, tm=tm)
    else:
        y = _matmul_act(x_cols, w_mat, act=act, tm=tm)

    y = y[:M]
    if first:
        y = y.reshape(N, k, k, cpad)[..., :Cout]               # (N, 4, 4, Cout)
    else:
        y = y.reshape(N, H, W, 2, 2, cpad)[..., :Cout]
        y = jnp.transpose(y, (0, 1, 3, 2, 4, 5)).reshape(N, 2 * H, 2 * W, Cout)
    return y


def dcgan_generator_forward(z_nchw, params):
    """DcGanGenerator forward.  z_nchw: (N, nz, 1, 1) -> (N, channels, 64, 64)."""
    x = jnp.transpose(z_nchw, (0, 2, 3, 1))                    # NCHW -> NHWC
    cfgs = [
        dict(first=True, use_bn=True, act="relu"),
        dict(first=False, use_bn=True, act="relu"),
        dict(first=False, use_bn=True, act="relu"),
        dict(first=False, use_bn=True, act="relu"),
        dict(first=False, use_bn=False, act="tanh"),
    ]
    for i, cfg in enumerate(cfgs):
        w = params[f"w{i}"]
        cout = w.shape[1]
        g = params.get(f"gamma{i}", jnp.ones((cout,), jnp.float32))
        b = params.get(f"beta{i}", jnp.zeros((cout,), jnp.float32))
        x = conv_transpose_block(x, w, g, b, **cfg)
    return jnp.transpose(x, (0, 3, 1, 2))                      # NHWC -> NCHW


# ----------------------------------------------------------------------------
# Independent NumPy reference (direct PyTorch-style definitions)
# ----------------------------------------------------------------------------
def _conv_transpose_ref(x, w, stride, pad):  # x: (N,Cin,H,W), w: (Cin,Cout,k,k)
    N, Cin, H, W = x.shape
    _, Cout, k, _ = w.shape
    Ho = (H - 1) * stride - 2 * pad + k
    Wo = (W - 1) * stride - 2 * pad + k
    out = np.zeros((N, Cout, Ho, Wo), np.float32)
    for ky in range(k):
        for kx in range(k):
            y = np.einsum("nchw,cd->ndhw", x, w[:, :, ky, kx])
            for iy in range(H):
                oy = iy * stride - pad + ky
                if oy < 0 or oy >= Ho:
                    continue
                for ix in range(W):
                    ox = ix * stride - pad + kx
                    if ox < 0 or ox >= Wo:
                        continue
                    out[:, :, oy, ox] += y[:, :, iy, ix]
    return out


def _bn_relu_ref(x, gamma, beta, eps=1e-5):  # NCHW, training-mode batch stats
    mean = x.mean(axis=(0, 2, 3), keepdims=True)
    var = x.var(axis=(0, 2, 3), keepdims=True)
    xn = (x - mean) / np.sqrt(var + eps)
    xn = xn * gamma.reshape(1, -1, 1, 1) + beta.reshape(1, -1, 1, 1)
    return np.maximum(xn, 0.0)


def reference_forward(z, params):
    x = np.asarray(z, np.float32)
    x = _conv_transpose_ref(x, np.asarray(params["w0"]), 1, 0)
    x = _bn_relu_ref(x, np.asarray(params["gamma0"]), np.asarray(params["beta0"]))
    for i, (s, p) in enumerate([(2, 1), (2, 1), (2, 1)], start=1):
        x = _conv_transpose_ref(x, np.asarray(params[f"w{i}"]), s, p)
        x = _bn_relu_ref(x, np.asarray(params[f"gamma{i}"]), np.asarray(params[f"beta{i}"]))
    x = _conv_transpose_ref(x, np.asarray(params["w4"]), 2, 1)
    return np.tanh(x)


# ----------------------------------------------------------------------------
if __name__ == "__main__":
    # Small config consistent with the module: nz=16, ngf=8, channels=1, batch=2.
    nz, ngf, channels, batch = 16, 8, 1, 2
    chs = [nz, ngf * 8, ngf * 4, ngf * 2, ngf, channels]

    key = jax.random.PRNGKey(0)
    params = {}
    for i in range(5):
        key, kw = jax.random.split(key)
        params[f"w{i}"] = 0.02 * jax.random.normal(kw, (chs[i], chs[i + 1], 4, 4), jnp.float32)
        if i < 4:  # BatchNorm2d affine params for the first four blocks
            key, kg, kb = jax.random.split(key, 3)
            params[f"gamma{i}"] = 1.0 + 0.1 * jax.random.normal(kg, (chs[i + 1],), jnp.float32)
            params[f"beta{i}"] = 0.1 * jax.random.normal(kb, (chs[i + 1],), jnp.float32)

    key, kz = jax.random.split(key)
    z = jax.random.normal(kz, (batch, nz, 1, 1), jnp.float32)

    out = jax.jit(dcgan_generator_forward)(z, params)
    out = jax.block_until_ready(out)
    assert out.shape == (batch, channels, 64, 64), out.shape

    ref = reference_forward(np.asarray(z), params)
    # Slightly looser than f32 tolerance: the MXU is fed bf16 patches/weights.
    np.testing.assert_allclose(np.asarray(out), ref, rtol=3e-2, atol=3e-2)

    print("KERNEL_OK")
</pallas_src>

<mosaic_0001>
module attributes {stable_mosaic.version = 11 : i64} {
  func.func @_mm_stats_kernel(%arg0: i32, %arg1: memref<16x16xbf16, #tpu.memory_space<vmem>>, %arg2: memref<16x1024xbf16, #tpu.memory_space<vmem>>, %arg3: memref<16x1024xf32, #tpu.memory_space<vmem>>, %arg4: memref<8x1024xf32, #tpu.memory_space<vmem>>) attributes {dimension_semantics = [#tpu.dimension_semantics<parallel>], iteration_bounds = array<i64: 1>, scalar_prefetch = 0 : i64, scratch_operands = 0 : i64, tpu.core_type = #tpu.core_type<tc>, window_params = [{transform_indices = @transform_0, window_bounds = array<i64: 16, 16>}, {pipeline_mode = #tpu.pipeline_mode<synchronous>, transform_indices = @transform_1, window_bounds = array<i64: 16, 1024>}, {transform_indices = @transform_2, window_bounds = array<i64: 16, 1024>}, {transform_indices = @transform_3, window_bounds = array<i64: 8, 1024>}]} {
    %c0 = arith.constant 0 : index
    %c0_0 = arith.constant 0 : index
    %0 = vector.load %arg1[%c0, %c0_0] : memref<16x16xbf16, #tpu.memory_space<vmem>>, vector<16x16xbf16>
    %c0_1 = arith.constant 0 : index
    %c0_2 = arith.constant 0 : index
    %1 = vector.load %arg2[%c0_1, %c0_2] : memref<16x1024xbf16, #tpu.memory_space<vmem>>, vector<16x1024xbf16>
    %cst = arith.constant dense<0.000000e+00> : vector<16x1024xf32>
    %2 = tpu.matmul %0, %1, %cst {dimension_numbers = #tpu.dot_dimension_numbers<[1], [0], [0], [1], [0, 0, 1, 1], [], []>} : vector<16x16xbf16>, vector<16x1024xbf16>, vector<16x1024xf32> -> vector<16x1024xf32>
    %c0_3 = arith.constant 0 : index
    %c0_4 = arith.constant 0 : index
    %3 = vector.load %arg3[%c0_3, %c0_4] : memref<16x1024xf32, #tpu.memory_space<vmem>>, vector<16x1024xf32>
    tpu.vector_store %arg3[%c0_3, %c0_4], %2 {strides = array<i32>} : memref<16x1024xf32, #tpu.memory_space<vmem>>, vector<16x1024xf32>,
    %cst_5 = arith.constant dense<0.000000e+00> : vector<1024xf32>
    %4 = vector.multi_reduction <add>, %2, %cst_5 [0] : vector<16x1024xf32> to vector<1024xf32>
    %5 = vector.shape_cast %4 : vector<1024xf32> to vector<1x1024xf32>
    %6 = arith.mulf %2, %2 : vector<16x1024xf32>
    %cst_6 = arith.constant dense<0.000000e+00> : vector<1024xf32>
    %7 = vector.multi_reduction <add>, %6, %cst_6 [0] : vector<16x1024xf32> to vector<1024xf32>
    %8 = vector.shape_cast %7 : vector<1024xf32> to vector<1x1024xf32>
    %cst_7 = arith.constant 0.000000e+00 : f32
    %9 = vector.broadcast %cst_7 : f32 to vector<6x1024xf32>
    %10 = tpu.concatenate %5, %8, %9 in 0 : vector<1x1024xf32>, vector<1x1024xf32>, vector<6x1024xf32> -> vector<8x1024xf32>
    %c0_8 = arith.constant 0 : index
    %c0_9 = arith.constant 0 : index
    %11 = vector.load %arg4[%c0_8, %c0_9] : memref<8x1024xf32, #tpu.memory_space<vmem>>, vector<8x1024xf32>
    tpu.vector_store %arg4[%c0_8, %c0_9], %10 {strides = array<i32>} : memref<8x1024xf32, #tpu.memory_space<vmem>>, vector<8x1024xf32>,
    return
  }
  func.func @transform_0(%arg0: i32) -> (i32, i32) {
    %c0_i32 = arith.constant 0 : i32
    %c0_i32_0 = arith.constant 0 : i32
    return %arg0, %c0_i32 : i32, i32
  }
  func.func @transform_1(%arg0: i32) -> (i32, i32) {
    %c0_i32 = arith.constant 0 : i32
    %c0_i32_0 = arith.constant 0 : i32
    %c0_i32_1 = arith.constant 0 : i32
    return %c0_i32, %c0_i32_0 : i32, i32
  }
  func.func @transform_2(%arg0: i32) -> (i32, i32) {
    %c0_i32 = arith.constant 0 : i32
    %c0_i32_0 = arith.constant 0 : i32
    return %arg0, %c0_i32 : i32, i32
  }
  func.func @transform_3(%arg0: i32) -> (i32, i32) {
    %c0_i32 = arith.constant 0 : i32
    %c0_i32_0 = arith.constant 0 : i32
    return %arg0, %c0_i32 : i32, i32
  }
}

module attributes {stable_mosaic.version = 11 : i64} {
  func.func @_affine_act_kernel(%arg0: i32, %arg1: memref<16x1024xf32, #tpu.memory_space<vmem>>, %arg2: memref<1x1024xf32, #tpu.memory_space<vmem>>, %arg3: memref<1x1024xf32, #tpu.memory_space<vmem>>, %arg4: memref<16x1024xf32, #tpu.memory_space<vmem>>) attributes {dimension_semantics = [#tpu.dimension_semantics<parallel>], iteration_bounds = array<i64: 1>, scalar_prefetch = 0 : i64, scratch_operands = 0 : i64, tpu.core_type = #tpu.core_type<tc>, window_params = [{transform_indices = @transform_0, window_bounds = array<i64: 16, 1024>}, {pipeline_mode = #tpu.pipeline_mode<synchronous>, transform_indices = @transform_1, window_bounds = array<i64: 1, 1024>}, {pipeline_mode = #tpu.pipeline_mode<synchronous>, transform_indices = @transform_2, window_bounds = array<i64: 1, 1024>}, {transform_indices = @transform_3, window_bounds = array<i64: 16, 1024>}]} {
    %c0 = arith.constant 0 : index
    %c0_0 = arith.constant 0 : index
    %0 = vector.load %arg1[%c0, %c0_0] : memref<16x1024xf32, #tpu.memory_space<vmem>>, vector<16x1024xf32>
    %c0_1 = arith.constant 0 : index
    %c0_2 = arith.constant 0 : index
    %1 = vector.load %arg2[%c0_1, %c0_2] : memref<1x1024xf32, #tpu.memory_space<vmem>>, vector<1x1024xf32>
    %2 = vector.broadcast %1 : vector<1x1024xf32> to vector<16x1024xf32>
    %3 = arith.mulf %0, %2 : vector<16x1024xf32>
    %c0_3 = arith.constant 0 : index
    %c0_4 = arith.constant 0 : index
    %4 = vector.load %arg3[%c0_3, %c0_4] : memref<1x1024xf32, #tpu.memory_space<vmem>>, vector<1x1024xf32>
    %5 = vector.broadcast %4 : vector<1x1024xf32> to vector<16x1024xf32>
    %6 = arith.addf %3, %5 : vector<16x1024xf32>
    %cst = arith.constant 0.000000e+00 : f32
    %7 = vector.broadcast %cst : f32 to vector<16x1024xf32>
    %8 = arith.maximumf %6, %7 : vector<16x1024xf32>
    %c0_5 = arith.constant 0 : index
    %c0_6 = arith.constant 0 : index
    %9 = vector.load %arg4[%c0_5, %c0_6] : memref<16x1024xf32, #tpu.memory_space<vmem>>, vector<16x1024xf32>
    tpu.vector_store %arg4[%c0_5, %c0_6], %8 {strides = array<i32>} : memref<16x1024xf32, #tpu.memory_space<vmem>>, vector<16x1024xf32>,
    return
  }
  func.func @transform_0(%arg0: i32) -> (i32, i32) {
    %c0_i32 = arith.constant 0 : i32
    %c0_i32_0 = arith.constant 0 : i32
    return %arg0, %c0_i32 : i32, i32
  }
  func.func @transform_1(%arg0: i32) -> (i32, i32) {
    %c0_i32 = arith.constant 0 : i32
    %c0_i32_0 = arith.constant 0 : i32
    %c0_i32_1 = arith.constant 0 : i32
    return %c0_i32, %c0_i32_0 : i32, i32
  }
  func.func @transform_2(%arg0: i32) -> (i32, i32) {
    %c0_i32 = arith.constant 0 : i32
    %c0_i32_0 = arith.constant 0 : i32
    %c0_i32_1 = arith.constant 0 : i32
    return %c0_i32, %c0_i32_0 : i32, i32
  }
  func.func @transform_3(%arg0: i32) -> (i32, i32) {
    %c0_i32 = arith.constant 0 : i32
    %c0_i32_0 = arith.constant 0 : i32
    return %arg0, %c0_i32 : i32, i32
  }
}

module attributes {stable_mosaic.version = 11 : i64} {
  func.func @_mm_stats_kernel(%arg0: i32, %arg1: memref<32x576xbf16, #tpu.memory_space<vmem>>, %arg2: memref<576x128xbf16, #tpu.memory_space<vmem>>, %arg3: memref<32x128xf32, #tpu.memory_space<vmem>>, %arg4: memref<8x128xf32, #tpu.memory_space<vmem>>) attributes {dimension_semantics = [#tpu.dimension_semantics<parallel>], iteration_bounds = array<i64: 1>, scalar_prefetch = 0 : i64, scratch_operands = 0 : i64, tpu.core_type = #tpu.core_type<tc>, window_params = [{transform_indices = @transform_0, window_bounds = array<i64: 32, 576>}, {pipeline_mode = #tpu.pipeline_mode<synchronous>, transform_indices = @transform_1, window_bounds = array<i64: 576, 128>}, {transform_indices = @transform_2, window_bounds = array<i64: 32, 128>}, {transform_indices = @transform_3, window_bounds = array<i64: 8, 128>}]} {
    %c0 = arith.constant 0 : index
    %c0_0 = arith.constant 0 : index
    %0 = vector.load %arg1[%c0, %c0_0] : memref<32x576xbf16, #tpu.memory_space<vmem>>, vector<32x576xbf16>
    %c0_1 = arith.constant 0 : index
    %c0_2 = arith.constant 0 : index
    %1 = vector.load %arg2[%c0_1, %c0_2] : memref<576x128xbf16, #tpu.memory_space<vmem>>, vector<576x128xbf16>
    %cst = arith.constant dense<0.000000e+00> : vector<32x128xf32>
    %2 = tpu.matmul %0, %1, %cst {dimension_numbers = #tpu.dot_dimension_numbers<[1], [0], [0], [1], [0, 0, 1, 1], [], []>} : vector<32x576xbf16>, vector<576x128xbf16>, vector<32x128xf32> -> vector<32x128xf32>
    %c0_3 = arith.constant 0 : index
    %c0_4 = arith.constant 0 : index
    %3 = vector.load %arg3[%c0_3, %c0_4] : memref<32x128xf32, #tpu.memory_space<vmem>>, vector<32x128xf32>
    tpu.vector_store %arg3[%c0_3, %c0_4], %2 {strides = array<i32>} : memref<32x128xf32, #tpu.memory_space<vmem>>, vector<32x128xf32>,
    %cst_5 = arith.constant dense<0.000000e+00> : vector<128xf32>
    %4 = vector.multi_reduction <add>, %2, %cst_5 [0] : vector<32x128xf32> to vector<128xf32>
    %5 = vector.shape_cast %4 : vector<128xf32> to vector<1x128xf32>
    %6 = arith.mulf %2, %2 : vector<32x128xf32>
    %cst_6 = arith.constant dense<0.000000e+00> : vector<128xf32>
    %7 = vector.multi_reduction <add>, %6, %cst_6 [0] : vector<32x128xf32> to vector<128xf32>
    %8 = vector.shape_cast %7 : vector<128xf32> to vector<1x128xf32>
    %cst_7 = arith.constant 0.000000e+00 : f32
    %9 = vector.broadcast %cst_7 : f32 to vector<6x128xf32>
    %10 = tpu.concatenate %5, %8, %9 in 0 : vector<1x128xf32>, vector<1x128xf32>, vector<6x128xf32> -> vector<8x128xf32>
    %c0_8 = arith.constant 0 : index
    %c0_9 = arith.constant 0 : index
    %11 = vector.load %arg4[%c0_8, %c0_9] : memref<8x128xf32, #tpu.memory_space<vmem>>, vector<8x128xf32>
    tpu.vector_store %arg4[%c0_8, %c0_9], %10 {strides = array<i32>} : memref<8x128xf32, #tpu.memory_space<vmem>>, vector<8x128xf32>,
    return
  }
  func.func @transform_0(%arg0: i32) -> (i32, i32) {
    %c0_i32 = arith.constant 0 : i32
    %c0_i32_0 = arith.constant 0 : i32
    return %arg0, %c0_i32 : i32, i32
  }
  func.func @transform_1(%arg0: i32) -> (i32, i32) {
    %c0_i32 = arith.constant 0 : i32
    %c0_i32_0 = arith.constant 0 : i32
    %c0_i32_1 = arith.constant 0 : i32
    return %c0_i32, %c0_i32_0 : i32, i32
  }
  func.func @transform_2(%arg0: i32) -> (i32, i32) {
    %c0_i32 = arith.constant 0 : i32
    %c0_i32_0 = arith.constant 0 : i32
    return %arg0, %c0_i32 : i32, i32
  }
  func.func @transform_3(%arg0: i32) -> (i32, i32) {
    %c0_i32 = arith.constant 0 : i32
    %c0_i32_0 = arith.constant 0 : i32
    return %arg0, %c0_i32 : i32, i32
  }
}

module attributes {stable_mosaic.version = 11 : i64} {
  func.func @_affine_act_kernel(%arg0: i32, %arg1: memref<32x128xf32, #tpu.memory_space<vmem>>, %arg2: memref<1x128xf32, #tpu.memory_space<vmem>>, %arg3: memref<1x128xf32, #tpu.memory_space<vmem>>, %arg4: memref<32x128xf32, #tpu.memory_space<vmem>>) attributes {dimension_semantics = [#tpu.dimension_semantics<parallel>], iteration_bounds = array<i64: 1>, scalar_prefetch = 0 : i64, scratch_operands = 0 : i64, tpu.core_type = #tpu.core_type<tc>, window_params = [{transform_indices = @transform_0, window_bounds = array<i64: 32, 128>}, {pipeline_mode = #tpu.pipeline_mode<synchronous>, transform_indices = @transform_1, window_bounds = array<i64: 1, 128>}, {pipeline_mode = #tpu.pipeline_mode<synchronous>, transform_indices = @transform_2, window_bounds = array<i64: 1, 128>}, {transform_indices = @transform_3, window_bounds = array<i64: 32, 128>}]} {
    %c0 = arith.constant 0 : index
    %c0_0 = arith.constant 0 : index
    %0 = vector.load %arg1[%c0, %c0_0] : memref<32x128xf32, #tpu.memory_space<vmem>>, vector<32x128xf32>
    %c0_1 = arith.constant 0 : index
    %c0_2 = arith.constant 0 : index
    %1 = vector.load %arg2[%c0_1, %c0_2] : memref<1x128xf32, #tpu.memory_space<vmem>>, vector<1x128xf32>
    %2 = vector.broadcast %1 : vector<1x128xf32> to vector<32x128xf32>
    %3 = arith.mulf %0, %2 : vector<32x128xf32>
    %c0_3 = arith.constant 0 : index
    %c0_4 = arith.constant 0 : index
    %4 = vector.load %arg3[%c0_3, %c0_4] : memref<1x128xf32, #tpu.memory_space<vmem>>, vector<1x128xf32>
    %5 = vector.broadcast %4 : vector<1x128xf32> to vector<32x128xf32>
    %6 = arith.addf %3, %5 : vector<32x128xf32>
    %cst = arith.constant 0.000000e+00 : f32
    %7 = vector.broadcast %cst : f32 to vector<32x128xf32>
    %8 = arith.maximumf %6, %7 : vector<32x128xf32>
    %c0_5 = arith.constant 0 : index
    %c0_6 = arith.constant 0 : index
    %9 = vector.load %arg4[%c0_5, %c0_6] : memref<32x128xf32, #tpu.memory_space<vmem>>, vector<32x128xf32>
    tpu.vector_store %arg4[%c0_5, %c0_6], %8 {strides = array<i32>} : memref<32x128xf32, #tpu.memory_space<vmem>>, vector<32x128xf32>,
    return
  }
  func.func @transform_0(%arg0: i32) -> (i32, i32) {
    %c0_i32 = arith.constant 0 : i32
    %c0_i32_0 = arith.constant 0 : i32
    return %arg0, %c0_i32 : i32, i32
  }
  func.func @transform_1(%arg0: i32) -> (i32, i32) {
    %c0_i32 = arith.constant 0 : i32
    %c0_i32_0 = arith.constant 0 : i32
    %c0_i32_1 = arith.constant 0 : i32
    return %c0_i32, %c0_i32_0 : i32, i32
  }
  func.func @transform_2(%arg0: i32) -> (i32, i32) {
    %c0_i32 = arith.constant 0 : i32
    %c0_i32_0 = arith.constant 0 : i32
    %c0_i32_1 = arith.constant 0 : i32
    return %c0_i32, %c0_i32_0 : i32, i32
  }
  func.func @transform_3(%arg0: i32) -> (i32, i32) {
    %c0_i32 = arith.constant 0 : i32
    %c0_i32_0 = arith.constant 0 : i32
    return %arg0, %c0_i32 : i32, i32
  }
}

module attributes {stable_mosaic.version = 11 : i64} {
  func.func @_mm_stats_kernel(%arg0: i32, %arg1: memref<128x288xbf16, #tpu.memory_space<vmem>>, %arg2: memref<288x128xbf16, #tpu.memory_space<vmem>>, %arg3: memref<128x128xf32, #tpu.memory_space<vmem>>, %arg4: memref<8x128xf32, #tpu.memory_space<vmem>>) attributes {dimension_semantics = [#tpu.dimension_semantics<parallel>], iteration_bounds = array<i64: 1>, scalar_prefetch = 0 : i64, scratch_operands = 0 : i64, tpu.core_type = #tpu.core_type<tc>, window_params = [{transform_indices = @transform_0, window_bounds = array<i64: 128, 288>}, {pipeline_mode = #tpu.pipeline_mode<synchronous>, transform_indices = @transform_1, window_bounds = array<i64: 288, 128>}, {transform_indices = @transform_2, window_bounds = array<i64: 128, 128>}, {transform_indices = @transform_3, window_bounds = array<i64: 8, 128>}]} {
    %c0 = arith.constant 0 : index
    %c0_0 = arith.constant 0 : index
    %0 = vector.load %arg1[%c0, %c0_0] : memref<128x288xbf16, #tpu.memory_space<vmem>>, vector<128x288xbf16>
    %c0_1 = arith.constant 0 : index
    %c0_2 = arith.constant 0 : index
    %1 = vector.load %arg2[%c0_1, %c0_2] : memref<288x128xbf16, #tpu.memory_space<vmem>>, vector<288x128xbf16>
    %cst = arith.constant dense<0.000000e+00> : vector<128x128xf32>
    %2 = tpu.matmul %0, %1, %cst {dimension_numbers = #tpu.dot_dimension_numbers<[1], [0], [0], [1], [0, 0, 1, 1], [], []>} : vector<128x288xbf16>, vector<288x128xbf16>, vector<128x128xf32> -> vector<128x128xf32>
    %c0_3 = arith.constant 0 : index
    %c0_4 = arith.constant 0 : index
    %3 = vector.load %arg3[%c0_3, %c0_4] : memref<128x128xf32, #tpu.memory_space<vmem>>, vector<128x128xf32>
    tpu.vector_store %arg3[%c0_3, %c0_4], %2 {strides = array<i32>} : memref<128x128xf32, #tpu.memory_space<vmem>>, vector<128x128xf32>,
    %cst_5 = arith.constant dense<0.000000e+00> : vector<128xf32>
    %4 = vector.multi_reduction <add>, %2, %cst_5 [0] : vector<128x128xf32> to vector<128xf32>
    %5 = vector.shape_cast %4 : vector<128xf32> to vector<1x128xf32>
    %6 = arith.mulf %2, %2 : vector<128x128xf32>
    %cst_6 = arith.constant dense<0.000000e+00> : vector<128xf32>
    %7 = vector.multi_reduction <add>, %6, %cst_6 [0] : vector<128x128xf32> to vector<128xf32>
    %8 = vector.shape_cast %7 : vector<128xf32> to vector<1x128xf32>
    %cst_7 = arith.constant 0.000000e+00 : f32
    %9 = vector.broadcast %cst_7 : f32 to vector<6x128xf32>
    %10 = tpu.concatenate %5, %8, %9 in 0 : vector<1x128xf32>, vector<1x128xf32>, vector<6x128xf32> -> vector<8x128xf32>
    %c0_8 = arith.constant 0 : index
    %c0_9 = arith.constant 0 : index
    %11 = vector.load %arg4[%c0_8, %c0_9] : memref<8x128xf32, #tpu.memory_space<vmem>>, vector<8x128xf32>
    tpu.vector_store %arg4[%c0_8, %c0_9], %10 {strides = array<i32>} : memref<8x128xf32, #tpu.memory_space<vmem>>, vector<8x128xf32>,
    return
  }
  func.func @transform_0(%arg0: i32) -> (i32, i32) {
    %c0_i32 = arith.constant 0 : i32
    %c0_i32_0 = arith.constant 0 : i32
    return %arg0, %c0_i32 : i32, i32
  }
  func.func @transform_1(%arg0: i32) -> (i32, i32) {
    %c0_i32 = arith.constant 0 : i32
    %c0_i32_0 = arith.constant 0 : i32
    %c0_i32_1 = arith.constant 0 : i32
    return %c0_i32, %c0_i32_0 : i32, i32
  }
  func.func @transform_2(%arg0: i32) -> (i32, i32) {
    %c0_i32 = arith.constant 0 : i32
    %c0_i32_0 = arith.constant 0 : i32
    return %arg0, %c0_i32 : i32, i32
  }
  func.func @transform_3(%arg0: i32) -> (i32, i32) {
    %c0_i32 = arith.constant 0 : i32
    %c0_i32_0 = arith.constant 0 : i32
    return %arg0, %c0_i32 : i32, i32
  }
}

module attributes {stable_mosaic.version = 11 : i64} {
  func.func @_affine_act_kernel(%arg0: i32, %arg1: memref<128x128xf32, #tpu.memory_space<vmem>>, %arg2: memref<1x128xf32, #tpu.memory_space<vmem>>, %arg3: memref<1x128xf32, #tpu.memory_space<vmem>>, %arg4: memref<128x128xf32, #tpu.memory_space<vmem>>) attributes {dimension_semantics = [#tpu.dimension_semantics<parallel>], iteration_bounds = array<i64: 1>, scalar_prefetch = 0 : i64, scratch_operands = 0 : i64, tpu.core_type = #tpu.core_type<tc>, window_params = [{transform_indices = @transform_0, window_bounds = array<i64: 128, 128>}, {pipeline_mode = #tpu.pipeline_mode<synchronous>, transform_indices = @transform_1, window_bounds = array<i64: 1, 128>}, {pipeline_mode = #tpu.pipeline_mode<synchronous>, transform_indices = @transform_2, window_bounds = array<i64: 1, 128>}, {transform_indices = @transform_3, window_bounds = array<i64: 128, 128>}]} {
    %c0 = arith.constant 0 : index
    %c0_0 = arith.constant 0 : index
    %0 = vector.load %arg1[%c0, %c0_0] : memref<128x128xf32, #tpu.memory_space<vmem>>, vector<128x128xf32>
    %c0_1 = arith.constant 0 : index
    %c0_2 = arith.constant 0 : index
    %1 = vector.load %arg2[%c0_1, %c0_2] : memref<1x128xf32, #tpu.memory_space<vmem>>, vector<1x128xf32>
    %2 = vector.broadcast %1 : vector<1x128xf32> to vector<128x128xf32>
    %3 = arith.mulf %0, %2 : vector<128x128xf32>
    %c0_3 = arith.constant 0 : index
    %c0_4 = arith.constant 0 : index
    %4 = vector.load %arg3[%c0_3, %c0_4] : memref<1x128xf32, #tpu.memory_space<vmem>>, vector<1x128xf32>
    %5 = vector.broadcast %4 : vector<1x128xf32> to vector<128x128xf32>
    %6 = arith.addf %3, %5 : vector<128x128xf32>
    %cst = arith.constant 0.000000e+00 : f32
    %7 = vector.broadcast %cst : f32 to vector<128x128xf32>
    %8 = arith.maximumf %6, %7 : vector<128x128xf32>
    %c0_5 = arith.constant 0 : index
    %c0_6 = arith.constant 0 : index
    %9 = vector.load %arg4[%c0_5, %c0_6] : memref<128x128xf32, #tpu.memory_space<vmem>>, vector<128x128xf32>
    tpu.vector_store %arg4[%c0_5, %c0_6], %8 {strides = array<i32>} : memref<128x128xf32, #tpu.memory_space<vmem>>, vector<128x128xf32>,
    return
  }
  func.func @transform_0(%arg0: i32) -> (i32, i32) {
    %c0_i32 = arith.constant 0 : i32
    %c0_i32_0 = arith.constant 0 : i32
    return %arg0, %c0_i32 : i32, i32
  }
  func.func @transform_1(%arg0: i32) -> (i32, i32) {
    %c0_i32 = arith.constant 0 : i32
    %c0_i32_0 = arith.constant 0 : i32
    %c0_i32_1 = arith.constant 0 : i32
    return %c0_i32, %c0_i32_0 : i32, i32
  }
  func.func @transform_2(%arg0: i32) -> (i32, i32) {
    %c0_i32 = arith.constant 0 : i32
    %c0_i32_0 = arith.constant 0 : i32
    %c0_i32_1 = arith.constant 0 : i32
    return %c0_i32, %c0_i32_0 : i32, i32
  }
  func.func @transform_3(%arg0: i32) -> (i32, i32) {
    %c0_i32 = arith.constant 0 : i32
    %c0_i32_0 = arith.constant 0 : i32
    return %arg0, %c0_i32 : i32, i32
  }
}

module attributes {stable_mosaic.version = 11 : i64} {
  func.func @_mm_stats_kernel(%arg0: i32, %arg1: memref<512x144xbf16, #tpu.memory_space<vmem>>, %arg2: memref<144x128xbf16, #tpu.memory_space<vmem>>, %arg3: memref<512x128xf32, #tpu.memory_space<vmem>>, %arg4: memref<8x128xf32, #tpu.memory_space<vmem>>) attributes {dimension_semantics = [#tpu.dimension_semantics<parallel>], iteration_bounds = array<i64: 1>, scalar_prefetch = 0 : i64, scratch_operands = 0 : i64, tpu.core_type = #tpu.core_type<tc>, window_params = [{transform_indices = @transform_0, window_bounds = array<i64: 512, 144>}, {pipeline_mode = #tpu.pipeline_mode<synchronous>, transform_indices = @transform_1, window_bounds = array<i64: 144, 128>}, {transform_indices = @transform_2, window_bounds = array<i64: 512, 128>}, {transform_indices = @transform_3, window_bounds = array<i64: 8, 128>}]} {
    %c0 = arith.constant 0 : index
    %c0_0 = arith.constant 0 : index
    %0 = vector.load %arg1[%c0, %c0_0] : memref<512x144xbf16, #tpu.memory_space<vmem>>, vector<512x144xbf16>
    %c0_1 = arith.constant 0 : index
    %c0_2 = arith.constant 0 : index
    %1 = vector.load %arg2[%c0_1, %c0_2] : memref<144x128xbf16, #tpu.memory_space<vmem>>, vector<144x128xbf16>
    %cst = arith.constant dense<0.000000e+00> : vector<512x128xf32>
    %2 = tpu.matmul %0, %1, %cst {dimension_numbers = #tpu.dot_dimension_numbers<[1], [0], [0], [1], [0, 0, 1, 1], [], []>} : vector<512x144xbf16>, vector<144x128xbf16>, vector<512x128xf32> -> vector<512x128xf32>
    %c0_3 = arith.constant 0 : index
    %c0_4 = arith.constant 0 : index
    %3 = vector.load %arg3[%c0_3, %c0_4] : memref<512x128xf32, #tpu.memory_space<vmem>>, vector<512x128xf32>
    tpu.vector_store %arg3[%c0_3, %c0_4], %2 {strides = array<i32>} : memref<512x128xf32, #tpu.memory_space<vmem>>, vector<512x128xf32>,
    %cst_5 = arith.constant dense<0.000000e+00> : vector<128xf32>
    %4 = vector.multi_reduction <add>, %2, %cst_5 [0] : vector<512x128xf32> to vector<128xf32>
    %5 = vector.shape_cast %4 : vector<128xf32> to vector<1x128xf32>
    %6 = arith.mulf %2, %2 : vector<512x128xf32>
    %cst_6 = arith.constant dense<0.000000e+00> : vector<128xf32>
    %7 = vector.multi_reduction <add>, %6, %cst_6 [0] : vector<512x128xf32> to vector<128xf32>
    %8 = vector.shape_cast %7 : vector<128xf32> to vector<1x128xf32>
    %cst_7 = arith.constant 0.000000e+00 : f32
    %9 = vector.broadcast %cst_7 : f32 to vector<6x128xf32>
    %10 = tpu.concatenate %5, %8, %9 in 0 : vector<1x128xf32>, vector<1x128xf32>, vector<6x128xf32> -> vector<8x128xf32>
    %c0_8 = arith.constant 0 : index
    %c0_9 = arith.constant 0 : index
    %11 = vector.load %arg4[%c0_8, %c0_9] : memref<8x128xf32, #tpu.memory_space<vmem>>, vector<8x128xf32>
    tpu.vector_store %arg4[%c0_8, %c0_9], %10 {strides = array<i32>} : memref<8x128xf32, #tpu.memory_space<vmem>>, vector<8x128xf32>,
    return
  }
  func.func @transform_0(%arg0: i32) -> (i32, i32) {
    %c0_i32 = arith.constant 0 : i32
    %c0_i32_0 = arith.constant 0 : i32
    return %arg0, %c0_i32 : i32, i32
  }
  func.func @transform_1(%arg0: i32) -> (i32, i32) {
    %c0_i32 = arith.constant 0 : i32
    %c0_i32_0 = arith.constant 0 : i32
    %c0_i32_1 = arith.constant 0 : i32
    return %c0_i32, %c0_i32_0 : i32, i32
  }
  func.func @transform_2(%arg0: i32) -> (i32, i32) {
    %c0_i32 = arith.constant 0 : i32
    %c0_i32_0 = arith.constant 0 : i32
    return %arg0, %c0_i32 : i32, i32
  }
  func.func @transform_3(%arg0: i32) -> (i32, i32) {
    %c0_i32 = arith.constant 0 : i32
    %c0_i32_0 = arith.constant 0 : i32
    return %arg0, %c0_i32 : i32, i32
  }
}

module attributes {stable_mosaic.version = 11 : i64} {
  func.func @_affine_act_kernel(%arg0: i32, %arg1: memref<512x128xf32, #tpu.memory_space<vmem>>, %arg2: memref<1x128xf32, #tpu.memory_space<vmem>>, %arg3: memref<1x128xf32, #tpu.memory_space<vmem>>, %arg4: memref<512x128xf32, #tpu.memory_space<vmem>>) attributes {dimension_semantics = [#tpu.dimension_semantics<parallel>], iteration_bounds = array<i64: 1>, scalar_prefetch = 0 : i64, scratch_operands = 0 : i64, tpu.core_type = #tpu.core_type<tc>, window_params = [{transform_indices = @transform_0, window_bounds = array<i64: 512, 128>}, {pipeline_mode = #tpu.pipeline_mode<synchronous>, transform_indices = @transform_1, window_bounds = array<i64: 1, 128>}, {pipeline_mode = #tpu.pipeline_mode<synchronous>, transform_indices = @transform_2, window_bounds = array<i64: 1, 128>}, {transform_indices = @transform_3, window_bounds = array<i64: 512, 128>}]} {
    %c0 = arith.constant 0 : index
    %c0_0 = arith.constant 0 : index
    %0 = vector.load %arg1[%c0, %c0_0] : memref<512x128xf32, #tpu.memory_space<vmem>>, vector<512x128xf32>
    %c0_1 = arith.constant 0 : index
    %c0_2 = arith.constant 0 : index
    %1 = vector.load %arg2[%c0_1, %c0_2] : memref<1x128xf32, #tpu.memory_space<vmem>>, vector<1x128xf32>
    %2 = vector.broadcast %1 : vector<1x128xf32> to vector<512x128xf32>
    %3 = arith.mulf %0, %2 : vector<512x128xf32>
    %c0_3 = arith.constant 0 : index
    %c0_4 = arith.constant 0 : index
    %4 = vector.load %arg3[%c0_3, %c0_4] : memref<1x128xf32, #tpu.memory_space<vmem>>, vector<1x128xf32>
    %5 = vector.broadcast %4 : vector<1x128xf32> to vector<512x128xf32>
    %6 = arith.addf %3, %5 : vector<512x128xf32>
    %cst = arith.constant 0.000000e+00 : f32
    %7 = vector.broadcast %cst : f32 to vector<512x128xf32>
    %8 = arith.maximumf %6, %7 : vector<512x128xf32>
    %c0_5 = arith.constant 0 : index
    %c0_6 = arith.constant 0 : index
    %9 = vector.load %arg4[%c0_5, %c0_6] : memref<512x128xf32, #tpu.memory_space<vmem>>, vector<512x128xf32>
    tpu.vector_store %arg4[%c0_5, %c0_6], %8 {strides = array<i32>} : memref<512x128xf32, #tpu.memory_space<vmem>>, vector<512x128xf32>,
    return
  }
  func.func @transform_0(%arg0: i32) -> (i32, i32) {
    %c0_i32 = arith.constant 0 : i32
    %c0_i32_0 = arith.constant 0 : i32
    return %arg0, %c0_i32 : i32, i32
  }
  func.func @transform_1(%arg0: i32) -> (i32, i32) {
    %c0_i32 = arith.constant 0 : i32
    %c0_i32_0 = arith.constant 0 : i32
    %c0_i32_1 = arith.constant 0 : i32
    return %c0_i32, %c0_i32_0 : i32, i32
  }
  func.func @transform_2(%arg0: i32) -> (i32, i32) {
    %c0_i32 = arith.constant 0 : i32
    %c0_i32_0 = arith.constant 0 : i32
    %c0_i32_1 = arith.constant 0 : i32
    return %c0_i32, %c0_i32_0 : i32, i32
  }
  func.func @transform_3(%arg0: i32) -> (i32, i32) {
    %c0_i32 = arith.constant 0 : i32
    %c0_i32_0 = arith.constant 0 : i32
    return %arg0, %c0_i32 : i32, i32
  }
}

module attributes {stable_mosaic.version = 11 : i64} {
  func.func @_mm_act_kernel(%arg0: i32, %arg1: memref<512x72xbf16, #tpu.memory_space<vmem>>, %arg2: memref<72x128xbf16, #tpu.memory_space<vmem>>, %arg3: memref<512x128xf32, #tpu.memory_space<vmem>>) attributes {dimension_semantics = [#tpu.dimension_semantics<parallel>], iteration_bounds = array<i64: 4>, scalar_prefetch = 0 : i64, scratch_operands = 0 : i64, tpu.core_type = #tpu.core_type<tc>, window_params = [{transform_indices = @transform_0, window_bounds = array<i64: 512, 72>}, {pipeline_mode = #tpu.pipeline_mode<synchronous>, transform_indices = @transform_1, window_bounds = array<i64: 72, 128>}, {transform_indices = @transform_2, window_bounds = array<i64: 512, 128>}]} {
    %c0 = arith.constant 0 : index
    %c0_0 = arith.constant 0 : index
    %0 = vector.load %arg1[%c0, %c0_0] : memref<512x72xbf16, #tpu.memory_space<vmem>>, vector<512x72xbf16>
    %c0_1 = arith.constant 0 : index
    %c0_2 = arith.constant 0 : index
    %1 = vector.load %arg2[%c0_1, %c0_2] : memref<72x128xbf16, #tpu.memory_space<vmem>>, vector<72x128xbf16>
    %cst = arith.constant dense<0.000000e+00> : vector<512x128xf32>
    %2 = tpu.matmul %0, %1, %cst {dimension_numbers = #tpu.dot_dimension_numbers<[1], [0], [0], [1], [0, 0, 1, 1], [], []>} : vector<512x72xbf16>, vector<72x128xbf16>, vector<512x128xf32> -> vector<512x128xf32>
    %3 = math.tanh %2 : vector<512x128xf32>
    %c0_3 = arith.constant 0 : index
    %c0_4 = arith.constant 0 : index
    %4 = vector.load %arg3[%c0_3, %c0_4] : memref<512x128xf32, #tpu.memory_space<vmem>>, vector<512x128xf32>
    tpu.vector_store %arg3[%c0_3, %c0_4], %3 {strides = array<i32>} : memref<512x128xf32, #tpu.memory_space<vmem>>, vector<512x128xf32>,
    return
  }
  func.func @transform_0(%arg0: i32) -> (i32, i32) {
    %c0_i32 = arith.constant 0 : i32
    %c0_i32_0 = arith.constant 0 : i32
    return %arg0, %c0_i32 : i32, i32
  }
  func.func @transform_1(%arg0: i32) -> (i32, i32) {
    %c0_i32 = arith.constant 0 : i32
    %c0_i32_0 = arith.constant 0 : i32
    %c0_i32_1 = arith.constant 0 : i32
    return %c0_i32, %c0_i32_0 : i32, i32
  }
  func.func @transform_2(%arg0: i32) -> (i32, i32) {
    %c0_i32 = arith.constant 0 : i32
    %c0_i32_0 = arith.constant 0 : i32
    return %arg0, %c0_i32 : i32, i32
  }
}

</mosaic_0001>

<bundles_post_ra>
// kernel: tile.48
= control target key start
LH: loop header
LB: loop body
LE: loop exit
PB: predicated region body
PF: predicated region fallthrough
CT: control target
= control target key end

     0   :  { %s28_s0 = inlined_call_operand.vmem [shape: f32[64], index: 0, kind: input, shape index: {}]   ;;  %s29_s1 = inlined_call_operand.vmem [shape: f32[16,64], index: 1, kind: output, shape index: {}]  }
   0x1   :  { %v4_v0 = vld [vmem:[%s28_s0] ss:$0 sm:$0xff] }
   0x2   :  { %5 = vst [vmem:[%s29_s1] sm:$0xff] %v4_v0 }
   0x3   :  { %8 = vst [vmem:[%s29_s1 + $0x8] sm:$0xff] %v4_v0 }

// kernel: tile.49
= control target key start
LH: loop header
LB: loop body
LE: loop exit
PB: predicated region body
PF: predicated region fallthrough
CT: control target
= control target key end

     0   :  { %vm3_vm0 = vcmask 523264   ;;  %vm10_vm1 = vcmask 1048064   ;;  %s111_s0 = inlined_call_operand.vmem [shape: f32[16,64], index: 0, kind: input, shape index: {}]   ;;  %s112_s1 = inlined_call_operand.vmem [shape: f32[1,1024], index: 1, kind: output, shape index: {}]  }
   0x1   :  { %v61_v0 = vld [vmem:[%s111_s0 + $0x1] ss:$2 sm:$0xff]   ;;  %v2_v1 = vld [vmem:[%s111_s0] ss:$2 sm:$0xff]   ;;  %s70_s0 = smov 64  }
   0x2   :  { %8 = vrot.lane.b32.xlu0 %v61_v0, %s70_s0  ;;  %4 = vst.msk [vmem:[#allocation0] ss:$8 sm:$0xf] %vm3_vm0, %v2_v1  }
   0x3   :  { %5 = vst.msk [vmem:[#allocation0] ss:$8 sm:$0xf0] %vm3_vm0, %v2_v1  }
  0x74   :  { %v9_v2 = vpop.permute.xlu0 %8  }
  0x75   :  { %11 = vst.msk [vmem:[#allocation0] ss:$8 sm:$0xf] %vm10_vm1, %v9_v2  }
  0x76   :  { %12 = vst.msk [vmem:[#allocation0] ss:$8 sm:$0xf0] %vm10_vm1, %v9_v2  }
  0x7c   :  { %v15_v3 = vld [vmem:[#allocation0] sm:$0x1]  ;;  %v20_v4 = vld [vmem:[#allocation0 + $0x8] sm:$0x1]  ;;  %v26_v5 = vld [vmem:[#allocation0 + $0x10] sm:$0x1] }
  0x7d   :  { %18 = vst [vmem:[%s112_s1] sm:$0x1] %v15_v3  ;;  %v32_v6 = vld [vmem:[#allocation0 + $0x18] sm:$0x1]  ;;  %v38_v7 = vld [vmem:[#allocation0 + $0x20] sm:$0x1] }
  0x7e   :  { %62 = vst [vmem:[%s112_s1 + $0x1] sm:$0x1] %v20_v4  ;;  %v44_v8 = vld [vmem:[#allocation0 + $0x28] sm:$0x1]  ;;  %v50_v9 = vld [vmem:[#allocation0 + $0x30] sm:$0x1] }
  0x7f   :  { %63 = vst [vmem:[%s112_s1 + $0x2] sm:$0x1] %v26_v5  ;;  %v56_v10 = vld [vmem:[#allocation0 + $0x38] sm:$0x1] }
  0x80   :  { %64 = vst [vmem:[%s112_s1 + $0x3] sm:$0x1] %v32_v6 }
  0x81   :  { %65 = vst [vmem:[%s112_s1 + $0x4] sm:$0x1] %v38_v7 }
  0x82   :  { %66 = vst [vmem:[%s112_s1 + $0x5] sm:$0x1] %v44_v8 }
  0x83   :  { %67 = vst [vmem:[%s112_s1 + $0x6] sm:$0x1] %v50_v9 }
  0x84   :  { %68 = vst [vmem:[%s112_s1 + $0x7] sm:$0x1] %v56_v10 }

// kernel: dcgan_generator_forward.10
= control target key start
LH: loop header
LB: loop body
LE: loop exit
PB: predicated region body
PF: predicated region fallthrough
CT: control target
= control target key end

     0   :  { %s276_s0 = inlined_call_operand.vmem [shape: f32[16,1024], index: 0, kind: input, shape index: {}]   ;;  %s277_s1 = inlined_call_operand.vmem [shape: f32[1,1024], index: 1, kind: input, shape index: {}]   ;;  %s278_s2 = inlined_call_operand.vmem [shape: f32[1,1024], index: 2, kind: input, shape index: {}]   ;;  %s279_s3 = inlined_call_operand.vmem [shape: f32[16,1024], index: 3, kind: output, shape index: {}]  }
   0x1   :  { %v14_v0 = vld [vmem:[%s276_s0] sm:$0xff]  ;;  %v15_v5 = vld [vmem:[%s276_s0 + $0x8] sm:$0xff]  ;;  %v16_v8 = vld [vmem:[%s276_s0 + $0x10] sm:$0xff] }
   0x2   :  { %v160_v1 = vld [vmem:[%s277_s1] sm:$0xff]  ;;  %v17_v11 = vld [vmem:[%s276_s0 + $0x18] sm:$0xff]  ;;  %v19_v19 = vld [vmem:[%s276_s0 + $0x28] sm:$0xff] }
   0x3   :  { %v165_v2 = vld [vmem:[%s278_s2] sm:$0xff]  ;;  %v32_v3 = vperm.slane %v160_v1, 0  ;;  %v33_v6 = vperm.slane %v160_v1, 1  ;;  %v34_v9 = vperm.slane %v160_v1, 2  ;;  %v35_v12 = vperm.slane %v160_v1, 3  ;;  %v20_v24 = vld [vmem:[%s276_s0 + $0x30] sm:$0xff] }
   0x4   :  { %v66_v4 = vperm.slane %v165_v2, 0  ;;  %v67_v7 = vperm.slane %v165_v2, 1  ;;  %v68_v10 = vperm.slane %v165_v2, 2  ;;  %v69_v13 = vperm.slane %v165_v2, 3  ;;  %v18_v14 = vld [vmem:[%s276_s0 + $0x20] sm:$0xff]  ;;  %v21_v38 = vld [vmem:[%s276_s0 + $0x38] sm:$0xff] }
   0x5   :  { %v48_v15 = vmul.f32 %v32_v3, %v14_v0  ;;  %v49_v16 = vmul.f32 %v33_v6, %v15_v5  ;;  %v36_v17 = vperm.slane %v160_v1, 4  ;;  %v70_v18 = vperm.slane %v165_v2, 4  ;;  %v22_v33 = vld [vmem:[%s276_s0 + $0x40] sm:$0xff]  ;;  %v23_v39 = vld [vmem:[%s276_s0 + $0x48] sm:$0xff]  ;;  %v24_v40 = vld [vmem:[%s276_s0 + $0x50] sm:$0xff] }
   0x6   :  { %v50_v20 = vmul.f32 %v34_v9, %v16_v8  ;;  %v51_v21 = vmul.f32 %v35_v12, %v17_v11  ;;  %v37_v22 = vperm.slane %v160_v1, 5  ;;  %v71_v23 = vperm.slane %v165_v2, 5  ;;  %v25_v45 = vld [vmem:[%s276_s0 + $0x58] sm:$0xff]  ;;  %v26_v46 = vld [vmem:[%s276_s0 + $0x60] sm:$0xff]  ;;  %v27_v51 = vld [vmem:[%s276_s0 + $0x68] sm:$0xff] }
   0x7   :  { %v82_v25 = vadd.f32 %v66_v4, %v48_v15  ;;  %v83_v26 = vadd.f32 %v67_v7, %v49_v16  ;;  %v52_v27 = vmul.f32 %v36_v17, %v18_v14  ;;  %v38_v28 = vperm.slane %v160_v1, 6  ;;  %v28_v56 = vld [vmem:[%s276_s0 + $0x70] sm:$0xff] }
   0x8   :  { %v84_v29 = vadd.f32 %v68_v10, %v50_v20  ;;  %v85_v30 = vadd.f32 %v69_v13, %v51_v21  ;;  %v53_v31 = vmul.f32 %v37_v22, %v19_v19  ;;  %v72_v32 = vperm.slane %v165_v2, 6 }
   0x9   :  { %v98_v34 = vmax.f32 %v82_v25, 0.0  ;;  %v99_v35 = vmax.f32 %v83_v26, 0.0  ;;  %v86_v36 = vadd.f32 %v70_v18, %v52_v27  ;;  %v54_v37 = vmul.f32 %v38_v28, %v20_v24 }
   0xa   :  { %v100_v41 = vmax.f32 %v84_v29, 0.0  ;;  %v101_v42 = vmax.f32 %v85_v30, 0.0  ;;  %v87_v43 = vadd.f32 %v71_v23, %v53_v31  ;;  %v39_v44 = vperm.slane %v160_v1, 7  ;;  %v29_v1 = vld [vmem:[%s276_s0 + $0x78] sm:$0xff] }
   0xb   :  { %114 = vst [vmem:[%s279_s3] sm:$0xff] %v98_v34  ;;  %v102_v47 = vmax.f32 %v86_v36, 0.0  ;;  %v88_v48 = vadd.f32 %v72_v32, %v54_v37  ;;  %v73_v49 = vperm.slane %v165_v2, 7  ;;  %v56_v50 = vmul.f32 %v32_v3, %v22_v33 }
   0xc   :  { %115 = vst [vmem:[%s279_s3 + $0x8] sm:$0xff] %v99_v35  ;;  %v103_v52 = vmax.f32 %v87_v43, 0.0  ;;  %v55_v53 = vmul.f32 %v39_v44, %v21_v38  ;;  %v57_v54 = vmul.f32 %v33_v6, %v23_v39  ;;  %v58_v55 = vmul.f32 %v34_v9, %v24_v40 }
   0xd   :  { %116 = vst [vmem:[%s279_s3 + $0x10] sm:$0xff] %v100_v41  ;;  %v104_v57 = vmax.f32 %v88_v48, 0.0  ;;  %v90_v58 = vadd.f32 %v66_v4, %v56_v50  ;;  %v59_v59 = vmul.f32 %v35_v12, %v25_v45  ;;  %v60_v60 = vmul.f32 %v36_v17, %v26_v46 }
   0xe   :  { %117 = vst [vmem:[%s279_s3 + $0x18] sm:$0xff] %v101_v42  ;;  %v89_v61 = vadd.f32 %v73_v49, %v55_v53  ;;  %v91_v62 = vadd.f32 %v67_v7, %v57_v54  ;;  %v92_v63 = vadd.f32 %v68_v10, %v58_v55  ;;  %v61_v0 = vmul.f32 %v37_v22, %v27_v51 }
   0xf   :  { %118 = vst [vmem:[%s279_s3 + $0x20] sm:$0xff] %v102_v47  ;;  %v106_v2 = vmax.f32 %v90_v58, 0.0  ;;  %v93_v3 = vadd.f32 %v69_v13, %v59_v59  ;;  %v94_v4 = vadd.f32 %v70_v18, %v60_v60  ;;  %v62_v5 = vmul.f32 %v38_v28, %v28_v56 }
  0x10   :  { %119 = vst [vmem:[%s279_s3 + $0x28] sm:$0xff] %v103_v52  ;;  %v105_v6 = vmax.f32 %v89_v61, 0.0  ;;  %v107_v7 = vmax.f32 %v91_v62, 0.0  ;;  %v95_v8 = vadd.f32 %v71_v23, %v61_v0  ;;  %v108_v9 = vmax.f32 %v92_v63, 0.0 }
  0x11   :  { %120 = vst [vmem:[%s279_s3 + $0x30] sm:$0xff] %v104_v57  ;;  %v96_v10 = vadd.f32 %v72_v32, %v62_v5  ;;  %v63_v11 = vmul.f32 %v39_v44, %v29_v1  ;;  %v109_v12 = vmax.f32 %v93_v3, 0.0  ;;  %v110_v13 = vmax.f32 %v94_v4, 0.0 }
  0x12   :  { %121 = vst [vmem:[%s279_s3 + $0x38] sm:$0xff] %v105_v6  ;;  %v111_v15 = vmax.f32 %v95_v8, 0.0 }
  0x13   :  { %122 = vst [vmem:[%s279_s3 + $0x40] sm:$0xff] %v106_v2  ;;  %v97_v14 = vadd.f32 %v73_v49, %v63_v11  ;;  %v112_v16 = vmax.f32 %v96_v10, 0.0 }
  0x14   :  { %123 = vst [vmem:[%s279_s3 + $0x48] sm:$0xff] %v107_v7 }
  0x15   :  { %124 = vst [vmem:[%s279_s3 + $0x50] sm:$0xff] %v108_v9  ;;  %v113_v17 = vmax.f32 %v97_v14, 0.0 }
  0x16   :  { %125 = vst [vmem:[%s279_s3 + $0x58] sm:$0xff] %v109_v12 }
  0x17   :  { %126 = vst [vmem:[%s279_s3 + $0x60] sm:$0xff] %v110_v13 }
  0x18   :  { %127 = vst [vmem:[%s279_s3 + $0x68] sm:$0xff] %v111_v15 }
  0x19   :  { %128 = vst [vmem:[%s279_s3 + $0x70] sm:$0xff] %v112_v16 }
  0x1a   :  { %129 = vst [vmem:[%s279_s3 + $0x78] sm:$0xff] %v113_v17 }

// kernel: dcgan_generator_forward.9
= control target key start
LH: loop header
LB: loop body
LE: loop exit
PB: predicated region body
PF: predicated region fallthrough
CT: control target
= control target key end

     0   :  { %vm69_vm0 = vcmask 130048   ;;  %vm329_vm1 = vcmask 1040384   ;;  %vm338_vm2 = vcmask 1041408   ;;  %s583_s1 = inlined_call_operand.vmem [shape: bf16[16,1024], index: 1, kind: input, shape index: {}]   ;;  %s584_s0 = inlined_call_operand.vmem [shape: bf16[16,16], index: 0, kind: input, shape index: {}]   ;;  %s585_s2 = inlined_call_operand.vmem [shape: f32[16,1024], index: 2, kind: output, shape index: {0}]   ;;  %s586_s3 = inlined_call_operand.vmem [shape: f32[8,1024], index: 3, kind: output, shape index: {1}]  }
   0x1   :  { %v369_v0 = vld [vmem:[%s583_s1] sm:$0xf]  ;;  %v408_v2 = vld [vmem:[%s583_s1 + $0x4] sm:$0xf]  ;;  %v377_v5 = vld [vmem:[%s583_s1 + $0x8] sm:$0xf] }
   0x2   :  { %v412_v1 = vld [vmem:[%s583_s1 + $0x1c] sm:$0xf0]  ;;  %v371_v4 = vld [vmem:[%s583_s1 + $0x20] sm:$0xf0]  ;;  %v413_v6 = vld [vmem:[%s583_s1 + $0x24] sm:$0xf0] }
   0x3   :  { %v370_v3 = vor.u32 %v412_v1, %v369_v0  ;;  %v374_v7 = vor.u32 %v408_v2, %v371_v4  ;;  %v378_v8 = vor.u32 %v413_v6, %v377_v5  ;;  %v409_v9 = vld [vmem:[%s583_s1 + $0xc] sm:$0xf]  ;;  %v407_v11 = vld [vmem:[%s584_s0] sm:$0xff]  ;;  %v393_v13 = vld [vmem:[%s583_s1 + $0x18] sm:$0xf] }
   0x4   :  { %v379_v10 = vld [vmem:[%s583_s1 + $0x28] sm:$0xf0]  ;;  %v415_v14 = vld [vmem:[%s583_s1 + $0x34] sm:$0xf0]  ;;  %v411_v15 = vld [vmem:[%s583_s1 + $0x1c] sm:$0xf] }
   0x5   :  { %80 = vmatpush.bf16.msra.mxu0 %v370_v3  ;;  %v382_v12 = vor.u32 %v409_v9, %v379_v10  ;;  %94 = vmatpush.bf16.msra.mxu1 %v374_v7  ;;  %v394_v16 = vor.u32 %v415_v14, %v393_v13  ;;  %v395_v17 = vld [vmem:[%s583_s1 + $0x38] sm:$0xf0]  ;;  %v385_v18 = vld [vmem:[%s583_s1 + $0x10] sm:$0xf]  ;;  %v410_v22 = vld [vmem:[%s583_s1 + $0x14] sm:$0xf] }
   0x6   :  { %108 = vmatpush.bf16.msra.mxu2 %v378_v8  ;;  %v414_v19 = vld [vmem:[%s583_s1 + $0x2c] sm:$0xf0]  ;;  %v398_v20 = vor.u32 %v411_v15, %v395_v17  ;;  %v387_v23 = vld [vmem:[%s583_s1 + $0x30] sm:$0xf0] }
   0x7   :  { %122 = vmatpush.bf16.msra.mxu3 %v382_v12  ;;  %v386_v21 = vor.u32 %v414_v19, %v385_v18  ;;  %v390_v24 = vor.u32 %v410_v22, %v387_v23 }
   0x8   :  { %399 = vmatmul.msk.bf16.vlgmr.msra.gmra.mxu0 %vm69_vm0, %v407_v11  ;;  %400 = vmatmul.msk.bf16.vlgmr.msra.gmra.mxu1 %vm69_vm0, %v407_v11 }
   0x9   :  { %401 = vmatmul.msk.bf16.vlgmr.msra.gmra.mxu2 %vm69_vm0, %v407_v11  ;;  %136 = vmatpush.bf16.msrb.mxu0 %v386_v21 }
   0xa   :  { %164 = vmatpush.bf16.msrb.mxu2 %v394_v16  ;;  %402 = vmatmul.msk.bf16.vlgmr.msra.gmra.mxu3 %vm69_vm0, %v407_v11 }
   0xb   :  { %178 = vmatpush.bf16.msrb.mxu3 %v398_v20  ;;  %150 = vmatpush.bf16.msrb.mxu1 %v390_v24 }
  0x18   :  { %403 = vmatmul.msk.bf16.vlgmr.msrb.gmra.mxu0 %vm69_vm0, %v407_v11  ;;  %404 = vmatmul.msk.bf16.vlgmr.msrb.gmra.mxu1 %vm69_vm0, %v407_v11 }
  0x19   :  { %405 = vmatmul.msk.bf16.vlgmr.msrb.gmra.mxu2 %vm69_vm0, %v407_v11 }
  0x1a   :  { %406 = vmatmul.msk.bf16.vlgmr.msrb.gmra.mxu3 %vm69_vm0, %v407_v11 }
  0x85   :  { %v82_v25 = vpop.f32.mrf.mxu0  ;;  %v96_v26 = vpop.f32.mrf.mxu1 }
  0x86   :  { %185 = vst [vmem:[%s585_s2] sm:$0xff] %v82_v25  ;;  %v257_v30 = vmul.f32 %v82_v25, %v82_v25  ;;  %v258_v34 = vmul.f32 %v96_v26, %v96_v26 }
  0x87   :  { %186 = vst [vmem:[%s585_s2 + $0x8] sm:$0xff] %v96_v26 }
  0x8c   :  { %v110_v27 = vpop.f32.mrf.mxu2 }
  0x8d   :  { %187 = vst [vmem:[%s585_s2 + $0x10] sm:$0xff] %v110_v27  ;;  %v124_v28 = vpop.f32.mrf.mxu3  ;;  %v84_v29 = vpop.f32.mrf.mxu0  ;;  %v259_v45 = vmul.f32 %v110_v27, %v110_v27 }
  0x8e   :  { %188 = vst [vmem:[%s585_s2 + $0x18] sm:$0xff] %v124_v28  ;;  %v201_v31 = vadd.f32 %v84_v29, %v82_v25  ;;  %v265_v32 = vmul.f32 %v84_v29, %v84_v29  ;;  %v98_v33 = vpop.f32.mrf.mxu1  ;;  %v260_v46 = vmul.f32 %v124_v28, %v124_v28 }
  0x8f   :  { %193 = vst [vmem:[%s585_s2 + $0x40] sm:$0xff] %v84_v29  ;;  %v208_v35 = vadd.f32 %v98_v33, %v96_v26  ;;  %v266_v36 = vmul.f32 %v98_v33, %v98_v33 }
  0x90   :  { %v202_v37 = vrot.slane %v201_v31, 4  ;;  %v273_v38 = vadd.f32 %v265_v32, %v257_v30  ;;  %194 = vst [vmem:[%s585_s2 + $0x48] sm:$0xff] %v98_v33 }
  0x91   :  { %v209_v39 = vrot.slane %v208_v35, 4  ;;  %v280_v40 = vadd.f32 %v266_v36, %v258_v34 }
  0x92   :  { %v203_v41 = vadd.f32 %v202_v37, %v201_v31  ;;  %v274_v42 = vrot.slane %v273_v38, 4 }
  0x93   :  { %v210_v43 = vadd.f32 %v209_v39, %v208_v35  ;;  %v281_v44 = vrot.slane %v280_v40, 4 }
  0x94   :  { %v204_v47 = vrot.slane %v203_v41, 2  ;;  %v275_v48 = vadd.f32 %v274_v42, %v273_v38  ;;  %v112_v49 = vpop.f32.mrf.mxu2 }
  0x95   :  { %v211_v50 = vrot.slane %v210_v43, 2  ;;  %v282_v51 = vadd.f32 %v281_v44, %v280_v40  ;;  %195 = vst [vmem:[%s585_s2 + $0x50] sm:$0xff] %v112_v49  ;;  %v215_v52 = vadd.f32 %v112_v49, %v110_v27  ;;  %v267_v53 = vmul.f32 %v112_v49, %v112_v49  ;;  %v126_v54 = vpop.f32.mrf.mxu3  ;;  %v138_v55 = vpop.f32.mrf.mxu0 }
  0x96   :  { %v205_v56 = vadd.f32 %v204_v47, %v203_v41  ;;  %v276_v57 = vrot.slane %v275_v48, 2  ;;  %196 = vst [vmem:[%s585_s2 + $0x58] sm:$0xff] %v126_v54  ;;  %v222_v58 = vadd.f32 %v126_v54, %v124_v28  ;;  %v268_v59 = vmul.f32 %v126_v54, %v126_v54  ;;  %v152_v60 = vpop.f32.mrf.mxu1 }
  0x97   :  { %v212_v61 = vadd.f32 %v211_v50, %v210_v43  ;;  %v283_v62 = vrot.slane %v282_v51, 2  ;;  %v216_v63 = vrot.slane %v215_v52, 4  ;;  %v287_v0 = vadd.f32 %v267_v53, %v259_v45  ;;  %189 = vst [vmem:[%s585_s2 + $0x20] sm:$0xff] %v138_v55 }
  0x98   :  { %v206_v1 = vrot.slane %v205_v56, 1  ;;  %v277_v2 = vadd.f32 %v276_v57, %v275_v48  ;;  %v223_v3 = vrot.slane %v222_v58, 4  ;;  %v294_v4 = vadd.f32 %v268_v59, %v260_v46  ;;  %190 = vst [vmem:[%s585_s2 + $0x28] sm:$0xff] %v152_v60 }
  0x99   :  { %v213_v5 = vrot.slane %v212_v61, 1  ;;  %v284_v6 = vadd.f32 %v283_v62, %v282_v51  ;;  %v217_v7 = vadd.f32 %v216_v63, %v215_v52  ;;  %v288_v8 = vrot.slane %v287_v0, 4 }
  0x9a   :  { %v278_v9 = vrot.slane %v277_v2, 1  ;;  %v224_v10 = vadd.f32 %v223_v3, %v222_v58  ;;  %v295_v11 = vrot.slane %v294_v4, 4  ;;  %v207_v15 = vadd.f32 %v206_v1, %v205_v56 }
  0x9b   :  { %v285_v12 = vrot.slane %v284_v6, 1  ;;  %v218_v13 = vrot.slane %v217_v7, 2  ;;  %v289_v14 = vadd.f32 %v288_v8, %v287_v0  ;;  %v214_v20 = vadd.f32 %v213_v5, %v212_v61 }
  0x9c   :  { %v279_v16 = vadd.f32 %v278_v9, %v277_v2  ;;  %v225_v17 = vrot.slane %v224_v10, 2  ;;  %v296_v18 = vadd.f32 %v295_v11, %v294_v4  ;;  %v166_v19 = vpop.f32.mrf.mxu2  ;;  %v261_v29 = vmul.f32 %v138_v55, %v138_v55 }
  0x9d   :  { %v286_v21 = vadd.f32 %v285_v12, %v284_v6  ;;  %v219_v22 = vadd.f32 %v218_v13, %v217_v7  ;;  %v290_v23 = vrot.slane %v289_v14, 2  ;;  %191 = vst [vmem:[%s585_s2 + $0x30] sm:$0xff] %v166_v19  ;;  %v180_v24 = vpop.f32.mrf.mxu3  ;;  %v140_v25 = vpop.f32.mrf.mxu0  ;;  %v262_v38 = vmul.f32 %v152_v60, %v152_v60 }
  0x9e   :  { %v330_v26 = vsel %vm329_vm1, %v207_v15, %v279_v16  ;;  %v226_v27 = vadd.f32 %v225_v17, %v224_v10  ;;  %v297_v28 = vrot.slane %v296_v18, 2  ;;  %192 = vst [vmem:[%s585_s2 + $0x38] sm:$0xff] %v180_v24  ;;  %v154_v34 = vpop.f32.mrf.mxu1  ;;  %v263_v40 = vmul.f32 %v166_v19, %v166_v19 }
  0x9f   :  { %v339_v30 = vsel %vm338_vm2, %v330_v26, 0.0  ;;  %v331_v31 = vsel %vm329_vm1, %v214_v20, %v286_v21  ;;  %v220_v32 = vrot.slane %v219_v22, 1  ;;  %v291_v33 = vadd.f32 %v290_v23, %v289_v14  ;;  %197 = vst [vmem:[%s585_s2 + $0x60] sm:$0xff] %v140_v25 }
  0xa0   :  { %347 = vst [vmem:[%s586_s3] sm:$0xff] %v339_v30  ;;  %v340_v35 = vsel %vm338_vm2, %v331_v31, 0.0  ;;  %v227_v36 = vrot.slane %v226_v27, 1  ;;  %v298_v37 = vadd.f32 %v297_v28, %v296_v18  ;;  %v229_v41 = vadd.f32 %v140_v25, %v138_v55 }
  0xa1   :  { %348 = vst [vmem:[%s586_s3 + $0x8] sm:$0xff] %v340_v35  ;;  %v292_v39 = vrot.slane %v291_v33, 1  ;;  %v269_v42 = vmul.f32 %v140_v25, %v140_v25  ;;  %v264_v44 = vmul.f32 %v180_v24, %v180_v24  ;;  %v236_v45 = vadd.f32 %v154_v34, %v152_v60 }
  0xa2   :  { %v299_v43 = vrot.slane %v298_v37, 1  ;;  %198 = vst [vmem:[%s585_s2 + $0x68] sm:$0xff] %v154_v34  ;;  %v270_v46 = vmul.f32 %v154_v34, %v154_v34  ;;  %v221_v47 = vadd.f32 %v220_v32, %v219_v22  ;;  %v230_v49 = vrot.slane %v229_v41, 4 }
  0xa3   :  { %v293_v48 = vadd.f32 %v292_v39, %v291_v33  ;;  %v301_v50 = vadd.f32 %v269_v42, %v261_v29  ;;  %v228_v51 = vadd.f32 %v227_v36, %v226_v27  ;;  %v237_v53 = vrot.slane %v236_v45, 4 }
  0xa4   :  { %v300_v52 = vadd.f32 %v299_v43, %v298_v37  ;;  %v308_v54 = vadd.f32 %v270_v46, %v262_v38  ;;  %v168_v56 = vpop.f32.mrf.mxu2  ;;  %v231_v57 = vadd.f32 %v230_v49, %v229_v41 }
  0xa5   :  { %v332_v55 = vsel %vm329_vm1, %v221_v47, %v293_v48  ;;  %v302_v58 = vrot.slane %v301_v50, 4  ;;  %199 = vst [vmem:[%s585_s2 + $0x70] sm:$0xff] %v168_v56  ;;  %v243_v59 = vadd.f32 %v168_v56, %v166_v19  ;;  %v182_v60 = vpop.f32.mrf.mxu3  ;;  %v238_v63 = vadd.f32 %v237_v53, %v236_v45 }
  0xa6   :  { %v341_v61 = vsel %vm338_vm2, %v332_v55, 0.0  ;;  %v333_v62 = vsel %vm329_vm1, %v228_v51, %v300_v52  ;;  %v309_v0 = vrot.slane %v308_v54, 4  ;;  %200 = vst [vmem:[%s585_s2 + $0x78] sm:$0xff] %v182_v60  ;;  %v232_v2 = vrot.slane %v231_v57, 2 }
  0xa7   :  { %349 = vst [vmem:[%s586_s3 + $0x10] sm:$0xff] %v341_v61  ;;  %v342_v1 = vsel %vm338_vm2, %v333_v62, 0.0  ;;  %v303_v3 = vadd.f32 %v302_v58, %v301_v50  ;;  %v244_v4 = vrot.slane %v243_v59, 4  ;;  %v239_v5 = vrot.slane %v238_v63, 2 }
  0xa8   :  { %350 = vst [vmem:[%s586_s3 + $0x18] sm:$0xff] %v342_v1  ;;  %v310_v6 = vadd.f32 %v309_v0, %v308_v54  ;;  %v271_v7 = vmul.f32 %v168_v56, %v168_v56  ;;  %v250_v8 = vadd.f32 %v182_v60, %v180_v24  ;;  %v233_v9 = vadd.f32 %v232_v2, %v231_v57 }
  0xa9   :  { %v304_v10 = vrot.slane %v303_v3, 2  ;;  %v245_v11 = vadd.f32 %v244_v4, %v243_v59  ;;  %v272_v12 = vmul.f32 %v182_v60, %v182_v60  ;;  %v240_v13 = vadd.f32 %v239_v5, %v238_v63 }
  0xaa   :  { %v311_v14 = vrot.slane %v310_v6, 2  ;;  %v315_v15 = vadd.f32 %v271_v7, %v263_v40  ;;  %v251_v16 = vrot.slane %v250_v8, 4  ;;  %v234_v17 = vrot.slane %v233_v9, 1 }
  0xab   :  { %v305_v18 = vadd.f32 %v304_v10, %v303_v3  ;;  %v246_v19 = vrot.slane %v245_v11, 2  ;;  %v322_v20 = vadd.f32 %v272_v12, %v264_v44  ;;  %v241_v21 = vrot.slane %v240_v13, 1 }
  0xac   :  { %v312_v22 = vadd.f32 %v311_v14, %v310_v6  ;;  %v316_v23 = vrot.slane %v315_v15, 4  ;;  %v252_v25 = vadd.f32 %v251_v16, %v250_v8  ;;  %v235_v31 = vadd.f32 %v234_v17, %v233_v9 }
  0xad   :  { %v306_v26 = vrot.slane %v305_v18, 1  ;;  %v323_v27 = vrot.slane %v322_v20, 4  ;;  %v247_v24 = vadd.f32 %v246_v19, %v245_v11  ;;  %v242_v34 = vadd.f32 %v241_v21, %v240_v13 }
  0xae   :  { %v313_v28 = vrot.slane %v312_v22, 1  ;;  %v317_v29 = vadd.f32 %v316_v23, %v315_v15  ;;  %v253_v30 = vrot.slane %v252_v25, 2 }
  0xaf   :  { %v307_v32 = vadd.f32 %v306_v26, %v305_v18  ;;  %v324_v33 = vadd.f32 %v323_v27, %v322_v20  ;;  %v248_v42 = vrot.slane %v247_v24, 1 }
  0xb0   :  { %v314_v35 = vadd.f32 %v313_v28, %v312_v22  ;;  %v318_v36 = vrot.slane %v317_v29, 2  ;;  %v254_v37 = vadd.f32 %v253_v30, %v252_v25 }
  0xb1   :  { %v334_v38 = vsel %vm329_vm1, %v235_v31, %v307_v32  ;;  %v325_v39 = vrot.slane %v324_v33, 2  ;;  %v249_v49 = vadd.f32 %v248_v42, %v247_v24 }
  0xb2   :  { %v343_v40 = vsel %vm338_vm2, %v334_v38, 0.0  ;;  %v335_v41 = vsel %vm329_vm1, %v242_v34, %v314_v35  ;;  %v319_v43 = vadd.f32 %v318_v36, %v317_v29  ;;  %v255_v45 = vrot.slane %v254_v37, 1 }
  0xb3   :  { %351 = vst [vmem:[%s586_s3 + $0x20] sm:$0xff] %v343_v40  ;;  %v344_v44 = vsel %vm338_vm2, %v335_v41, 0.0  ;;  %v326_v46 = vadd.f32 %v325_v39, %v324_v33 }
  0xb4   :  { %352 = vst [vmem:[%s586_s3 + $0x28] sm:$0xff] %v344_v44  ;;  %v320_v47 = vrot.slane %v319_v43, 1  ;;  %v256_v51 = vadd.f32 %v255_v45, %v254_v37 }
  0xb5   :  { %v327_v48 = vrot.slane %v326_v46, 1 }
  0xb6   :  { %v321_v50 = vadd.f32 %v320_v47, %v319_v43 }
  0xb7   :  { %v328_v52 = vadd.f32 %v327_v48, %v326_v46 }
  0xb8   :  { %v336_v53 = vsel %vm329_vm1, %v249_v49, %v321_v50 }
  0xb9   :  { %v345_v54 = vsel %vm338_vm2, %v336_v53, 0.0  ;;  %v337_v56 = vsel %vm329_vm1, %v256_v51, %v328_v52 }
  0xba   :  { %353 = vst [vmem:[%s586_s3 + $0x30] sm:$0xff] %v345_v54  ;;  %v346_v55 = vsel %vm338_vm2, %v337_v56, 0.0 }
  0xbb   :  { %354 = vst [vmem:[%s586_s3 + $0x38] sm:$0xff] %v346_v55 }

// kernel: tile.58
= control target key start
LH: loop header
LB: loop body
LE: loop exit
PB: predicated region body
PF: predicated region fallthrough
CT: control target
= control target key end

     0   :  { %s22_s0 = inlined_call_operand.vmem [shape: f32[32], index: 0, kind: input, shape index: {}]   ;;  %s23_s1 = inlined_call_operand.vmem [shape: f32[4,32], index: 1, kind: output, shape index: {}]  }
   0x1   :  { %v4_v0 = vld [vmem:[%s22_s0] ss:$0 sm:$0xff] }
   0x2   :  { %5 = vst [vmem:[%s23_s1] sm:$0xf] %v4_v0 }

// kernel: tile.59
= control target key start
LH: loop header
LB: loop body
LE: loop exit
PB: predicated region body
PF: predicated region fallthrough
CT: control target
= control target key end

     0   :  { %s37_s8 = smov 32   ;;  %s38_s9 = smov 64   ;;  %vm7_vm0 = vcmask 261120   ;;  %vm13_vm1 = vcmask 1048320   ;;  %vm19_vm2 = vcmask 785920   ;;  %vm25_vm3 = vcmask 523520   ;;  %s55_s0 = inlined_call_operand.vmem [shape: f32[4,32], index: 0, kind: input, shape index: {}]   ;;  %s56_s1 = inlined_call_operand.vmem [shape: f32[1,128], index: 1, kind: output, shape index: {}]  }
   0x1   :  { %v4_v0 = vld [vmem:[%s55_s0] sm:$0xf]  ;;  %s36_s0 = smov 96  }
   0x2   :  { %5 = vst [vmem:[#allocation1] sm:$0xf] %v4_v0 }
   0x9   :  { %v10_v1 = vld [vmem:[#allocation1 + $0x3] sm:$0x1]   ;;  %v22_v2 = vld [vmem:[#allocation1 + $0x1] sm:$0x1]   ;;  %v16_v3 = vld [vmem:[#allocation1 + $0x2] sm:$0x1]  }
   0xa   :  { %11 = vrot.lane.b32.xlu0 %v10_v1, %s36_s0  ;;  %23 = vrot.lane.b32.xlu1 %v22_v2, %s37_s8  ;;  %v6_v4 = vld [vmem:[#allocation1] sm:$0x1]  }
   0xb   :  { %8 = vst.msk [vmem:[#allocation0] sm:$0x1] %vm7_vm0, %v6_v4  }
  0x12   :  { %17 = vrot.lane.b32.xlu0 %v16_v3, %s38_s9 }
  0x7c   :  { %v12_v5 = vpop.permute.xlu0 %11   ;;  %v24_v6 = vpop.permute.xlu1 %23  }
  0x7d   :  { %14 = vst.msk [vmem:[#allocation0] sm:$0x1] %vm13_vm1, %v12_v5  }
  0x84   :  { %v18_v7 = vpop.permute.xlu0 %17  }
  0x85   :  { %20 = vst.msk [vmem:[#allocation0] sm:$0x1] %vm19_vm2, %v18_v7  }
  0x86   :  { %26 = vst.msk [vmem:[#allocation0] sm:$0x1] %vm25_vm3, %v24_v6  }
  0x8d   :  { %v29_v8 = vld [vmem:[#allocation0] sm:$0x1] }
  0x8e   :  { %32 = vst [vmem:[%s56_s1] sm:$0x1] %v29_v8 }

// kernel: dcgan_generator_forward.11
= control target key start
LH: loop header
LB: loop body
LE: loop exit
PB: predicated region body
PF: predicated region fallthrough
CT: control target
= control target key end

     0   :  { %vm364_vm0 = vcmask 523264   ;;  %vm492_vm1 = vcmask 1040384   ;;  %vm494_vm2 = vcmask 1041408   ;;  %s944_s1 = inlined_call_operand.vmem [shape: bf16[576,128], index: 1, kind: input, shape index: {}]   ;;  %s945_s0 = inlined_call_operand.vmem [shape: bf16[32,576], index: 0, kind: input, shape index: {}]   ;;  %s946_s2 = inlined_call_operand.vmem [shape: f32[32,128], index: 2, kind: output, shape index: {0}]   ;;  %s947_s3 = inlined_call_operand.vmem [shape: f32[8,128], index: 3, kind: output, shape index: {1}]  }
   0x1   :  { %v708_v0 = vld [vmem:[%s944_s1 + $0x38] sm:$0xff]  ;;  %v707_v4 = vld [vmem:[%s944_s1 + $0x30] sm:$0xff]  ;;  %v706_v8 = vld [vmem:[%s944_s1 + $0x28] sm:$0xff] }
   0x2   :  { %v716_v1 = vld [vmem:[%s944_s1 + $0x78] sm:$0xff]  ;;  %371 = vmatpush.bf16.msra.mxu0 %v708_v0  ;;  %v715_v5 = vld [vmem:[%s944_s1 + $0x70] sm:$0xff]  ;;  %v714_v9 = vld [vmem:[%s944_s1 + $0x68] sm:$0xff] }
   0x3   :  { %v724_v2 = vld [vmem:[%s944_s1 + $0xb8] sm:$0xff]  ;;  %390 = vmatpush.bf16.msra.mxu1 %v716_v1  ;;  %v723_v6 = vld [vmem:[%s944_s1 + $0xb0] sm:$0xff]  ;;  %v722_v10 = vld [vmem:[%s944_s1 + $0xa8] sm:$0xff] }
   0x4   :  { %v732_v3 = vld [vmem:[%s944_s1 + $0xf8] sm:$0xff]  ;;  %409 = vmatpush.bf16.msra.mxu2 %v724_v2  ;;  %v731_v7 = vld [vmem:[%s944_s1 + $0xf0] sm:$0xff]  ;;  %v730_v11 = vld [vmem:[%s944_s1 + $0xe8] sm:$0xff] }
   0x5   :  { %428 = vmatpush.bf16.msra.mxu3 %v732_v3  ;;  %v705_v12 = vld [vmem:[%s944_s1 + $0x20] sm:$0xff]  ;;  %v704_v16 = vld [vmem:[%s944_s1 + $0x18] sm:$0xff]  ;;  %v703_v20 = vld [vmem:[%s944_s1 + $0x10] sm:$0xff] }
   0x6   :  { %372 = vmatpush.bf16.msra.mxu0 %v707_v4  ;;  %v713_v13 = vld [vmem:[%s944_s1 + $0x60] sm:$0xff]  ;;  %v712_v17 = vld [vmem:[%s944_s1 + $0x58] sm:$0xff]  ;;  %v711_v21 = vld [vmem:[%s944_s1 + $0x50] sm:$0xff] }
   0x7   :  { %391 = vmatpush.bf16.msra.mxu1 %v715_v5  ;;  %v721_v14 = vld [vmem:[%s944_s1 + $0xa0] sm:$0xff]  ;;  %v720_v18 = vld [vmem:[%s944_s1 + $0x98] sm:$0xff]  ;;  %v719_v22 = vld [vmem:[%s944_s1 + $0x90] sm:$0xff] }
   0x8   :  { %410 = vmatpush.bf16.msra.mxu2 %v723_v6  ;;  %v729_v15 = vld [vmem:[%s944_s1 + $0xe0] sm:$0xff]  ;;  %v728_v19 = vld [vmem:[%s944_s1 + $0xd8] sm:$0xff]  ;;  %v727_v23 = vld [vmem:[%s944_s1 + $0xd0] sm:$0xff] }
   0x9   :  { %429 = vmatpush.bf16.msra.mxu3 %v731_v7  ;;  %v702_v24 = vld [vmem:[%s944_s1 + $0x8] sm:$0xff]  ;;  %v701_v28 = vld [vmem:[%s944_s1] sm:$0xff]  ;;  %v693_v33 = vld [vmem:[%s945_s0 + $0x10] sm:$0xf0] }
   0xa   :  { %373 = vmatpush.bf16.msra.mxu0 %v706_v8  ;;  %v710_v25 = vld [vmem:[%s944_s1 + $0x48] sm:$0xff]  ;;  %v709_v29 = vld [vmem:[%s944_s1 + $0x40] sm:$0xff]  ;;  %v509_v35 = vld [vmem:[%s945_s0 + $0x14] sm:$0xf0] }
   0xb   :  { %392 = vmatpush.bf16.msra.mxu1 %v714_v9  ;;  %v718_v26 = vld [vmem:[%s944_s1 + $0x88] sm:$0xff]  ;;  %v717_v30 = vld [vmem:[%s944_s1 + $0x80] sm:$0xff]  ;;  %v694_v37 = vld [vmem:[%s945_s0 + $0x18] sm:$0xf0] }
   0xc   :  { %411 = vmatpush.bf16.msra.mxu2 %v722_v10  ;;  %v726_v27 = vld [vmem:[%s944_s1 + $0xc8] sm:$0xff]  ;;  %v725_v31 = vld [vmem:[%s944_s1 + $0xc0] sm:$0xff]  ;;  %v736_v40 = vld [vmem:[%s944_s1 + $0x118] sm:$0xff] }
   0xd   :  { %430 = vmatpush.bf16.msra.mxu3 %v730_v11  ;;  %v507_v32 = vld [vmem:[%s945_s0] sm:$0xf]  ;;  %v691_v34 = vld [vmem:[%s945_s0 + $0x4] sm:$0xf]  ;;  %v515_v36 = vld [vmem:[%s945_s0 + $0x8] sm:$0xf] }
   0xe   :  { %374 = vmatpush.bf16.msra.mxu0 %v705_v12  ;;  %v692_v38 = vld [vmem:[%s945_s0 + $0xc] sm:$0xf]  ;;  %v517_v39 = vld [vmem:[%s945_s0 + $0x1c] sm:$0xf0]  ;;  %v508_v41 = vor.u32 %v693_v33, %v507_v32  ;;  %v512_v42 = vor.u32 %v691_v34, %v509_v35  ;;  %v516_v43 = vor.u32 %v694_v37, %v515_v36  ;;  %v735_v45 = vld [vmem:[%s944_s1 + $0x110] sm:$0xff] }
   0xf   :  { %393 = vmatpush.bf16.msra.mxu1 %v713_v13  ;;  %v520_v44 = vor.u32 %v692_v38, %v517_v39  ;;  %v734_v46 = vld [vmem:[%s944_s1 + $0x108] sm:$0xff]  ;;  %v733_v47 = vld [vmem:[%s944_s1 + $0x100] sm:$0xff]  ;;  %v698_v49 = vld [vmem:[%s945_s0 + $0x38] sm:$0xf0] }
  0x10   :  { %412 = vmatpush.bf16.msra.mxu2 %v721_v14  ;;  %v527_v48 = vld [vmem:[%s945_s0 + $0x28] sm:$0xf]  ;;  %v696_v50 = vld [vmem:[%s945_s0 + $0x2c] sm:$0xf]  ;;  %v529_v51 = vld [vmem:[%s945_s0 + $0x3c] sm:$0xf0] }
  0x11   :  { %431 = vmatpush.bf16.msra.mxu3 %v729_v15  ;;  %v535_v52 = vld [vmem:[%s945_s0 + $0x30] sm:$0xf]  ;;  %v699_v53 = vld [vmem:[%s945_s0 + $0x40] sm:$0xf0]  ;;  %v697_v54 = vld [vmem:[%s945_s0 + $0x34] sm:$0xf]  ;;  %v528_v56 = vor.u32 %v698_v49, %v527_v48  ;;  %v532_v57 = vor.u32 %v696_v50, %v529_v51 }
  0x12   :  { %375 = vmatpush.bf16.msra.mxu0 %v704_v16  ;;  %v537_v55 = vld [vmem:[%s945_s0 + $0x44] sm:$0xf0]  ;;  %v536_v58 = vor.u32 %v699_v53, %v535_v52  ;;  %v523_v60 = vld [vmem:[%s945_s0 + $0x10] sm:$0xf]  ;;  %v695_v61 = vld [vmem:[%s945_s0 + $0x20] sm:$0xf0] }
  0x13   :  { %394 = vmatpush.bf16.msra.mxu1 %v712_v17  ;;  %v540_v59 = vor.u32 %v697_v54, %v537_v55  ;;  %v543_v62 = vld [vmem:[%s945_s0 + $0x38] sm:$0xf]  ;;  %v700_v63 = vld [vmem:[%s945_s0 + $0x48] sm:$0xf0]  ;;  %v524_v0 = vor.u32 %v695_v61, %v523_v60 }
  0x14   :  { %413 = vmatpush.bf16.msra.mxu2 %v720_v18  ;;  %v544_v1 = vor.u32 %v700_v63, %v543_v62 }
  0x15   :  { %432 = vmatpush.bf16.msra.mxu3 %v728_v19 }
  0x16   :  { %376 = vmatpush.bf16.msra.mxu0 %v703_v20 }
  0x17   :  { %395 = vmatpush.bf16.msra.mxu1 %v711_v21 }
  0x18   :  { %414 = vmatpush.bf16.msra.mxu2 %v719_v22 }
  0x19   :  { %433 = vmatpush.bf16.msra.mxu3 %v727_v23 }
  0x1a   :  { %377 = vmatpush.bf16.msra.mxu0 %v702_v24 }
  0x1b   :  { %396 = vmatpush.bf16.msra.mxu1 %v710_v25 }
  0x1c   :  { %415 = vmatpush.bf16.msra.mxu2 %v718_v26 }
  0x1d   :  { %434 = vmatpush.bf16.msra.mxu3 %v726_v27 }
  0x1e   :  { %378 = vmatpush.bf16.msra.mxu0 %v701_v28 }
  0x1f   :  { %397 = vmatpush.bf16.msra.mxu1 %v709_v29 }
  0x20   :  { %416 = vmatpush.bf16.msra.mxu2 %v717_v30 }
  0x21   :  { %435 = vmatpush.bf16.msra.mxu3 %v725_v31  ;;  %379 = vmatmul.bf16.vlgmr.msra.gmra.mxu0 %v508_v41 }
  0x22   :  { %451 = vmatpush.bf16.msrb.mxu0 %v736_v40  ;;  %398 = vmatmul.bf16.vlgmr.msra.gmra.mxu1 %v512_v42 }
  0x23   :  { %737 = vmatpush.bf16.msrb.mxu1 %v736_v40  ;;  %417 = vmatmul.bf16.vlgmr.msra.gmra.mxu2 %v516_v43 }
  0x24   :  { %436 = vmatmul.bf16.vlgmr.msra.gmra.mxu3 %v520_v44 }
  0x26   :  { %452 = vmatpush.bf16.msrb.mxu0 %v735_v45 }
  0x27   :  { %738 = vmatpush.bf16.msrb.mxu1 %v735_v45 }
  0x2a   :  { %453 = vmatpush.bf16.msrb.mxu0 %v734_v46 }
  0x2b   :  { %739 = vmatpush.bf16.msrb.mxu1 %v734_v46 }
  0x2e   :  { %454 = vmatpush.bf16.msrb.mxu0 %v733_v47 }
  0x2f   :  { %740 = vmatpush.bf16.msrb.mxu1 %v733_v47 }
  0x31   :  { %384 = vmatmul.bf16.gmra.mxu0 %v528_v56 }
  0x32   :  { %403 = vmatmul.bf16.gmra.mxu1 %v532_v57 }
  0x33   :  { %422 = vmatmul.bf16.gmra.mxu2 %v536_v58 }
  0x34   :  { %441 = vmatmul.bf16.gmra.mxu3 %v540_v59 }
  0x41   :  { %689 = vmatmul.msk.bf16.vlgmr.msrb.gmra.mxu0 %vm364_vm0, %v524_v0 }
  0x42   :  { %690 = vmatmul.msk.bf16.vlgmr.msrb.gmra.mxu1 %vm364_vm0, %v544_v1 }
  0x9e   :  { %v380_v2 = vpop.f32.mrf.mxu0 }
  0x9f   :  { %v399_v3 = vpop.f32.mrf.mxu1 }
  0xa0   :  { %v400_v15 = vadd.f32 %v399_v3, %v380_v2 }
  0xa6   :  { %v418_v4 = vpop.f32.mrf.mxu2  ;;  %v382_v6 = vpop.f32.mrf.mxu0 }
  0xa7   :  { %v437_v5 = vpop.f32.mrf.mxu3  ;;  %v401_v7 = vpop.f32.mrf.mxu1  ;;  %v419_v18 = vadd.f32 %v418_v4, %v400_v15 }
  0xa8   :  { %v402_v25 = vadd.f32 %v401_v7, %v382_v6 }
  0xa9   :  { %v438_v20 = vadd.f32 %v437_v5, %v419_v18 }
  0xae   :  { %v420_v8 = vpop.f32.mrf.mxu2  ;;  %v385_v10 = vpop.f32.mrf.mxu0 }
  0xaf   :  { %v439_v9 = vpop.f32.mrf.mxu3  ;;  %v404_v11 = vpop.f32.mrf.mxu1  ;;  %v421_v29 = vadd.f32 %v420_v8, %v402_v25 }
  0xb0   :  { %v405_v16 = vadd.f32 %v404_v11, %v385_v10 }
  0xb1   :  { %v440_v32 = vadd.f32 %v439_v9, %v421_v29 }
  0xb6   :  { %v423_v12 = vpop.f32.mrf.mxu2  ;;  %v387_v13 = vpop.f32.mrf.mxu0 }
  0xb7   :  { %v406_v14 = vpop.f32.mrf.mxu1  ;;  %v442_v17 = vpop.f32.mrf.mxu3  ;;  %v424_v19 = vadd.f32 %v423_v12, %v405_v16 }
  0xb8   :  { %v407_v26 = vadd.f32 %v406_v14, %v387_v13 }
  0xb9   :  { %v443_v21 = vadd.f32 %v442_v17, %v424_v19 }
  0xbe   :  { %v425_v22 = vpop.f32.mrf.mxu2  ;;  %v456_v23 = vpop.f32.mrf.mxu0 }
  0xbf   :  { %v461_v24 = vpop.f32.mrf.mxu1  ;;  %v457_v27 = vadd.f32 %v456_v23, %v438_v20  ;;  %v426_v30 = vadd.f32 %v425_v22, %v407_v26  ;;  %v444_v31 = vpop.f32.mrf.mxu3 }
  0xc0   :  { %v462_v28 = vadd.f32 %v461_v24, %v443_v21 }
  0xc1   :  { %466 = vst [vmem:[%s946_s2] sm:$0xff] %v457_v27  ;;  %v445_v33 = vadd.f32 %v444_v31, %v426_v30  ;;  %v479_v38 = vmul.f32 %v457_v27, %v457_v27 }
  0xc2   :  { %468 = vst [vmem:[%s946_s2 + $0x10] sm:$0xff] %v462_v28  ;;  %v481_v41 = vmul.f32 %v462_v28, %v462_v28 }
  0xc6   :  { %v458_v34 = vpop.f32.mrf.mxu0 }
  0xc7   :  { %v463_v35 = vpop.f32.mrf.mxu1  ;;  %v459_v36 = vadd.f32 %v458_v34, %v440_v32 }
  0xc8   :  { %v464_v37 = vadd.f32 %v463_v35, %v445_v33 }
  0xc9   :  { %467 = vst [vmem:[%s946_s2 + $0x8] sm:$0xff] %v459_v36  ;;  %v470_v39 = vadd.f32 %v459_v36, %v457_v27  ;;  %v480_v40 = vmul.f32 %v459_v36, %v459_v36 }
  0xca   :  { %469 = vst [vmem:[%s946_s2 + $0x18] sm:$0xff] %v464_v37  ;;  %v482_v45 = vmul.f32 %v464_v37, %v464_v37 }
  0xcb   :  { %v483_v42 = vadd.f32 %v480_v40, %v479_v38  ;;  %v471_v43 = vadd.f32 %v470_v39, %v462_v28 }
  0xcd   :  { %v472_v44 = vadd.f32 %v471_v43, %v464_v37  ;;  %v484_v46 = vadd.f32 %v483_v42, %v481_v41 }
  0xcf   :  { %v473_v47 = vrot.slane %v472_v44, 4  ;;  %v485_v48 = vadd.f32 %v484_v46, %v482_v45 }
  0xd1   :  { %v474_v49 = vadd.f32 %v473_v47, %v472_v44  ;;  %v486_v50 = vrot.slane %v485_v48, 4 }
  0xd3   :  { %v475_v51 = vrot.slane %v474_v49, 2  ;;  %v487_v52 = vadd.f32 %v486_v50, %v485_v48 }
  0xd5   :  { %v476_v53 = vadd.f32 %v475_v51, %v474_v49  ;;  %v488_v54 = vrot.slane %v487_v52, 2 }
  0xd7   :  { %v477_v55 = vrot.slane %v476_v53, 1  ;;  %v489_v56 = vadd.f32 %v488_v54, %v487_v52 }
  0xd9   :  { %v490_v57 = vrot.slane %v489_v56, 1  ;;  %v478_v58 = vadd.f32 %v477_v55, %v476_v53 }
  0xdb   :  { %v491_v59 = vadd.f32 %v490_v57, %v489_v56 }
  0xdd   :  { %v493_v60 = vsel %vm492_vm1, %v478_v58, %v491_v59 }
  0xde   :  { %v495_v61 = vsel %vm494_vm2, %v493_v60, 0.0 }
  0xdf   :  { %496 = vst [vmem:[%s947_s3] sm:$0xff] %v495_v61 }

// kernel: dcgan_generator_forward.12
= control target key start
LH: loop header
LB: loop body
LE: loop exit
PB: predicated region body
PF: predicated region fallthrough
CT: control target
= control target key end

     0   :  { %s98_s0 = inlined_call_operand.vmem [shape: f32[32,128], index: 0, kind: input, shape index: {}]   ;;  %s99_s1 = inlined_call_operand.vmem [shape: f32[1,128], index: 1, kind: input, shape index: {}]   ;;  %s100_s2 = inlined_call_operand.vmem [shape: f32[1,128], index: 2, kind: input, shape index: {}]   ;;  %s101_s3 = inlined_call_operand.vmem [shape: f32[32,128], index: 3, kind: output, shape index: {}]  }
   0x1   :  { %v14_v0 = vld [vmem:[%s98_s0] sm:$0xff]  ;;  %v15_v3 = vld [vmem:[%s98_s0 + $0x8] sm:$0xff]  ;;  %v16_v6 = vld [vmem:[%s98_s0 + $0x10] sm:$0xff] }
   0x2   :  { %v46_v1 = vld [vmem:[%s99_s1] ss:$0 sm:$0xff]  ;;  %v17_v7 = vld [vmem:[%s98_s0 + $0x18] sm:$0xff] }
   0x3   :  { %v47_v2 = vld [vmem:[%s100_s2] ss:$0 sm:$0xff]  ;;  %v22_v4 = vmul.f32 %v46_v1, %v14_v0  ;;  %v23_v5 = vmul.f32 %v46_v1, %v15_v3  ;;  %v24_v8 = vmul.f32 %v46_v1, %v16_v6  ;;  %v25_v9 = vmul.f32 %v46_v1, %v17_v7 }
   0x5   :  { %v30_v10 = vadd.f32 %v47_v2, %v22_v4  ;;  %v31_v11 = vadd.f32 %v47_v2, %v23_v5  ;;  %v32_v12 = vadd.f32 %v47_v2, %v24_v8  ;;  %v33_v13 = vadd.f32 %v47_v2, %v25_v9 }
   0x7   :  { %v34_v14 = vmax.f32 %v30_v10, 0.0  ;;  %v35_v15 = vmax.f32 %v31_v11, 0.0  ;;  %v36_v16 = vmax.f32 %v32_v12, 0.0  ;;  %v37_v17 = vmax.f32 %v33_v13, 0.0 }
   0x9   :  { %38 = vst [vmem:[%s101_s3] sm:$0xff] %v34_v14 }
   0xa   :  { %39 = vst [vmem:[%s101_s3 + $0x8] sm:$0xff] %v35_v15 }
   0xb   :  { %40 = vst [vmem:[%s101_s3 + $0x10] sm:$0xff] %v36_v16 }
   0xc   :  { %41 = vst [vmem:[%s101_s3 + $0x18] sm:$0xff] %v37_v17 }

// kernel: dcgan_generator_forward.13
= control target key start
LH: loop header
LB: loop body
LE: loop exit
PB: predicated region body
PF: predicated region fallthrough
CT: control target
= control target key end

     0   :  { %vm310_vm0 = vcmask 261120   ;;  %vm556_vm1 = vcmask 1040384   ;;  %vm558_vm2 = vcmask 1041408   ;;  %s1086_s1 = inlined_call_operand.vmem [shape: bf16[288,128], index: 1, kind: input, shape index: {}]   ;;  %s1087_s0 = inlined_call_operand.vmem [shape: bf16[128,288], index: 0, kind: input, shape index: {}]   ;;  %s1088_s2 = inlined_call_operand.vmem [shape: f32[128,128], index: 2, kind: output, shape index: {0}]   ;;  %s1089_s3 = inlined_call_operand.vmem [shape: f32[8,128], index: 3, kind: output, shape index: {1}]  }
   0x1   :  { %v776_v0 = vld [vmem:[%s1086_s1 + $0x38] sm:$0xff]  ;;  %v786_v2 = vld [vmem:[%s1086_s1 + $0x88] sm:$0xff]  ;;  %v775_v3 = vld [vmem:[%s1086_s1 + $0x30] sm:$0xff] }
   0x2   :  { %v784_v1 = vld [vmem:[%s1086_s1 + $0x78] sm:$0xff]  ;;  %335 = vmatpush.bf16.msra.mxu0 %v776_v0  ;;  %787 = vmatpush.bf16.msra.mxu3 %v776_v0  ;;  %v783_v4 = vld [vmem:[%s1086_s1 + $0x70] sm:$0xff]  ;;  %v785_v5 = vld [vmem:[%s1086_s1 + $0x80] sm:$0xff] }
   0x3   :  { %384 = vmatpush.bf16.msra.mxu1 %v784_v1  ;;  %439 = vmatpush.bf16.msra.mxu2 %v786_v2  ;;  %v579_v6 = vld [vmem:[%s1087_s0 + $0x8] sm:$0xf]  ;;  %v747_v7 = vld [vmem:[%s1087_s0 + $0x10] sm:$0xf0]  ;;  %v773_v11 = vld [vmem:[%s1086_s1 + $0x20] sm:$0xff] }
   0x4   :  { %v580_v8 = vor.u32 %v747_v7, %v579_v6  ;;  %v774_v9 = vld [vmem:[%s1086_s1 + $0x28] sm:$0xff]  ;;  %v781_v12 = vld [vmem:[%s1086_s1 + $0x60] sm:$0xff]  ;;  %v772_v13 = vld [vmem:[%s1086_s1 + $0x18] sm:$0xff] }
   0x5   :  { %v782_v10 = vld [vmem:[%s1086_s1 + $0x68] sm:$0xff]  ;;  %v780_v14 = vld [vmem:[%s1086_s1 + $0x58] sm:$0xff]  ;;  %v771_v15 = vld [vmem:[%s1086_s1 + $0x10] sm:$0xff] }
   0x6   :  { %336 = vmatpush.bf16.msra.mxu0 %v775_v3  ;;  %788 = vmatpush.bf16.msra.mxu3 %v775_v3  ;;  %v779_v16 = vld [vmem:[%s1086_s1 + $0x50] sm:$0xff]  ;;  %v591_v17 = vld [vmem:[%s1087_s0 + $0x20] sm:$0xf]  ;;  %v750_v18 = vld [vmem:[%s1087_s0 + $0x28] sm:$0xf0] }
   0x7   :  { %385 = vmatpush.bf16.msra.mxu1 %v783_v4  ;;  %440 = vmatpush.bf16.msra.mxu2 %v785_v5  ;;  %v592_v19 = vor.u32 %v750_v18, %v591_v17  ;;  %v770_v20 = vld [vmem:[%s1086_s1 + $0x8] sm:$0xff]  ;;  %v769_v22 = vld [vmem:[%s1086_s1] sm:$0xff]  ;;  %v643_v26 = vld [vmem:[%s1087_s0 + $0x90] sm:$0xf] }
   0x8   :  { %v778_v21 = vld [vmem:[%s1086_s1 + $0x48] sm:$0xff]  ;;  %v777_v23 = vld [vmem:[%s1086_s1 + $0x40] sm:$0xff]  ;;  %v764_v27 = vld [vmem:[%s1087_s0 + $0x98] sm:$0xf0] }
   0x9   :  { %v571_v24 = vld [vmem:[%s1087_s0] sm:$0xf]  ;;  %v746_v25 = vld [vmem:[%s1087_s0 + $0x8] sm:$0xf0]  ;;  %v745_v28 = vld [vmem:[%s1087_s0 + $0x4] sm:$0xf]  ;;  %v644_v31 = vor.u32 %v764_v27, %v643_v26 }
   0xa   :  { %737 = vmatmul.msk.bf16.vlgmr.msra.gmra.mxu2 %vm310_vm0, %v580_v8  ;;  %337 = vmatpush.bf16.msra.mxu0 %v774_v9  ;;  %v573_v29 = vld [vmem:[%s1087_s0 + $0xc] sm:$0xf0]  ;;  %v572_v30 = vor.u32 %v746_v25, %v571_v24  ;;  %v603_v33 = vld [vmem:[%s1087_s0 + $0x38] sm:$0xf]  ;;  %v753_v34 = vld [vmem:[%s1087_s0 + $0x40] sm:$0xf0] }
   0xb   :  { %789 = vmatpush.bf16.msra.mxu3 %v774_v9  ;;  %386 = vmatpush.bf16.msra.mxu1 %v782_v10  ;;  %v576_v32 = vor.u32 %v745_v28, %v573_v29  ;;  %v604_v35 = vor.u32 %v753_v34, %v603_v33  ;;  %v583_v36 = vld [vmem:[%s1087_s0 + $0x18] sm:$0xf]  ;;  %v749_v37 = vld [vmem:[%s1087_s0 + $0x20] sm:$0xf0]  ;;  %v655_v38 = vld [vmem:[%s1087_s0 + $0xa8] sm:$0xf] }
   0xc   :  { %v767_v39 = vld [vmem:[%s1087_s0 + $0xb0] sm:$0xf0]  ;;  %v748_v40 = vld [vmem:[%s1087_s0 + $0x1c] sm:$0xf]  ;;  %v585_v41 = vld [vmem:[%s1087_s0 + $0x24] sm:$0xf0]  ;;  %v584_v42 = vor.u32 %v749_v37, %v583_v36 }
   0xd   :  { %v656_v43 = vor.u32 %v767_v39, %v655_v38  ;;  %v588_v44 = vor.u32 %v748_v40, %v585_v41  ;;  %v615_v45 = vld [vmem:[%s1087_s0 + $0x50] sm:$0xf]  ;;  %v756_v46 = vld [vmem:[%s1087_s0 + $0x58] sm:$0xf0]  ;;  %v751_v50 = vld [vmem:[%s1087_s0 + $0x34] sm:$0xf] }
   0xe   :  { %338 = vmatpush.bf16.msra.mxu0 %v773_v11  ;;  %v616_v47 = vor.u32 %v756_v46, %v615_v45  ;;  %v595_v48 = vld [vmem:[%s1087_s0 + $0x30] sm:$0xf]  ;;  %v752_v49 = vld [vmem:[%s1087_s0 + $0x38] sm:$0xf0]  ;;  %v597_v51 = vld [vmem:[%s1087_s0 + $0x3c] sm:$0xf0] }
   0xf   :  { %790 = vmatpush.bf16.msra.mxu3 %v773_v11  ;;  %387 = vmatpush.bf16.msra.mxu1 %v781_v12  ;;  %v763_v52 = vld [vmem:[%s1087_s0 + $0x94] sm:$0xf]  ;;  %v645_v53 = vld [vmem:[%s1087_s0 + $0x9c] sm:$0xf0]  ;;  %v596_v54 = vor.u32 %v752_v49, %v595_v48  ;;  %v600_v55 = vor.u32 %v751_v50, %v597_v51  ;;  %v627_v57 = vld [vmem:[%s1087_s0 + $0x68] sm:$0xf] }
  0x10   :  { %v648_v56 = vor.u32 %v763_v52, %v645_v53  ;;  %v759_v58 = vld [vmem:[%s1087_s0 + $0x70] sm:$0xf0]  ;;  %v607_v60 = vld [vmem:[%s1087_s0 + $0x48] sm:$0xf]  ;;  %v754_v62 = vld [vmem:[%s1087_s0 + $0x4c] sm:$0xf] }
  0x11   :  { %v628_v59 = vor.u32 %v759_v58, %v627_v57  ;;  %v755_v61 = vld [vmem:[%s1087_s0 + $0x50] sm:$0xf0]  ;;  %v609_v63 = vld [vmem:[%s1087_s0 + $0x54] sm:$0xf0]  ;;  %v766_v0 = vld [vmem:[%s1087_s0 + $0xac] sm:$0xf] }
  0x12   :  { %339 = vmatpush.bf16.msra.mxu0 %v772_v13  ;;  %v608_v2 = vor.u32 %v755_v61, %v607_v60  ;;  %v612_v3 = vor.u32 %v754_v62, %v609_v63  ;;  %v639_v5 = vld [vmem:[%s1087_s0 + $0x80] sm:$0xf]  ;;  %v762_v6 = vld [vmem:[%s1087_s0 + $0x88] sm:$0xf0]  ;;  %v621_v11 = vld [vmem:[%s1087_s0 + $0x6c] sm:$0xf0] }
  0x13   :  { %791 = vmatpush.bf16.msra.mxu3 %v772_v13  ;;  %388 = vmatpush.bf16.msra.mxu1 %v780_v14  ;;  %v640_v7 = vor.u32 %v762_v6, %v639_v5  ;;  %v619_v8 = vld [vmem:[%s1087_s0 + $0x60] sm:$0xf]  ;;  %v758_v9 = vld [vmem:[%s1087_s0 + $0x68] sm:$0xf0]  ;;  %v631_v17 = vld [vmem:[%s1087_s0 + $0x78] sm:$0xf] }
  0x14   :  { %v761_v18 = vld [vmem:[%s1087_s0 + $0x80] sm:$0xf0]  ;;  %v768_v24 = vld [vmem:[%s1087_s0 + $0xb8] sm:$0xf0] }
  0x16   :  { %340 = vmatpush.bf16.msra.mxu0 %v771_v15 }
  0x17   :  { %792 = vmatpush.bf16.msra.mxu3 %v771_v15  ;;  %389 = vmatpush.bf16.msra.mxu1 %v779_v16  ;;  %v765_v15 = vld [vmem:[%s1087_s0 + $0xa0] sm:$0xf0] }
  0x1a   :  { %738 = vmatmul.msk.bf16.gmra.mxu2 %vm310_vm0, %v592_v19  ;;  %341 = vmatpush.bf16.msra.mxu0 %v770_v20  ;;  %v760_v19 = vld [vmem:[%s1087_s0 + $0x7c] sm:$0xf] }
  0x1b   :  { %793 = vmatpush.bf16.msra.mxu3 %v770_v20  ;;  %390 = vmatpush.bf16.msra.mxu1 %v778_v21  ;;  %v633_v20 = vld [vmem:[%s1087_s0 + $0x84] sm:$0xf0] }
  0x1e   :  { %342 = vmatpush.bf16.msra.mxu0 %v769_v22 }
  0x1f   :  { %794 = vmatpush.bf16.msra.mxu3 %v769_v22  ;;  %391 = vmatpush.bf16.msra.mxu1 %v777_v23  ;;  %v636_v22 = vor.u32 %v760_v19, %v633_v20 }
  0x21   :  { %343 = vmatmul.bf16.vlgmr.msra.gmra.mxu0 %v572_v30 }
  0x22   :  { %373 = vmatmul.bf16.vlgmr.msra.gmra.mxu3 %v644_v31  ;;  %392 = vmatmul.bf16.vlgmr.msra.gmra.mxu1 %v576_v32 }
  0x23   :  { %795 = vmatpush.bf16.msrb.mxu3 %v784_v1  ;;  %v657_v1 = vld [vmem:[%s1087_s0 + $0xb4] sm:$0xf0] }
  0x27   :  { %796 = vmatpush.bf16.msrb.mxu3 %v783_v4  ;;  %v660_v4 = vor.u32 %v766_v0, %v657_v1 }
  0x2a   :  { %739 = vmatmul.msk.bf16.gmra.mxu2 %vm310_vm0, %v604_v35 }
  0x2b   :  { %797 = vmatpush.bf16.msrb.mxu3 %v782_v10  ;;  %v757_v10 = vld [vmem:[%s1087_s0 + $0x64] sm:$0xf] }
  0x2c   :  { %v624_v13 = vor.u32 %v757_v10, %v621_v11 }
  0x2f   :  { %798 = vmatpush.bf16.msrb.mxu3 %v781_v12  ;;  %v620_v12 = vor.u32 %v758_v9, %v619_v8 }
  0x31   :  { %348 = vmatmul.bf16.gmra.mxu0 %v584_v42 }
  0x32   :  { %378 = vmatmul.bf16.gmra.mxu3 %v656_v43  ;;  %397 = vmatmul.bf16.gmra.mxu1 %v588_v44 }
  0x33   :  { %799 = vmatpush.bf16.msrb.mxu3 %v780_v14  ;;  %v651_v14 = vld [vmem:[%s1087_s0 + $0x98] sm:$0xf] }
  0x37   :  { %800 = vmatpush.bf16.msrb.mxu3 %v779_v16  ;;  %v652_v16 = vor.u32 %v765_v15, %v651_v14 }
  0x3a   :  { %740 = vmatmul.msk.bf16.gmra.mxu2 %vm310_vm0, %v616_v47 }
  0x3b   :  { %801 = vmatpush.bf16.msrb.mxu3 %v778_v21  ;;  %v632_v21 = vor.u32 %v761_v18, %v631_v17 }
  0x3f   :  { %802 = vmatpush.bf16.msrb.mxu3 %v777_v23  ;;  %v663_v23 = vld [vmem:[%s1087_s0 + $0xb0] sm:$0xf] }
  0x40   :  { %v664_v25 = vor.u32 %v768_v24, %v663_v23 }
  0x41   :  { %353 = vmatmul.bf16.gmra.mxu0 %v596_v54 }
  0x42   :  { %402 = vmatmul.bf16.gmra.mxu1 %v600_v55  ;;  %422 = vmatmul.bf16.vlgmr.msrb.gmra.mxu3 %v648_v56 }
  0x4a   :  { %741 = vmatmul.msk.bf16.gmra.mxu2 %vm310_vm0, %v628_v59 }
  0x51   :  { %358 = vmatmul.bf16.gmra.mxu0 %v608_v2 }
  0x52   :  { %407 = vmatmul.bf16.gmra.mxu1 %v612_v3  ;;  %427 = vmatmul.bf16.gmra.mxu3 %v660_v4 }
  0x5a   :  { %742 = vmatmul.msk.bf16.gmra.mxu2 %vm310_vm0, %v640_v7 }
  0x61   :  { %363 = vmatmul.bf16.gmra.mxu0 %v620_v12 }
  0x62   :  { %412 = vmatmul.bf16.gmra.mxu1 %v624_v13 }
  0x6a   :  { %743 = vmatmul.msk.bf16.gmra.mxu2 %vm310_vm0, %v652_v16 }
  0x71   :  { %368 = vmatmul.bf16.gmra.mxu0 %v632_v21 }
  0x72   :  { %417 = vmatmul.bf16.gmra.mxu1 %v636_v22 }
  0x7a   :  { %744 = vmatmul.msk.bf16.gmra.mxu2 %vm310_vm0, %v664_v25 }
  0x8d   :  { %v442_v26 = vpop.f32.mrf.mxu2 }
  0x95   :  { %v444_v27 = vpop.f32.mrf.mxu2 }
  0x9d   :  { %v447_v28 = vpop.f32.mrf.mxu2 }
  0x9e   :  { %v344_v29 = vpop.f32.mrf.mxu0 }
  0x9f   :  { %v393_v30 = vpop.f32.mrf.mxu1 }
  0xa0   :  { %v394_v31 = vadd.f32 %v393_v30, %v344_v29 }
  0xa2   :  { %v443_v32 = vadd.f32 %v442_v26, %v394_v31 }
  0xa4   :  { %482 = vst [vmem:[%s1088_s2] sm:$0xff] %v443_v32  ;;  %v519_v38 = vmul.f32 %v443_v32, %v443_v32 }
  0xa5   :  { %v449_v33 = vpop.f32.mrf.mxu2  ;;  %v374_v52 = vpop.f32.mrf.mxu3 }
  0xa6   :  { %v346_v34 = vpop.f32.mrf.mxu0 }
  0xa7   :  { %v395_v35 = vpop.f32.mrf.mxu1 }
  0xa8   :  { %v396_v36 = vadd.f32 %v395_v35, %v346_v34 }
  0xaa   :  { %v445_v37 = vadd.f32 %v444_v27, %v396_v36 }
  0xac   :  { %483 = vst [vmem:[%s1088_s2 + $0x8] sm:$0xff] %v445_v37  ;;  %v498_v39 = vadd.f32 %v445_v37, %v443_v32  ;;  %v520_v40 = vmul.f32 %v445_v37, %v445_v37 }
  0xad   :  { %v452_v41 = vpop.f32.mrf.mxu2  ;;  %v376_v58 = vpop.f32.mrf.mxu3 }
  0xae   :  { %v535_v42 = vadd.f32 %v520_v40, %v519_v38  ;;  %v349_v43 = vpop.f32.mrf.mxu0 }
  0xaf   :  { %v398_v44 = vpop.f32.mrf.mxu1 }
  0xb0   :  { %v399_v45 = vadd.f32 %v398_v44, %v349_v43 }
  0xb2   :  { %v448_v46 = vadd.f32 %v447_v28, %v399_v45 }
  0xb4   :  { %484 = vst [vmem:[%s1088_s2 + $0x10] sm:$0xff] %v448_v46  ;;  %v521_v21 = vmul.f32 %v448_v46, %v448_v46  ;;  %v499_v23 = vadd.f32 %v498_v39, %v448_v46 }
  0xb5   :  { %v454_v47 = vpop.f32.mrf.mxu2  ;;  %v1047_v2 = vpop.f32.mrf.mxu3 }
  0xb6   :  { %v351_v48 = vpop.f32.mrf.mxu0  ;;  %v536_v26 = vadd.f32 %v535_v42, %v521_v21 }
  0xb7   :  { %v400_v49 = vpop.f32.mrf.mxu1 }
  0xb8   :  { %v401_v50 = vadd.f32 %v400_v49, %v351_v48 }
  0xba   :  { %v450_v51 = vadd.f32 %v449_v33, %v401_v50 }
  0xbc   :  { %485 = vst [vmem:[%s1088_s2 + $0x18] sm:$0xff] %v450_v51  ;;  %v522_v24 = vmul.f32 %v450_v51, %v450_v51  ;;  %v500_v27 = vadd.f32 %v499_v23, %v450_v51 }
  0xbd   :  { %v457_v53 = vpop.f32.mrf.mxu2  ;;  %v1052_v10 = vpop.f32.mrf.mxu3 }
  0xbe   :  { %v354_v54 = vpop.f32.mrf.mxu0  ;;  %v537_v32 = vadd.f32 %v536_v26, %v522_v24 }
  0xbf   :  { %v403_v55 = vpop.f32.mrf.mxu1 }
  0xc0   :  { %v404_v56 = vadd.f32 %v403_v55, %v354_v54 }
  0xc2   :  { %v453_v57 = vadd.f32 %v452_v41, %v404_v56 }
  0xc4   :  { %486 = vst [vmem:[%s1088_s2 + $0x20] sm:$0xff] %v453_v57  ;;  %v523_v28 = vmul.f32 %v453_v57, %v453_v57  ;;  %v501_v33 = vadd.f32 %v500_v27, %v453_v57 }
  0xc5   :  { %v459_v59 = vpop.f32.mrf.mxu2  ;;  %v423_v17 = vpop.f32.mrf.mxu3 }
  0xc6   :  { %v356_v60 = vpop.f32.mrf.mxu0  ;;  %v424_v29 = vadd.f32 %v423_v17, %v374_v52  ;;  %v538_v38 = vadd.f32 %v537_v32, %v523_v28 }
  0xc7   :  { %v405_v61 = vpop.f32.mrf.mxu1 }
  0xc8   :  { %v406_v62 = vadd.f32 %v405_v61, %v356_v60 }
  0xca   :  { %v455_v63 = vadd.f32 %v454_v47, %v406_v62 }
  0xcc   :  { %487 = vst [vmem:[%s1088_s2 + $0x28] sm:$0xff] %v455_v63  ;;  %v524_v34 = vmul.f32 %v455_v63, %v455_v63  ;;  %v502_v39 = vadd.f32 %v501_v33, %v455_v63 }
  0xcd   :  { %v462_v0 = vpop.f32.mrf.mxu2  ;;  %v425_v30 = vpop.f32.mrf.mxu3 }
  0xce   :  { %v359_v1 = vpop.f32.mrf.mxu0  ;;  %v539_v42 = vadd.f32 %v538_v38, %v524_v34  ;;  %v426_v46 = vadd.f32 %v425_v30, %v376_v58 }
  0xcf   :  { %v408_v3 = vpop.f32.mrf.mxu1 }
  0xd0   :  { %v409_v4 = vadd.f32 %v408_v3, %v359_v1 }
  0xd2   :  { %v458_v5 = vadd.f32 %v457_v53, %v409_v4 }
  0xd4   :  { %488 = vst [vmem:[%s1088_s2 + $0x30] sm:$0xff] %v458_v5  ;;  %v525_v40 = vmul.f32 %v458_v5, %v458_v5  ;;  %v503_v43 = vadd.f32 %v502_v39, %v458_v5 }
  0xd5   :  { %v464_v6 = vpop.f32.mrf.mxu2  ;;  %v428_v56 = vpop.f32.mrf.mxu3 }
  0xd6   :  { %v361_v7 = vpop.f32.mrf.mxu0  ;;  %v540_v47 = vadd.f32 %v539_v42, %v525_v40  ;;  %v429_v1 = vadd.f32 %v428_v56, %v1047_v2 }
  0xd7   :  { %v410_v8 = vpop.f32.mrf.mxu1 }
  0xd8   :  { %v411_v9 = vadd.f32 %v410_v8, %v361_v7 }
  0xda   :  { %v460_v11 = vadd.f32 %v459_v59, %v411_v9 }
  0xdc   :  { %489 = vst [vmem:[%s1088_s2 + $0x38] sm:$0xff] %v460_v11  ;;  %v526_v44 = vmul.f32 %v460_v11, %v460_v11  ;;  %v504_v48 = vadd.f32 %v503_v43, %v460_v11 }
  0xdd   :  { %v467_v12 = vpop.f32.mrf.mxu2 }
  0xde   :  { %v364_v13 = vpop.f32.mrf.mxu0  ;;  %v541_v51 = vadd.f32 %v540_v47, %v526_v44 }
  0xdf   :  { %v413_v14 = vpop.f32.mrf.mxu1 }
  0xe0   :  { %v414_v15 = vadd.f32 %v413_v14, %v364_v13  ;;  %v430_v13 = vpop.f32.mrf.mxu3 }
  0xe2   :  { %v463_v16 = vadd.f32 %v462_v0, %v414_v15  ;;  %v431_v15 = vadd.f32 %v430_v13, %v1052_v10 }
  0xe4   :  { %490 = vst [vmem:[%s1088_s2 + $0x40] sm:$0xff] %v463_v16  ;;  %v527_v49 = vmul.f32 %v463_v16, %v463_v16  ;;  %v505_v52 = vadd.f32 %v504_v48, %v463_v16 }
  0xe5   :  { %v469_v18 = vpop.f32.mrf.mxu2 }
  0xe6   :  { %v366_v19 = vpop.f32.mrf.mxu0  ;;  %v542_v59 = vadd.f32 %v541_v51, %v527_v49 }
  0xe7   :  { %v415_v20 = vpop.f32.mrf.mxu1 }
  0xe8   :  { %v416_v22 = vadd.f32 %v415_v20, %v366_v19 }
  0xea   :  { %v465_v25 = vadd.f32 %v464_v6, %v416_v22 }
  0xec   :  { %491 = vst [vmem:[%s1088_s2 + $0x48] sm:$0xff] %v465_v25  ;;  %v528_v53 = vmul.f32 %v465_v25, %v465_v25  ;;  %v506_v60 = vadd.f32 %v505_v52, %v465_v25 }
  0xed   :  { %v472_v31 = vpop.f32.mrf.mxu2 }
  0xee   :  { %v473_v35 = vadd.f32 %v472_v31, %v424_v29  ;;  %v369_v36 = vpop.f32.mrf.mxu0  ;;  %v543_v62 = vadd.f32 %v542_v59, %v528_v53 }
  0xef   :  { %v418_v37 = vpop.f32.mrf.mxu1 }
  0xf0   :  { %494 = vst [vmem:[%s1088_s2 + $0x60] sm:$0xff] %v473_v35  ;;  %v419_v41 = vadd.f32 %v418_v37, %v369_v36  ;;  %v531_v7 = vmul.f32 %v473_v35, %v473_v35 }
  0xf2   :  { %v468_v45 = vadd.f32 %v467_v12, %v419_v41 }
  0xf4   :  { %492 = vst [vmem:[%s1088_s2 + $0x50] sm:$0xff] %v468_v45  ;;  %v529_v61 = vmul.f32 %v468_v45, %v468_v45  ;;  %v507_v63 = vadd.f32 %v506_v60, %v468_v45 }
  0xf5   :  { %v474_v50 = vpop.f32.mrf.mxu2 }
  0xf6   :  { %v475_v54 = vadd.f32 %v474_v50, %v426_v46  ;;  %v371_v55 = vpop.f32.mrf.mxu0  ;;  %v544_v3 = vadd.f32 %v543_v62, %v529_v61 }
  0xf7   :  { %v420_v57 = vpop.f32.mrf.mxu1 }
  0xf8   :  { %495 = vst [vmem:[%s1088_s2 + $0x68] sm:$0xff] %v475_v54  ;;  %v421_v58 = vadd.f32 %v420_v57, %v371_v55  ;;  %v532_v14 = vmul.f32 %v475_v54, %v475_v54 }
  0xfa   :  { %v470_v0 = vadd.f32 %v469_v18, %v421_v58 }
  0xfc   :  { %493 = vst [vmem:[%s1088_s2 + $0x58] sm:$0xff] %v470_v0  ;;  %v508_v4 = vadd.f32 %v507_v63, %v470_v0  ;;  %v530_v5 = vmul.f32 %v470_v0, %v470_v0 }
  0xfd   :  { %v477_v6 = vpop.f32.mrf.mxu2 }
  0xfe   :  { %v545_v8 = vadd.f32 %v544_v3, %v530_v5  ;;  %v478_v9 = vadd.f32 %v477_v6, %v429_v1  ;;  %v509_v11 = vadd.f32 %v508_v4, %v473_v35 }
 0x100   :  { %496 = vst [vmem:[%s1088_s2 + $0x70] sm:$0xff] %v478_v9  ;;  %v546_v12 = vadd.f32 %v545_v8, %v531_v7  ;;  %v510_v2 = vadd.f32 %v509_v11, %v475_v54  ;;  %v533_v19 = vmul.f32 %v478_v9, %v478_v9 }
 0x102   :  { %v547_v16 = vadd.f32 %v546_v12, %v532_v14  ;;  %v511_v18 = vadd.f32 %v510_v2, %v478_v9 }
 0x104   :  { %v548_v21 = vadd.f32 %v547_v16, %v533_v19 }
 0x105   :  { %v479_v17 = vpop.f32.mrf.mxu2 }
 0x106   :  { %v480_v20 = vadd.f32 %v479_v17, %v431_v15 }
 0x108   :  { %497 = vst [vmem:[%s1088_s2 + $0x78] sm:$0xff] %v480_v20  ;;  %v512_v22 = vadd.f32 %v511_v18, %v480_v20  ;;  %v534_v23 = vmul.f32 %v480_v20, %v480_v20 }
 0x10a   :  { %v513_v24 = vrot.slane %v512_v22, 4  ;;  %v549_v25 = vadd.f32 %v548_v21, %v534_v23 }
 0x10c   :  { %v514_v26 = vadd.f32 %v513_v24, %v512_v22  ;;  %v550_v27 = vrot.slane %v549_v25, 4 }
 0x10e   :  { %v515_v28 = vrot.slane %v514_v26, 2  ;;  %v551_v29 = vadd.f32 %v550_v27, %v549_v25 }
 0x110   :  { %v516_v30 = vadd.f32 %v515_v28, %v514_v26  ;;  %v552_v10 = vrot.slane %v551_v29, 2 }
 0x112   :  { %v517_v31 = vrot.slane %v516_v30, 1  ;;  %v553_v32 = vadd.f32 %v552_v10, %v551_v29 }
 0x114   :  { %v554_v33 = vrot.slane %v553_v32, 1  ;;  %v518_v34 = vadd.f32 %v517_v31, %v516_v30 }
 0x116   :  { %v555_v35 = vadd.f32 %v554_v33, %v553_v32 }
 0x118   :  { %v557_v36 = vsel %vm556_vm1, %v518_v34, %v555_v35 }
 0x119   :  { %v559_v37 = vsel %vm558_vm2, %v557_v36, 0.0 }
 0x11a   :  { %560 = vst [vmem:[%s1089_s3] sm:$0xff] %v559_v37 }

// kernel: dcgan_generator_forward.14
= control target key start
LH: loop header
LB: loop body
LE: loop exit
PB: predicated region body
PF: predicated region fallthrough
CT: control target
= control target key end

     0   :  { %s248_s0 = inlined_call_operand.vmem [shape: f32[128,128], index: 0, kind: input, shape index: {}]   ;;  %s249_s1 = inlined_call_operand.vmem [shape: f32[1,128], index: 1, kind: input, shape index: {}]   ;;  %s250_s2 = inlined_call_operand.vmem [shape: f32[1,128], index: 2, kind: input, shape index: {}]   ;;  %s251_s3 = inlined_call_operand.vmem [shape: f32[128,128], index: 3, kind: output, shape index: {}]  }
   0x1   :  { %v14_v0 = vld [vmem:[%s248_s0] sm:$0xff]  ;;  %v15_v3 = vld [vmem:[%s248_s0 + $0x8] sm:$0xff]  ;;  %v16_v6 = vld [vmem:[%s248_s0 + $0x10] sm:$0xff] }
   0x2   :  { %v106_v1 = vld [vmem:[%s249_s1] ss:$0 sm:$0xff]  ;;  %v17_v7 = vld [vmem:[%s248_s0 + $0x18] sm:$0xff]  ;;  %v19_v12 = vld [vmem:[%s248_s0 + $0x28] sm:$0xff] }
   0x3   :  { %v137_v2 = vld [vmem:[%s250_s2] ss:$0 sm:$0xff]  ;;  %v34_v4 = vmul.f32 %v106_v1, %v14_v0  ;;  %v35_v5 = vmul.f32 %v106_v1, %v15_v3  ;;  %v36_v9 = vmul.f32 %v106_v1, %v16_v6  ;;  %v37_v10 = vmul.f32 %v106_v1, %v17_v7  ;;  %v20_v13 = vld [vmem:[%s248_s0 + $0x30] sm:$0xff]  ;;  %v21_v14 = vld [vmem:[%s248_s0 + $0x38] sm:$0xff] }
   0x4   :  { %v18_v8 = vld [vmem:[%s248_s0 + $0x20] sm:$0xff]  ;;  %v39_v17 = vmul.f32 %v106_v1, %v19_v12  ;;  %v40_v18 = vmul.f32 %v106_v1, %v20_v13  ;;  %v41_v22 = vmul.f32 %v106_v1, %v21_v14  ;;  %v23_v24 = vld [vmem:[%s248_s0 + $0x48] sm:$0xff]  ;;  %v24_v29 = vld [vmem:[%s248_s0 + $0x50] sm:$0xff] }
   0x5   :  { %v38_v11 = vmul.f32 %v106_v1, %v18_v8  ;;  %v54_v15 = vadd.f32 %v137_v2, %v34_v4  ;;  %v55_v16 = vadd.f32 %v137_v2, %v35_v5  ;;  %v56_v19 = vadd.f32 %v137_v2, %v36_v9  ;;  %v22_v23 = vld [vmem:[%s248_s0 + $0x40] sm:$0xff]  ;;  %v25_v30 = vld [vmem:[%s248_s0 + $0x58] sm:$0xff]  ;;  %v27_v35 = vld [vmem:[%s248_s0 + $0x68] sm:$0xff] }
   0x6   :  { %v57_v20 = vadd.f32 %v137_v2, %v37_v10  ;;  %v59_v27 = vadd.f32 %v137_v2, %v39_v17  ;;  %v60_v28 = vadd.f32 %v137_v2, %v40_v18  ;;  %v26_v31 = vld [vmem:[%s248_s0 + $0x60] sm:$0xff]  ;;  %v61_v34 = vadd.f32 %v137_v2, %v41_v22  ;;  %v28_v36 = vld [vmem:[%s248_s0 + $0x70] sm:$0xff]  ;;  %v29_v41 = vld [vmem:[%s248_s0 + $0x78] sm:$0xff] }
   0x7   :  { %v58_v21 = vadd.f32 %v137_v2, %v38_v11  ;;  %v70_v25 = vmax.f32 %v54_v15, 0.0  ;;  %v71_v26 = vmax.f32 %v55_v16, 0.0  ;;  %v72_v32 = vmax.f32 %v56_v19, 0.0 }
   0x8   :  { %v73_v33 = vmax.f32 %v57_v20, 0.0  ;;  %v75_v38 = vmax.f32 %v59_v27, 0.0  ;;  %v42_v39 = vmul.f32 %v106_v1, %v22_v23  ;;  %v43_v40 = vmul.f32 %v106_v1, %v23_v24 }
   0x9   :  { %86 = vst [vmem:[%s251_s3] sm:$0xff] %v70_v25  ;;  %v74_v37 = vmax.f32 %v58_v21, 0.0  ;;  %v76_v42 = vmax.f32 %v60_v28, 0.0  ;;  %v44_v43 = vmul.f32 %v106_v1, %v24_v29  ;;  %v45_v44 = vmul.f32 %v106_v1, %v25_v30 }
   0xa   :  { %87 = vst [vmem:[%s251_s3 + $0x8] sm:$0xff] %v71_v26  ;;  %v46_v45 = vmul.f32 %v106_v1, %v26_v31  ;;  %v62_v46 = vadd.f32 %v137_v2, %v42_v39  ;;  %v63_v47 = vadd.f32 %v137_v2, %v43_v40  ;;  %v47_v48 = vmul.f32 %v106_v1, %v27_v35 }
   0xb   :  { %88 = vst [vmem:[%s251_s3 + $0x10] sm:$0xff] %v72_v32  ;;  %v48_v49 = vmul.f32 %v106_v1, %v28_v36  ;;  %v77_v50 = vmax.f32 %v61_v34, 0.0  ;;  %v64_v51 = vadd.f32 %v137_v2, %v44_v43  ;;  %v65_v52 = vadd.f32 %v137_v2, %v45_v44 }
   0xc   :  { %89 = vst [vmem:[%s251_s3 + $0x18] sm:$0xff] %v73_v33  ;;  %v49_v53 = vmul.f32 %v106_v1, %v29_v41  ;;  %v78_v54 = vmax.f32 %v62_v46, 0.0  ;;  %v66_v55 = vadd.f32 %v137_v2, %v46_v45  ;;  %v79_v56 = vmax.f32 %v63_v47, 0.0 }
   0xd   :  { %90 = vst [vmem:[%s251_s3 + $0x20] sm:$0xff] %v74_v37  ;;  %v67_v57 = vadd.f32 %v137_v2, %v47_v48  ;;  %v80_v58 = vmax.f32 %v64_v51, 0.0  ;;  %v68_v59 = vadd.f32 %v137_v2, %v48_v49  ;;  %v81_v60 = vmax.f32 %v65_v52, 0.0 }
   0xe   :  { %91 = vst [vmem:[%s251_s3 + $0x28] sm:$0xff] %v75_v38  ;;  %v69_v61 = vadd.f32 %v137_v2, %v49_v53  ;;  %v82_v62 = vmax.f32 %v66_v55, 0.0 }
   0xf   :  { %92 = vst [vmem:[%s251_s3 + $0x30] sm:$0xff] %v76_v42  ;;  %v83_v63 = vmax.f32 %v67_v57, 0.0  ;;  %v84_v0 = vmax.f32 %v68_v59, 0.0 }
  0x10   :  { %93 = vst [vmem:[%s251_s3 + $0x38] sm:$0xff] %v77_v50  ;;  %v85_v1 = vmax.f32 %v69_v61, 0.0 }
  0x11   :  { %94 = vst [vmem:[%s251_s3 + $0x40] sm:$0xff] %v78_v54 }
  0x12   :  { %95 = vst [vmem:[%s251_s3 + $0x48] sm:$0xff] %v79_v56 }
  0x13   :  { %96 = vst [vmem:[%s251_s3 + $0x50] sm:$0xff] %v80_v58 }
  0x14   :  { %97 = vst [vmem:[%s251_s3 + $0x58] sm:$0xff] %v81_v60 }
  0x15   :  { %98 = vst [vmem:[%s251_s3 + $0x60] sm:$0xff] %v82_v62 }
  0x16   :  { %99 = vst [vmem:[%s251_s3 + $0x68] sm:$0xff] %v83_v63 }
  0x17   :  { %100 = vst [vmem:[%s251_s3 + $0x70] sm:$0xff] %v84_v0 }
  0x18   :  { %101 = vst [vmem:[%s251_s3 + $0x78] sm:$0xff] %v85_v1 }

// kernel: dcgan_generator_forward.16
= control target key start
LH: loop header
LB: loop body
LE: loop exit
PB: predicated region body
PF: predicated region fallthrough
CT: control target
= control target key end

     0   :  { %s893_s0 = inlined_call_operand.vmem [shape: f32[512,128], index: 0, kind: input, shape index: {}]   ;;  %s894_s1 = inlined_call_operand.vmem [shape: f32[1,128], index: 1, kind: input, shape index: {}]   ;;  %s895_s2 = inlined_call_operand.vmem [shape: f32[1,128], index: 2, kind: input, shape index: {}]   ;;  %s896_s3 = inlined_call_operand.vmem [shape: f32[512,128], index: 3, kind: output, shape index: {}]  }
   0x1   :  { %v14_v0 = vld [vmem:[%s893_s0] sm:$0xff]  ;;  %v15_v3 = vld [vmem:[%s893_s0 + $0x8] sm:$0xff]  ;;  %v16_v6 = vld [vmem:[%s893_s0 + $0x10] sm:$0xff] }
   0x2   :  { %v374_v1 = vld [vmem:[%s894_s1] ss:$0 sm:$0xff]  ;;  %v17_v7 = vld [vmem:[%s893_s0 + $0x18] sm:$0xff]  ;;  %v19_v12 = vld [vmem:[%s893_s0 + $0x28] sm:$0xff] }
   0x3   :  { %v379_v2 = vld [vmem:[%s895_s2] ss:$0 sm:$0xff]  ;;  %v82_v4 = vmul.f32 %v374_v1, %v14_v0  ;;  %v83_v5 = vmul.f32 %v374_v1, %v15_v3  ;;  %v84_v9 = vmul.f32 %v374_v1, %v16_v6  ;;  %v85_v10 = vmul.f32 %v374_v1, %v17_v7  ;;  %v20_v13 = vld [vmem:[%s893_s0 + $0x30] sm:$0xff]  ;;  %v21_v14 = vld [vmem:[%s893_s0 + $0x38] sm:$0xff] }
   0x4   :  { %v18_v8 = vld [vmem:[%s893_s0 + $0x20] sm:$0xff]  ;;  %v87_v17 = vmul.f32 %v374_v1, %v19_v12  ;;  %v88_v18 = vmul.f32 %v374_v1, %v20_v13  ;;  %v89_v22 = vmul.f32 %v374_v1, %v21_v14  ;;  %v23_v24 = vld [vmem:[%s893_s0 + $0x48] sm:$0xff]  ;;  %v24_v29 = vld [vmem:[%s893_s0 + $0x50] sm:$0xff] }
   0x5   :  { %v86_v11 = vmul.f32 %v374_v1, %v18_v8  ;;  %v150_v15 = vadd.f32 %v379_v2, %v82_v4  ;;  %v151_v16 = vadd.f32 %v379_v2, %v83_v5  ;;  %v152_v19 = vadd.f32 %v379_v2, %v84_v9  ;;  %v22_v23 = vld [vmem:[%s893_s0 + $0x40] sm:$0xff]  ;;  %v25_v30 = vld [vmem:[%s893_s0 + $0x58] sm:$0xff]  ;;  %v27_v35 = vld [vmem:[%s893_s0 + $0x68] sm:$0xff] }
   0x6   :  { %v153_v20 = vadd.f32 %v379_v2, %v85_v10  ;;  %v155_v27 = vadd.f32 %v379_v2, %v87_v17  ;;  %v156_v28 = vadd.f32 %v379_v2, %v88_v18  ;;  %v26_v31 = vld [vmem:[%s893_s0 + $0x60] sm:$0xff]  ;;  %v157_v34 = vadd.f32 %v379_v2, %v89_v22  ;;  %v28_v36 = vld [vmem:[%s893_s0 + $0x70] sm:$0xff]  ;;  %v29_v41 = vld [vmem:[%s893_s0 + $0x78] sm:$0xff] }
   0x7   :  { %v154_v21 = vadd.f32 %v379_v2, %v86_v11  ;;  %v214_v25 = vmax.f32 %v150_v15, 0.0  ;;  %v215_v26 = vmax.f32 %v151_v16, 0.0  ;;  %v216_v32 = vmax.f32 %v152_v19, 0.0  ;;  %v30_v54 = vld [vmem:[%s893_s0 + $0x80] sm:$0xff]  ;;  %v31_v55 = vld [vmem:[%s893_s0 + $0x88] sm:$0xff]  ;;  %v32_v58 = vld [vmem:[%s893_s0 + $0x90] sm:$0xff] }
   0x8   :  { %v217_v33 = vmax.f32 %v153_v20, 0.0  ;;  %v219_v38 = vmax.f32 %v155_v27, 0.0  ;;  %v90_v39 = vmul.f32 %v374_v1, %v22_v23  ;;  %v91_v40 = vmul.f32 %v374_v1, %v23_v24  ;;  %v33_v59 = vld [vmem:[%s893_s0 + $0x98] sm:$0xff]  ;;  %v34_v62 = vld [vmem:[%s893_s0 + $0xa0] sm:$0xff]  ;;  %v35_v5 = vld [vmem:[%s893_s0 + $0xa8] sm:$0xff] }
   0x9   :  { %278 = vst [vmem:[%s896_s3] sm:$0xff] %v214_v25  ;;  %v218_v37 = vmax.f32 %v154_v21, 0.0  ;;  %v220_v42 = vmax.f32 %v156_v28, 0.0  ;;  %v92_v43 = vmul.f32 %v374_v1, %v24_v29  ;;  %v93_v44 = vmul.f32 %v374_v1, %v25_v30  ;;  %v36_v10 = vld [vmem:[%s893_s0 + $0xb0] sm:$0xff]  ;;  %v37_v14 = vld [vmem:[%s893_s0 + $0xb8] sm:$0xff]  ;;  %v38_v18 = vld [vmem:[%s893_s0 + $0xc0] sm:$0xff] }
   0xa   :  { %279 = vst [vmem:[%s896_s3 + $0x8] sm:$0xff] %v215_v26  ;;  %v94_v45 = vmul.f32 %v374_v1, %v26_v31  ;;  %v158_v46 = vadd.f32 %v379_v2, %v90_v39  ;;  %v159_v47 = vadd.f32 %v379_v2, %v91_v40  ;;  %v95_v48 = vmul.f32 %v374_v1, %v27_v35  ;;  %v39_v22 = vld [vmem:[%s893_s0 + $0xc8] sm:$0xff]  ;;  %v40_v26 = vld [vmem:[%s893_s0 + $0xd0] sm:$0xff]  ;;  %v41_v30 = vld [vmem:[%s893_s0 + $0xd8] sm:$0xff] }
   0xb   :  { %280 = vst [vmem:[%s896_s3 + $0x10] sm:$0xff] %v216_v32  ;;  %v96_v49 = vmul.f32 %v374_v1, %v28_v36  ;;  %v221_v50 = vmax.f32 %v157_v34, 0.0  ;;  %v160_v51 = vadd.f32 %v379_v2, %v92_v43  ;;  %v161_v52 = vadd.f32 %v379_v2, %v93_v44  ;;  %v42_v34 = vld [vmem:[%s893_s0 + $0xe0] sm:$0xff] }
   0xc   :  { %281 = vst [vmem:[%s896_s3 + $0x18] sm:$0xff] %v217_v33  ;;  %v97_v53 = vmul.f32 %v374_v1, %v29_v41  ;;  %v222_v56 = vmax.f32 %v158_v46, 0.0  ;;  %v162_v57 = vadd.f32 %v379_v2, %v94_v45  ;;  %v223_v60 = vmax.f32 %v159_v47, 0.0  ;;  %v45_v46 = vld [vmem:[%s893_s0 + $0xf8] sm:$0xff] }
   0xd   :  { %282 = vst [vmem:[%s896_s3 + $0x20] sm:$0xff] %v218_v37  ;;  %v163_v61 = vadd.f32 %v379_v2, %v95_v48  ;;  %v224_v63 = vmax.f32 %v160_v51, 0.0  ;;  %v164_v0 = vadd.f32 %v379_v2, %v96_v49  ;;  %v98_v3 = vmul.f32 %v374_v1, %v30_v54  ;;  %v47_v54 = vld [vmem:[%s893_s0 + $0x108] sm:$0xff] }
   0xe   :  { %283 = vst [vmem:[%s896_s3 + $0x28] sm:$0xff] %v219_v38  ;;  %v99_v4 = vmul.f32 %v374_v1, %v31_v55  ;;  %v225_v6 = vmax.f32 %v161_v52, 0.0  ;;  %v165_v7 = vadd.f32 %v379_v2, %v97_v53  ;;  %v100_v8 = vmul.f32 %v374_v1, %v32_v58  ;;  %v43_v38 = vld [vmem:[%s893_s0 + $0xe8] sm:$0xff]  ;;  %v48_v58 = vld [vmem:[%s893_s0 + $0x110] sm:$0xff] }
   0xf   :  { %284 = vst [vmem:[%s896_s3 + $0x30] sm:$0xff] %v220_v42  ;;  %v101_v9 = vmul.f32 %v374_v1, %v33_v59  ;;  %v226_v11 = vmax.f32 %v162_v57, 0.0  ;;  %v166_v12 = vadd.f32 %v379_v2, %v98_v3  ;;  %v102_v13 = vmul.f32 %v374_v1, %v34_v62  ;;  %v44_v42 = vld [vmem:[%s893_s0 + $0xf0] sm:$0xff]  ;;  %v49_v62 = vld [vmem:[%s893_s0 + $0x118] sm:$0xff] }
  0x10   :  { %285 = vst [vmem:[%s896_s3 + $0x38] sm:$0xff] %v221_v50  ;;  %v227_v15 = vmax.f32 %v163_v61, 0.0  ;;  %v167_v16 = vadd.f32 %v379_v2, %v99_v4  ;;  %v103_v17 = vmul.f32 %v374_v1, %v35_v5  ;;  %v228_v19 = vmax.f32 %v164_v0, 0.0  ;;  %v46_v50 = vld [vmem:[%s893_s0 + $0x100] sm:$0xff] }
  0x11   :  { %286 = vst [vmem:[%s896_s3 + $0x40] sm:$0xff] %v222_v56  ;;  %v168_v20 = vadd.f32 %v379_v2, %v100_v8  ;;  %v104_v21 = vmul.f32 %v374_v1, %v36_v10  ;;  %v229_v23 = vmax.f32 %v165_v7, 0.0  ;;  %v169_v24 = vadd.f32 %v379_v2, %v101_v9  ;;  %v50_v4 = vld [vmem:[%s893_s0 + $0x120] sm:$0xff]  ;;  %v51_v8 = vld [vmem:[%s893_s0 + $0x128] sm:$0xff] }
  0x12   :  { %287 = vst [vmem:[%s896_s3 + $0x48] sm:$0xff] %v223_v60  ;;  %v105_v25 = vmul.f32 %v374_v1, %v37_v14  ;;  %v230_v27 = vmax.f32 %v166_v12, 0.0  ;;  %v170_v28 = vadd.f32 %v379_v2, %v102_v13  ;;  %v106_v29 = vmul.f32 %v374_v1, %v38_v18  ;;  %v52_v12 = vld [vmem:[%s893_s0 + $0x130] sm:$0xff] }
  0x13   :  { %288 = vst [vmem:[%s896_s3 + $0x50] sm:$0xff] %v224_v63  ;;  %v231_v31 = vmax.f32 %v167_v16, 0.0  ;;  %v171_v32 = vadd.f32 %v379_v2, %v103_v17  ;;  %v107_v33 = vmul.f32 %v374_v1, %v39_v22  ;;  %v232_v35 = vmax.f32 %v168_v20, 0.0  ;;  %v53_v16 = vld [vmem:[%s893_s0 + $0x138] sm:$0xff]  ;;  %v54_v20 = vld [vmem:[%s893_s0 + $0x140] sm:$0xff] }
  0x14   :  { %289 = vst [vmem:[%s896_s3 + $0x58] sm:$0xff] %v225_v6  ;;  %v172_v36 = vadd.f32 %v379_v2, %v104_v21  ;;  %v108_v37 = vmul.f32 %v374_v1, %v40_v26  ;;  %v233_v39 = vmax.f32 %v169_v24, 0.0  ;;  %v173_v40 = vadd.f32 %v379_v2, %v105_v25  ;;  %v55_v24 = vld [vmem:[%s893_s0 + $0x148] sm:$0xff] }
  0x15   :  { %290 = vst [vmem:[%s896_s3 + $0x60] sm:$0xff] %v226_v11  ;;  %v109_v41 = vmul.f32 %v374_v1, %v41_v30  ;;  %v234_v43 = vmax.f32 %v170_v28, 0.0  ;;  %v174_v44 = vadd.f32 %v379_v2, %v106_v29  ;;  %v110_v45 = vmul.f32 %v374_v1, %v42_v34  ;;  %v56_v28 = vld [vmem:[%s893_s0 + $0x150] sm:$0xff] }
  0x16   :  { %291 = vst [vmem:[%s896_s3 + $0x68] sm:$0xff] %v227_v15  ;;  %v235_v47 = vmax.f32 %v171_v32, 0.0  ;;  %v175_v48 = vadd.f32 %v379_v2, %v107_v33  ;;  %v111_v49 = vmul.f32 %v374_v1, %v43_v38  ;;  %v236_v51 = vmax.f32 %v172_v36, 0.0  ;;  %v57_v32 = vld [vmem:[%s893_s0 + $0x158] sm:$0xff]  ;;  %v58_v36 = vld [vmem:[%s893_s0 + $0x160] sm:$0xff] }
  0x17   :  { %292 = vst [vmem:[%s896_s3 + $0x70] sm:$0xff] %v228_v19  ;;  %v176_v52 = vadd.f32 %v379_v2, %v108_v37  ;;  %v112_v53 = vmul.f32 %v374_v1, %v44_v42  ;;  %v237_v55 = vmax.f32 %v173_v40, 0.0  ;;  %v177_v56 = vadd.f32 %v379_v2, %v109_v41  ;;  %v59_v40 = vld [vmem:[%s893_s0 + $0x168] sm:$0xff] }
  0x18   :  { %293 = vst [vmem:[%s896_s3 + $0x78] sm:$0xff] %v229_v23  ;;  %v113_v57 = vmul.f32 %v374_v1, %v45_v46  ;;  %v238_v59 = vmax.f32 %v174_v44, 0.0  ;;  %v178_v60 = vadd.f32 %v379_v2, %v110_v45  ;;  %v114_v61 = vmul.f32 %v374_v1, %v46_v50  ;;  %v60_v44 = vld [vmem:[%s893_s0 + $0x170] sm:$0xff] }
  0x19   :  { %294 = vst [vmem:[%s896_s3 + $0x80] sm:$0xff] %v230_v27  ;;  %v239_v63 = vmax.f32 %v175_v48, 0.0  ;;  %v179_v0 = vadd.f32 %v379_v2, %v111_v49  ;;  %v115_v3 = vmul.f32 %v374_v1, %v47_v54  ;;  %v240_v5 = vmax.f32 %v176_v52, 0.0  ;;  %v61_v48 = vld [vmem:[%s893_s0 + $0x178] sm:$0xff]  ;;  %v62_v52 = vld [vmem:[%s893_s0 + $0x180] sm:$0xff] }
  0x1a   :  { %295 = vst [vmem:[%s896_s3 + $0x88] sm:$0xff] %v231_v31  ;;  %v180_v6 = vadd.f32 %v379_v2, %v112_v53  ;;  %v116_v7 = vmul.f32 %v374_v1, %v48_v58  ;;  %v241_v9 = vmax.f32 %v177_v56, 0.0  ;;  %v181_v10 = vadd.f32 %v379_v2, %v113_v57  ;;  %v63_v56 = vld [vmem:[%s893_s0 + $0x188] sm:$0xff] }
  0x1b   :  { %296 = vst [vmem:[%s896_s3 + $0x90] sm:$0xff] %v232_v35  ;;  %v117_v11 = vmul.f32 %v374_v1, %v49_v62  ;;  %v242_v13 = vmax.f32 %v178_v60, 0.0  ;;  %v182_v14 = vadd.f32 %v379_v2, %v114_v61  ;;  %v118_v15 = vmul.f32 %v374_v1, %v50_v4  ;;  %v64_v60 = vld [vmem:[%s893_s0 + $0x190] sm:$0xff] }
  0x1c   :  { %297 = vst [vmem:[%s896_s3 + $0x98] sm:$0xff] %v233_v39  ;;  %v243_v17 = vmax.f32 %v179_v0, 0.0  ;;  %v183_v18 = vadd.f32 %v379_v2, %v115_v3  ;;  %v119_v19 = vmul.f32 %v374_v1, %v51_v8  ;;  %v244_v21 = vmax.f32 %v180_v6, 0.0  ;;  %v65_v0 = vld [vmem:[%s893_s0 + $0x198] sm:$0xff] }
  0x1d   :  { %298 = vst [vmem:[%s896_s3 + $0xa0] sm:$0xff] %v234_v43  ;;  %v184_v22 = vadd.f32 %v379_v2, %v116_v7  ;;  %v120_v23 = vmul.f32 %v374_v1, %v52_v12  ;;  %v245_v25 = vmax.f32 %v181_v10, 0.0  ;;  %v185_v26 = vadd.f32 %v379_v2, %v117_v11  ;;  %v77_v3 = vld [vmem:[%s893_s0 + $0x1f8] sm:$0xff]  ;;  %v66_v7 = vld [vmem:[%s893_s0 + $0x1a0] sm:$0xff]  ;;  %v67_v11 = vld [vmem:[%s893_s0 + $0x1a8] sm:$0xff] }
  0x1e   :  { %299 = vst [vmem:[%s896_s3 + $0xa8] sm:$0xff] %v235_v47  ;;  %v121_v27 = vmul.f32 %v374_v1, %v53_v16  ;;  %v246_v29 = vmax.f32 %v182_v14, 0.0  ;;  %v186_v30 = vadd.f32 %v379_v2, %v118_v15  ;;  %v122_v31 = vmul.f32 %v374_v1, %v54_v20  ;;  %v68_v15 = vld [vmem:[%s893_s0 + $0x1b0] sm:$0xff]  ;;  %v69_v20 = vld [vmem:[%s893_s0 + $0x1b8] sm:$0xff] }
  0x1f   :  { %300 = vst [vmem:[%s896_s3 + $0xb0] sm:$0xff] %v236_v51  ;;  %v247_v33 = vmax.f32 %v183_v18, 0.0  ;;  %v187_v34 = vadd.f32 %v379_v2, %v119_v19  ;;  %v123_v35 = vmul.f32 %v374_v1, %v55_v24  ;;  %v248_v37 = vmax.f32 %v184_v22, 0.0  ;;  %v70_v24 = vld [vmem:[%s893_s0 + $0x1c0] sm:$0xff] }
  0x20   :  { %301 = vst [vmem:[%s896_s3 + $0xb8] sm:$0xff] %v237_v55  ;;  %v188_v38 = vadd.f32 %v379_v2, %v120_v23  ;;  %v124_v39 = vmul.f32 %v374_v1, %v56_v28  ;;  %v249_v41 = vmax.f32 %v185_v26, 0.0  ;;  %v189_v42 = vadd.f32 %v379_v2, %v121_v27 }
  0x21   :  { %302 = vst [vmem:[%s896_s3 + $0xc0] sm:$0xff] %v238_v59  ;;  %v125_v43 = vmul.f32 %v374_v1, %v57_v32  ;;  %v250_v45 = vmax.f32 %v186_v30, 0.0  ;;  %v190_v46 = vadd.f32 %v379_v2, %v122_v31  ;;  %v126_v47 = vmul.f32 %v374_v1, %v58_v36 }
  0x22   :  { %303 = vst [vmem:[%s896_s3 + $0xc8] sm:$0xff] %v239_v63  ;;  %v251_v49 = vmax.f32 %v187_v34, 0.0  ;;  %v191_v50 = vadd.f32 %v379_v2, %v123_v35  ;;  %v127_v51 = vmul.f32 %v374_v1, %v59_v40  ;;  %v252_v53 = vmax.f32 %v188_v38, 0.0 }
  0x23   :  { %304 = vst [vmem:[%s896_s3 + $0xd0] sm:$0xff] %v240_v5  ;;  %v192_v54 = vadd.f32 %v379_v2, %v124_v39  ;;  %v128_v55 = vmul.f32 %v374_v1, %v60_v44  ;;  %v253_v57 = vmax.f32 %v189_v42, 0.0  ;;  %v193_v58 = vadd.f32 %v379_v2, %v125_v43 }
  0x24   :  { %305 = vst [vmem:[%s896_s3 + $0xd8] sm:$0xff] %v241_v9  ;;  %v129_v59 = vmul.f32 %v374_v1, %v61_v48  ;;  %v254_v61 = vmax.f32 %v190_v46, 0.0  ;;  %v194_v62 = vadd.f32 %v379_v2, %v126_v47  ;;  %v130_v63 = vmul.f32 %v374_v1, %v62_v52 }
  0x25   :  { %306 = vst [vmem:[%s896_s3 + $0xe0] sm:$0xff] %v242_v13  ;;  %v255_v4 = vmax.f32 %v191_v50, 0.0  ;;  %v195_v5 = vadd.f32 %v379_v2, %v127_v51  ;;  %v131_v6 = vmul.f32 %v374_v1, %v63_v56  ;;  %v256_v8 = vmax.f32 %v192_v54, 0.0 }
  0x26   :  { %307 = vst [vmem:[%s896_s3 + $0xe8] sm:$0xff] %v243_v17  ;;  %v196_v9 = vadd.f32 %v379_v2, %v128_v55  ;;  %v132_v10 = vmul.f32 %v374_v1, %v64_v60  ;;  %v257_v12 = vmax.f32 %v193_v58, 0.0  ;;  %v197_v13 = vadd.f32 %v379_v2, %v129_v59 }
  0x27   :  { %308 = vst [vmem:[%s896_s3 + $0xf0] sm:$0xff] %v244_v21  ;;  %v133_v14 = vmul.f32 %v374_v1, %v65_v0  ;;  %v145_v16 = vmul.f32 %v374_v1, %v77_v3  ;;  %v258_v17 = vmax.f32 %v194_v62, 0.0  ;;  %v198_v18 = vadd.f32 %v379_v2, %v130_v63 }
  0x28   :  { %309 = vst [vmem:[%s896_s3 + $0xf8] sm:$0xff] %v245_v25  ;;  %v134_v19 = vmul.f32 %v374_v1, %v66_v7  ;;  %v259_v21 = vmax.f32 %v195_v5, 0.0  ;;  %v199_v22 = vadd.f32 %v379_v2, %v131_v6  ;;  %v135_v23 = vmul.f32 %v374_v1, %v67_v11 }
  0x29   :  { %310 = vst [vmem:[%s896_s3 + $0x100] sm:$0xff] %v246_v29  ;;  %v784_v25 = vadd.f32 %v379_v2, %v145_v16  ;;  %v260_v26 = vmax.f32 %v196_v9, 0.0  ;;  %v200_v27 = vadd.f32 %v379_v2, %v132_v10  ;;  %v136_v28 = vmul.f32 %v374_v1, %v68_v15  ;;  %v71_v29 = vld [vmem:[%s893_s0 + $0x1c8] sm:$0xff] }
  0x2a   :  { %311 = vst [vmem:[%s896_s3 + $0x108] sm:$0xff] %v247_v33  ;;  %v261_v30 = vmax.f32 %v197_v13, 0.0  ;;  %v201_v31 = vadd.f32 %v379_v2, %v133_v14  ;;  %v137_v32 = vmul.f32 %v374_v1, %v69_v20  ;;  %v72_v33 = vld [vmem:[%s893_s0 + $0x1d0] sm:$0xff]  ;;  %v262_v34 = vmax.f32 %v198_v18, 0.0 }
  0x2b   :  { %312 = vst [vmem:[%s896_s3 + $0x110] sm:$0xff] %v248_v37  ;;  %v202_v35 = vadd.f32 %v379_v2, %v134_v19  ;;  %v138_v36 = vmul.f32 %v374_v1, %v70_v24  ;;  %v73_v37 = vld [vmem:[%s893_s0 + $0x1d8] sm:$0xff]  ;;  %v263_v38 = vmax.f32 %v199_v22, 0.0  ;;  %v203_v39 = vadd.f32 %v379_v2, %v135_v23 }
  0x2c   :  { %313 = vst [vmem:[%s896_s3 + $0x118] sm:$0xff] %v249_v41  ;;  %v139_v40 = vmul.f32 %v374_v1, %v71_v29  ;;  %v74_v41 = vld [vmem:[%s893_s0 + $0x1e0] sm:$0xff]  ;;  %v264_v42 = vmax.f32 %v200_v27, 0.0  ;;  %v204_v43 = vadd.f32 %v379_v2, %v136_v28  ;;  %v140_v44 = vmul.f32 %v374_v1, %v72_v33 }
  0x2d   :  { %314 = vst [vmem:[%s896_s3 + $0x120] sm:$0xff] %v250_v45  ;;  %v75_v45 = vld [vmem:[%s893_s0 + $0x1e8] sm:$0xff]  ;;  %v265_v46 = vmax.f32 %v201_v31, 0.0  ;;  %v205_v47 = vadd.f32 %v379_v2, %v137_v32  ;;  %v141_v48 = vmul.f32 %v374_v1, %v73_v37  ;;  %v266_v50 = vmax.f32 %v202_v35, 0.0 }
  0x2e   :  { %315 = vst [vmem:[%s896_s3 + $0x128] sm:$0xff] %v251_v49  ;;  %v76_v49 = vld [vmem:[%s893_s0 + $0x1f0] sm:$0xff]  ;;  %v206_v51 = vadd.f32 %v379_v2, %v138_v36  ;;  %v142_v52 = vmul.f32 %v374_v1, %v74_v41  ;;  %v207_v54 = vadd.f32 %v379_v2, %v139_v40  ;;  %v143_v55 = vmul.f32 %v374_v1, %v75_v45 }
  0x2f   :  { %316 = vst [vmem:[%s896_s3 + $0x130] sm:$0xff] %v252_v53  ;;  %v267_v53 = vmax.f32 %v203_v39, 0.0  ;;  %v268_v56 = vmax.f32 %v204_v43, 0.0  ;;  %v144_v58 = vmul.f32 %v374_v1, %v76_v49  ;;  %v269_v59 = vmax.f32 %v205_v47, 0.0 }
  0x30   :  { %317 = vst [vmem:[%s896_s3 + $0x138] sm:$0xff] %v253_v57  ;;  %v208_v57 = vadd.f32 %v379_v2, %v140_v44  ;;  %v209_v60 = vadd.f32 %v379_v2, %v141_v48  ;;  %v210_v62 = vadd.f32 %v379_v2, %v142_v52  ;;  %v271_v63 = vmax.f32 %v207_v54, 0.0 }
  0x31   :  { %318 = vst [vmem:[%s896_s3 + $0x140] sm:$0xff] %v254_v61  ;;  %v270_v61 = vmax.f32 %v206_v51, 0.0  ;;  %v211_v1 = vadd.f32 %v379_v2, %v143_v55  ;;  %v212_v3 = vadd.f32 %v379_v2, %v144_v58  ;;  %v277_v7 = vmax.f32 %v784_v25, 0.0 }
  0x32   :  { %319 = vst [vmem:[%s896_s3 + $0x148] sm:$0xff] %v255_v4  ;;  %v272_v0 = vmax.f32 %v208_v57, 0.0  ;;  %v273_v4 = vmax.f32 %v209_v60, 0.0  ;;  %v274_v5 = vmax.f32 %v210_v62, 0.0 }
  0x33   :  { %320 = vst [vmem:[%s896_s3 + $0x150] sm:$0xff] %v256_v8  ;;  %v275_v6 = vmax.f32 %v211_v1, 0.0  ;;  %v276_v2 = vmax.f32 %v212_v3, 0.0 }
  0x34   :  { %321 = vst [vmem:[%s896_s3 + $0x158] sm:$0xff] %v257_v12 }
  0x35   :  { %322 = vst [vmem:[%s896_s3 + $0x160] sm:$0xff] %v258_v17 }
  0x36   :  { %323 = vst [vmem:[%s896_s3 + $0x168] sm:$0xff] %v259_v21 }
  0x37   :  { %324 = vst [vmem:[%s896_s3 + $0x170] sm:$0xff] %v260_v26 }
  0x38   :  { %325 = vst [vmem:[%s896_s3 + $0x178] sm:$0xff] %v261_v30 }
  0x39   :  { %326 = vst [vmem:[%s896_s3 + $0x180] sm:$0xff] %v262_v34 }
  0x3a   :  { %327 = vst [vmem:[%s896_s3 + $0x188] sm:$0xff] %v263_v38 }
  0x3b   :  { %328 = vst [vmem:[%s896_s3 + $0x190] sm:$0xff] %v264_v42 }
  0x3c   :  { %329 = vst [vmem:[%s896_s3 + $0x198] sm:$0xff] %v265_v46 }
  0x3d   :  { %330 = vst [vmem:[%s896_s3 + $0x1a0] sm:$0xff] %v266_v50 }
  0x3e   :  { %331 = vst [vmem:[%s896_s3 + $0x1a8] sm:$0xff] %v267_v53 }
  0x3f   :  { %332 = vst [vmem:[%s896_s3 + $0x1b0] sm:$0xff] %v268_v56 }
  0x40   :  { %333 = vst [vmem:[%s896_s3 + $0x1b8] sm:$0xff] %v269_v59 }
  0x41   :  { %334 = vst [vmem:[%s896_s3 + $0x1c0] sm:$0xff] %v270_v61 }
  0x42   :  { %335 = vst [vmem:[%s896_s3 + $0x1c8] sm:$0xff] %v271_v63 }
  0x43   :  { %336 = vst [vmem:[%s896_s3 + $0x1d0] sm:$0xff] %v272_v0 }
  0x44   :  { %337 = vst [vmem:[%s896_s3 + $0x1d8] sm:$0xff] %v273_v4 }
  0x45   :  { %338 = vst [vmem:[%s896_s3 + $0x1e0] sm:$0xff] %v274_v5 }
  0x46   :  { %339 = vst [vmem:[%s896_s3 + $0x1e8] sm:$0xff] %v275_v6 }
  0x47   :  { %340 = vst [vmem:[%s896_s3 + $0x1f0] sm:$0xff] %v276_v2 }
  0x48   :  { %341 = vst [vmem:[%s896_s3 + $0x1f8] sm:$0xff] %v277_v7 }

// kernel: dcgan_generator_forward.15
= control target key start
LH: loop header
LB: loop body
LE: loop exit
PB: predicated region body
PF: predicated region fallthrough
CT: control target
= control target key end

     0   :  { %vm438_vm0 = vcmask 130048   ;;  %vm1139_vm1 = vcmask 1040384   ;;  %vm1141_vm2 = vcmask 1041408   ;;  %s2441_s1 = inlined_call_operand.vmem [shape: bf16[144,128], index: 1, kind: input, shape index: {}]   ;;  %s2442_s0 = inlined_call_operand.vmem [shape: bf16[512,144], index: 0, kind: input, shape index: {}]   ;;  %s2443_s2 = inlined_call_operand.vmem [shape: f32[512,128], index: 2, kind: output, shape index: {0}]   ;;  %s2444_s3 = inlined_call_operand.vmem [shape: f32[8,128], index: 3, kind: output, shape index: {1}]  }
   0x1   :  { %v1547_v0 = vld [vmem:[%s2441_s1 + $0x38] sm:$0xff]  ;;  %v1548_v1 = vld [vmem:[%s2441_s1 + $0x40] sm:$0xff]  ;;  %v1156_v3 = vld [vmem:[%s2442_s0 + $0x8] sm:$0xf0] }
   0x2   :  { %v1476_v2 = vld [vmem:[%s2442_s0 + $0x4] sm:$0xf]  ;;  %535 = vmatpush.bf16.msra.mxu0 %v1547_v0  ;;  %711 = vmatpush.bf16.msra.mxu1 %v1548_v1  ;;  %v1546_v5 = vld [vmem:[%s2441_s1 + $0x30] sm:$0xff]  ;;  %v1545_v6 = vld [vmem:[%s2441_s1 + $0x28] sm:$0xff] }
   0x3   :  { %v1159_v4 = vor.u32 %v1476_v2, %v1156_v3  ;;  %1549 = vmatpush.bf16.msra.mxu2 %v1547_v0  ;;  %1557 = vmatpush.bf16.msra.mxu3 %v1548_v1  ;;  %v1544_v7 = vld [vmem:[%s2441_s1 + $0x20] sm:$0xff]  ;;  %v1543_v8 = vld [vmem:[%s2441_s1 + $0x18] sm:$0xff]  ;;  %v1478_v9 = vld [vmem:[%s2442_s0 + $0x14] sm:$0xf] }
   0x4   :  { %v1164_v10 = vld [vmem:[%s2442_s0 + $0x18] sm:$0xf0]  ;;  %v1542_v12 = vld [vmem:[%s2441_s1 + $0x10] sm:$0xff]  ;;  %v1541_v13 = vld [vmem:[%s2441_s1 + $0x8] sm:$0xff] }
   0x5   :  { %1444 = vmatmul.msk.bf16.vlgmr.msra.gmra.mxu1 %vm438_vm0, %v1159_v4  ;;  %v1167_v11 = vor.u32 %v1478_v9, %v1164_v10  ;;  %v1540_v14 = vld [vmem:[%s2441_s1] sm:$0xff]  ;;  %v1477_v16 = vld [vmem:[%s2442_s0 + $0x4] sm:$0xf0]  ;;  %v1172_v19 = vld [vmem:[%s2442_s0 + $0x28] sm:$0xf0] }
   0x6   :  { %536 = vmatpush.bf16.msra.mxu0 %v1546_v5  ;;  %v1154_v15 = vld [vmem:[%s2442_s0] sm:$0xf]  ;;  %v1480_v18 = vld [vmem:[%s2442_s0 + $0x24] sm:$0xf]  ;;  %v1162_v21 = vld [vmem:[%s2442_s0 + $0x10] sm:$0xf] }
   0x7   :  { %1550 = vmatpush.bf16.msra.mxu2 %v1546_v5  ;;  %v1155_v17 = vor.u32 %v1477_v16, %v1154_v15  ;;  %v1175_v20 = vor.u32 %v1480_v18, %v1172_v19  ;;  %v1479_v22 = vld [vmem:[%s2442_s0 + $0x14] sm:$0xf0]  ;;  %v1482_v24 = vld [vmem:[%s2442_s0 + $0x34] sm:$0xf]  ;;  %v1180_v25 = vld [vmem:[%s2442_s0 + $0x38] sm:$0xf0] }
   0x8   :  { %v1163_v23 = vor.u32 %v1479_v22, %v1162_v21  ;;  %v1282_v26 = vld [vmem:[%s2442_s0 + $0x100] sm:$0xf]  ;;  %v1509_v27 = vld [vmem:[%s2442_s0 + $0x104] sm:$0xf0]  ;;  %v1183_v28 = vor.u32 %v1482_v24, %v1180_v25  ;;  %v1484_v33 = vld [vmem:[%s2442_s0 + $0x44] sm:$0xf] }
   0x9   :  { %v1283_v29 = vor.u32 %v1509_v27, %v1282_v26  ;;  %v1170_v30 = vld [vmem:[%s2442_s0 + $0x20] sm:$0xf]  ;;  %v1481_v31 = vld [vmem:[%s2442_s0 + $0x24] sm:$0xf0]  ;;  %v1188_v34 = vld [vmem:[%s2442_s0 + $0x48] sm:$0xf0] }
   0xa   :  { %537 = vmatpush.bf16.msra.mxu0 %v1545_v6  ;;  %v1171_v32 = vor.u32 %v1481_v31, %v1170_v30  ;;  %v1290_v35 = vld [vmem:[%s2442_s0 + $0x110] sm:$0xf]  ;;  %v1511_v36 = vld [vmem:[%s2442_s0 + $0x114] sm:$0xf0]  ;;  %v1510_v37 = vld [vmem:[%s2442_s0 + $0x114] sm:$0xf]  ;;  %v1191_v38 = vor.u32 %v1484_v33, %v1188_v34 }
   0xb   :  { %1551 = vmatpush.bf16.msra.mxu2 %v1545_v6  ;;  %v1291_v39 = vor.u32 %v1511_v36, %v1290_v35  ;;  %v1292_v40 = vld [vmem:[%s2442_s0 + $0x118] sm:$0xf0]  ;;  %v1178_v42 = vld [vmem:[%s2442_s0 + $0x30] sm:$0xf]  ;;  %v1483_v43 = vld [vmem:[%s2442_s0 + $0x34] sm:$0xf0] }
   0xc   :  { %v1295_v41 = vor.u32 %v1510_v37, %v1292_v40  ;;  %v1179_v44 = vor.u32 %v1483_v43, %v1178_v42  ;;  %v1486_v45 = vld [vmem:[%s2442_s0 + $0x54] sm:$0xf]  ;;  %v1196_v46 = vld [vmem:[%s2442_s0 + $0x58] sm:$0xf0]  ;;  %v1298_v47 = vld [vmem:[%s2442_s0 + $0x120] sm:$0xf] }
   0xd   :  { %v1513_v48 = vld [vmem:[%s2442_s0 + $0x124] sm:$0xf0]  ;;  %v1512_v49 = vld [vmem:[%s2442_s0 + $0x124] sm:$0xf]  ;;  %v1199_v50 = vor.u32 %v1486_v45, %v1196_v46  ;;  %v1300_v52 = vld [vmem:[%s2442_s0 + $0x128] sm:$0xf0] }
   0xe   :  { %538 = vmatpush.bf16.msra.mxu0 %v1544_v7  ;;  %1461 = vmatmul.msk.bf16.vlgmr.msra.gmra.mxu3 %vm438_vm0, %v1295_v41  ;;  %v1299_v51 = vor.u32 %v1513_v48, %v1298_v47  ;;  %v1303_v53 = vor.u32 %v1512_v49, %v1300_v52  ;;  %v1186_v54 = vld [vmem:[%s2442_s0 + $0x40] sm:$0xf]  ;;  %v1485_v55 = vld [vmem:[%s2442_s0 + $0x44] sm:$0xf0]  ;;  %v1488_v57 = vld [vmem:[%s2442_s0 + $0x64] sm:$0xf] }
   0xf   :  { %1552 = vmatpush.bf16.msra.mxu2 %v1544_v7  ;;  %v1187_v56 = vor.u32 %v1485_v55, %v1186_v54  ;;  %v1204_v58 = vld [vmem:[%s2442_s0 + $0x68] sm:$0xf0]  ;;  %v1306_v59 = vld [vmem:[%s2442_s0 + $0x130] sm:$0xf]  ;;  %v1515_v60 = vld [vmem:[%s2442_s0 + $0x134] sm:$0xf0] }
  0x10   :  { %v1514_v61 = vld [vmem:[%s2442_s0 + $0x134] sm:$0xf]  ;;  %v1207_v62 = vor.u32 %v1488_v57, %v1204_v58  ;;  %v1307_v63 = vor.u32 %v1515_v60, %v1306_v59  ;;  %v1308_v0 = vld [vmem:[%s2442_s0 + $0x138] sm:$0xf0]  ;;  %v1194_v2 = vld [vmem:[%s2442_s0 + $0x50] sm:$0xf] }
  0x11   :  { %v1311_v1 = vor.u32 %v1514_v61, %v1308_v0  ;;  %v1487_v3 = vld [vmem:[%s2442_s0 + $0x54] sm:$0xf0]  ;;  %v1490_v5 = vld [vmem:[%s2442_s0 + $0x74] sm:$0xf]  ;;  %v1212_v6 = vld [vmem:[%s2442_s0 + $0x78] sm:$0xf0] }
  0x12   :  { %539 = vmatpush.bf16.msra.mxu0 %v1543_v8  ;;  %v1195_v4 = vor.u32 %v1487_v3, %v1194_v2  ;;  %v1314_v7 = vld [vmem:[%s2442_s0 + $0x140] sm:$0xf]  ;;  %v1516_v9 = vld [vmem:[%s2442_s0 + $0x144] sm:$0xf]  ;;  %v1215_v10 = vor.u32 %v1490_v5, %v1212_v6  ;;  %v1489_v15 = vld [vmem:[%s2442_s0 + $0x64] sm:$0xf0] }
  0x13   :  { %1553 = vmatpush.bf16.msra.mxu2 %v1543_v8  ;;  %v1517_v8 = vld [vmem:[%s2442_s0 + $0x144] sm:$0xf0]  ;;  %v1220_v18 = vld [vmem:[%s2442_s0 + $0x88] sm:$0xf0]  ;;  %v1322_v19 = vld [vmem:[%s2442_s0 + $0x150] sm:$0xf] }
  0x14   :  { %v1518_v21 = vld [vmem:[%s2442_s0 + $0x154] sm:$0xf]  ;;  %v1324_v24 = vld [vmem:[%s2442_s0 + $0x158] sm:$0xf0]  ;;  %v1330_v33 = vld [vmem:[%s2442_s0 + $0x160] sm:$0xf] }
  0x15   :  { %1445 = vmatmul.msk.bf16.gmra.mxu1 %vm438_vm0, %v1167_v11  ;;  %v1315_v11 = vor.u32 %v1517_v8, %v1314_v7  ;;  %v1327_v26 = vor.u32 %v1518_v21, %v1324_v24  ;;  %v1494_v31 = vld [vmem:[%s2442_s0 + $0x94] sm:$0xf]  ;;  %v1521_v34 = vld [vmem:[%s2442_s0 + $0x164] sm:$0xf0]  ;;  %v1520_v35 = vld [vmem:[%s2442_s0 + $0x164] sm:$0xf] }
  0x16   :  { %540 = vmatpush.bf16.msra.mxu0 %v1542_v12  ;;  %v1331_v37 = vor.u32 %v1521_v34, %v1330_v33  ;;  %v1218_v42 = vld [vmem:[%s2442_s0 + $0x80] sm:$0xf]  ;;  %v1493_v43 = vld [vmem:[%s2442_s0 + $0x84] sm:$0xf0]  ;;  %v1496_v46 = vld [vmem:[%s2442_s0 + $0xa4] sm:$0xf] }
  0x17   :  { %1554 = vmatpush.bf16.msra.mxu2 %v1542_v12  ;;  %v1316_v12 = vld [vmem:[%s2442_s0 + $0x148] sm:$0xf0]  ;;  %v1338_v49 = vld [vmem:[%s2442_s0 + $0x170] sm:$0xf]  ;;  %v1340_v54 = vld [vmem:[%s2442_s0 + $0x178] sm:$0xf0] }
  0x18   :  { %v1236_v47 = vld [vmem:[%s2442_s0 + $0xa8] sm:$0xf0]  ;;  %v1495_v0 = vld [vmem:[%s2442_s0 + $0x94] sm:$0xf0]  ;;  %v1498_v3 = vld [vmem:[%s2442_s0 + $0xb4] sm:$0xf] }
  0x19   :  { %v1239_v52 = vor.u32 %v1496_v46, %v1236_v47  ;;  %v1346_v8 = vld [vmem:[%s2442_s0 + $0x180] sm:$0xf]  ;;  %v1354_v34 = vld [vmem:[%s2442_s0 + $0x190] sm:$0xf] }
  0x1a   :  { %541 = vmatpush.bf16.msra.mxu0 %v1541_v13  ;;  %v1234_v24 = vld [vmem:[%s2442_s0 + $0xa0] sm:$0xf] }
  0x1b   :  { %1555 = vmatpush.bf16.msra.mxu2 %v1541_v13  ;;  %v1319_v13 = vor.u32 %v1516_v9, %v1316_v12  ;;  %v1525_v9 = vld [vmem:[%s2442_s0 + $0x184] sm:$0xf0] }
  0x1e   :  { %542 = vmatpush.bf16.msra.mxu0 %v1540_v14  ;;  %1462 = vmatmul.msk.bf16.gmra.mxu3 %vm438_vm0, %v1303_v53 }
  0x1f   :  { %1556 = vmatpush.bf16.msra.mxu2 %v1540_v14  ;;  %v1202_v14 = vld [vmem:[%s2442_s0 + $0x60] sm:$0xf] }
  0x20   :  { %v1203_v16 = vor.u32 %v1489_v15, %v1202_v14  ;;  %v1348_v14 = vld [vmem:[%s2442_s0 + $0x188] sm:$0xf0] }
  0x21   :  { %543 = vmatmul.bf16.vlgmr.msra.gmra.mxu0 %v1155_v17  ;;  %v1492_v17 = vld [vmem:[%s2442_s0 + $0x84] sm:$0xf] }
  0x22   :  { %623 = vmatmul.bf16.vlgmr.msra.gmra.mxu2 %v1283_v29  ;;  %v1223_v22 = vor.u32 %v1492_v17, %v1220_v18  ;;  %v1491_v29 = vld [vmem:[%s2442_s0 + $0x74] sm:$0xf0] }
  0x25   :  { %1446 = vmatmul.msk.bf16.gmra.mxu1 %vm438_vm0, %v1175_v20  ;;  %v1519_v20 = vld [vmem:[%s2442_s0 + $0x154] sm:$0xf0] }
  0x2e   :  { %1463 = vmatmul.msk.bf16.gmra.mxu3 %vm438_vm0, %v1311_v1 }
  0x31   :  { %548 = vmatmul.bf16.gmra.mxu0 %v1163_v23  ;;  %v1323_v23 = vor.u32 %v1519_v20, %v1322_v19 }
  0x32   :  { %628 = vmatmul.bf16.gmra.mxu2 %v1291_v39 }
  0x35   :  { %1447 = vmatmul.msk.bf16.gmra.mxu1 %vm438_vm0, %v1183_v28  ;;  %v1210_v28 = vld [vmem:[%s2442_s0 + $0x70] sm:$0xf] }
  0x36   :  { %v1211_v30 = vor.u32 %v1491_v29, %v1210_v28  ;;  %v1500_v28 = vld [vmem:[%s2442_s0 + $0xc4] sm:$0xf]  ;;  %v1252_v29 = vld [vmem:[%s2442_s0 + $0xc8] sm:$0xf0] }
  0x37   :  { %v1255_v33 = vor.u32 %v1500_v28, %v1252_v29 }
  0x3e   :  { %1464 = vmatmul.msk.bf16.gmra.mxu3 %vm438_vm0, %v1319_v13  ;;  %v1347_v13 = vor.u32 %v1525_v9, %v1346_v8 }
  0x41   :  { %553 = vmatmul.bf16.gmra.mxu0 %v1171_v32  ;;  %v1228_v32 = vld [vmem:[%s2442_s0 + $0x98] sm:$0xf0] }
  0x42   :  { %633 = vmatmul.bf16.gmra.mxu2 %v1299_v51  ;;  %v1231_v36 = vor.u32 %v1494_v31, %v1228_v32  ;;  %v1522_v51 = vld [vmem:[%s2442_s0 + $0x174] sm:$0xf] }
  0x45   :  { %1448 = vmatmul.msk.bf16.gmra.mxu1 %vm438_vm0, %v1191_v38  ;;  %v1332_v38 = vld [vmem:[%s2442_s0 + $0x168] sm:$0xf0] }
  0x46   :  { %v1335_v40 = vor.u32 %v1520_v35, %v1332_v38  ;;  %v1527_v35 = vld [vmem:[%s2442_s0 + $0x194] sm:$0xf0] }
  0x4e   :  { %1465 = vmatmul.msk.bf16.gmra.mxu3 %vm438_vm0, %v1327_v26 }
  0x51   :  { %558 = vmatmul.bf16.gmra.mxu0 %v1179_v44  ;;  %v1219_v44 = vor.u32 %v1493_v43, %v1218_v42 }
  0x52   :  { %638 = vmatmul.bf16.gmra.mxu2 %v1307_v63  ;;  %v1226_v63 = vld [vmem:[%s2442_s0 + $0x90] sm:$0xf] }
  0x53   :  { %v1227_v2 = vor.u32 %v1495_v0, %v1226_v63  ;;  %v1362_v0 = vld [vmem:[%s2442_s0 + $0x1a0] sm:$0xf] }
  0x55   :  { %1449 = vmatmul.msk.bf16.gmra.mxu1 %vm438_vm0, %v1199_v50  ;;  %v1523_v50 = vld [vmem:[%s2442_s0 + $0x174] sm:$0xf0] }
  0x56   :  { %v1339_v53 = vor.u32 %v1523_v50, %v1338_v49 }
  0x5e   :  { %1466 = vmatmul.msk.bf16.gmra.mxu3 %vm438_vm0, %v1335_v40  ;;  %v1356_v40 = vld [vmem:[%s2442_s0 + $0x198] sm:$0xf0] }
  0x61   :  { %563 = vmatmul.bf16.gmra.mxu0 %v1187_v56  ;;  %v1343_v56 = vor.u32 %v1522_v51, %v1340_v54  ;;  %v1242_v51 = vld [vmem:[%s2442_s0 + $0xb0] sm:$0xf] }
  0x62   :  { %643 = vmatmul.bf16.gmra.mxu2 %v1315_v11 }
  0x65   :  { %1450 = vmatmul.msk.bf16.gmra.mxu1 %vm438_vm0, %v1207_v62 }
  0x6e   :  { %1467 = vmatmul.msk.bf16.gmra.mxu3 %vm438_vm0, %v1343_v56  ;;  %v1502_v56 = vld [vmem:[%s2442_s0 + $0xd4] sm:$0xf] }
  0x71   :  { %568 = vmatmul.bf16.gmra.mxu0 %v1195_v4  ;;  %v1244_v4 = vld [vmem:[%s2442_s0 + $0xb8] sm:$0xf0] }
  0x72   :  { %648 = vmatmul.bf16.gmra.mxu2 %v1323_v23  ;;  %v1247_v7 = vor.u32 %v1498_v3, %v1244_v4 }
  0x75   :  { %1451 = vmatmul.msk.bf16.gmra.mxu1 %vm438_vm0, %v1215_v10  ;;  %v1524_v10 = vld [vmem:[%s2442_s0 + $0x184] sm:$0xf] }
  0x81   :  { %573 = vmatmul.bf16.gmra.mxu0 %v1203_v16  ;;  %v1351_v16 = vor.u32 %v1524_v10, %v1348_v14 }
  0x82   :  { %v713_v25 = vpop.f32.mrf.mxu1  ;;  %653 = vmatmul.bf16.gmra.mxu2 %v1331_v37 }
  0x83   :  { %1468 = vmatmul.msk.bf16.gmra.mxu3 %vm438_vm0, %v1351_v16 }
  0x85   :  { %1452 = vmatmul.msk.bf16.gmra.mxu1 %vm438_vm0, %v1223_v22 }
  0x8a   :  { %v715_v27 = vpop.f32.mrf.mxu1 }
  0x91   :  { %578 = vmatmul.bf16.gmra.mxu0 %v1211_v30  ;;  %v798_v47 = vpop.f32.mrf.mxu3 }
  0x92   :  { %v718_v39 = vpop.f32.mrf.mxu1  ;;  %658 = vmatmul.bf16.gmra.mxu2 %v1339_v53 }
  0x95   :  { %1453 = vmatmul.msk.bf16.gmra.mxu1 %vm438_vm0, %v1231_v36  ;;  %v1526_v36 = vld [vmem:[%s2442_s0 + $0x194] sm:$0xf] }
  0x96   :  { %v1359_v42 = vor.u32 %v1526_v36, %v1356_v40 }
  0x98   :  { %1469 = vmatmul.msk.bf16.gmra.mxu3 %vm438_vm0, %v1359_v42 }
  0x9a   :  { %v720_v41 = vpop.f32.mrf.mxu1 }
  0x9e   :  { %v544_v45 = vpop.f32.mrf.mxu0 }
  0x9f   :  { %v714_v48 = vadd.f32 %v713_v25, %v544_v45  ;;  %v1497_v25 = vld [vmem:[%s2442_s0 + $0xa4] sm:$0xf0] }
  0xa1   :  { %873 = vst [vmem:[%s2443_s2] sm:$0xff] %v714_v48  ;;  %583 = vmatmul.bf16.gmra.mxu0 %v1219_v44  ;;  %v1006_v59 = vmul.f32 %v714_v48, %v714_v48 }
  0xa2   :  { %v723_v55 = vpop.f32.mrf.mxu1  ;;  %663 = vmatmul.bf16.gmra.mxu2 %v1347_v13 }
  0xa5   :  { %1454 = vmatmul.msk.bf16.gmra.mxu1 %vm438_vm0, %v1239_v52  ;;  %v1868_v19 = vpop.f32.mrf.mxu2  ;;  %v1499_v52 = vld [vmem:[%s2442_s0 + $0xb4] sm:$0xf0] }
  0xa6   :  { %v546_v57 = vpop.f32.mrf.mxu0 }
  0xa7   :  { %v716_v58 = vadd.f32 %v715_v27, %v546_v57  ;;  %v1235_v27 = vor.u32 %v1497_v25, %v1234_v24  ;;  %v1260_v57 = vld [vmem:[%s2442_s0 + $0xd8] sm:$0xf0]  ;;  %v1268_v24 = vld [vmem:[%s2442_s0 + $0xe8] sm:$0xf0] }
  0xa9   :  { %874 = vst [vmem:[%s2443_s2 + $0x8] sm:$0xff] %v716_v58  ;;  %v937_v60 = vadd.f32 %v716_v58, %v714_v48  ;;  %v1007_v61 = vmul.f32 %v716_v58, %v716_v58 }
  0xaa   :  { %v725_v62 = vpop.f32.mrf.mxu1 }
  0xab   :  { %v1070_v1 = vadd.f32 %v1007_v61, %v1006_v59  ;;  %v800_v61 = vpop.f32.mrf.mxu3 }
  0xad   :  { %v1887_v31 = vpop.f32.mrf.mxu2 }
  0xae   :  { %v549_v5 = vpop.f32.mrf.mxu0 }
  0xaf   :  { %v719_v6 = vadd.f32 %v718_v39, %v549_v5  ;;  %v1355_v39 = vor.u32 %v1527_v35, %v1354_v34  ;;  %v1530_v34 = vld [vmem:[%s2442_s0 + $0x1b4] sm:$0xf] }
  0xb1   :  { %875 = vst [vmem:[%s2443_s2 + $0x10] sm:$0xff] %v719_v6  ;;  %v938_v11 = vadd.f32 %v937_v60, %v719_v6  ;;  %v1008_v12 = vmul.f32 %v719_v6, %v719_v6  ;;  %588 = vmatmul.bf16.gmra.mxu0 %v1227_v2  ;;  %v1528_v2 = vld [vmem:[%s2442_s0 + $0x1a4] sm:$0xf]  ;;  %v1364_v6 = vld [vmem:[%s2442_s0 + $0x1a8] sm:$0xf0] }
  0xb2   :  { %v728_v15 = vpop.f32.mrf.mxu1  ;;  %668 = vmatmul.bf16.gmra.mxu2 %v1355_v39  ;;  %v1367_v8 = vor.u32 %v1528_v2, %v1364_v6  ;;  %v1532_v2 = vld [vmem:[%s2442_s0 + $0x1c4] sm:$0xf]  ;;  %v1380_v6 = vld [vmem:[%s2442_s0 + $0x1c8] sm:$0xf0] }
  0xb3   :  { %v1071_v17 = vadd.f32 %v1070_v1, %v1008_v12  ;;  %v1529_v1 = vld [vmem:[%s2442_s0 + $0x1a4] sm:$0xf0]  ;;  %v803_v13 = vpop.f32.mrf.mxu3 }
  0xb4   :  { %v1363_v5 = vor.u32 %v1529_v1, %v1362_v0  ;;  %1470 = vmatmul.msk.bf16.gmra.mxu3 %vm438_vm0, %v1367_v8  ;;  %v1378_v0 = vld [vmem:[%s2442_s0 + $0x1c0] sm:$0xf]  ;;  %v1533_v1 = vld [vmem:[%s2442_s0 + $0x1c4] sm:$0xf0]  ;;  %v1383_v8 = vor.u32 %v1532_v2, %v1380_v6 }
  0xb5   :  { %1455 = vmatmul.msk.bf16.gmra.mxu1 %vm438_vm0, %v1247_v7  ;;  %v629_v45 = vpop.f32.mrf.mxu2  ;;  %v1537_v2 = vld [vmem:[%s2442_s0 + $0x1e4] sm:$0xf0] }
  0xb6   :  { %v551_v18 = vpop.f32.mrf.mxu0  ;;  %v1917_v54 = vadd.f32 %v798_v47, %v629_v45 }
  0xb7   :  { %v721_v20 = vadd.f32 %v720_v41, %v551_v18  ;;  %v1501_v18 = vld [vmem:[%s2442_s0 + $0xc4] sm:$0xf0] }
  0xb8   :  { %907 = vst [vmem:[%s2443_s2 + $0x110] sm:$0xff] %v1917_v54 }
  0xb9   :  { %876 = vst [vmem:[%s2443_s2 + $0x18] sm:$0xff] %v721_v20  ;;  %v939_v21 = vadd.f32 %v938_v11, %v721_v20  ;;  %v1009_v22 = vmul.f32 %v721_v20, %v721_v20 }
  0xba   :  { %v1873_v23 = vpop.f32.mrf.mxu1 }
  0xbb   :  { %v1072_v26 = vadd.f32 %v1071_v17, %v1009_v22  ;;  %v1250_v17 = vld [vmem:[%s2442_s0 + $0xc0] sm:$0xf]  ;;  %v805_v28 = vpop.f32.mrf.mxu3 }
  0xbc   :  { %v1251_v22 = vor.u32 %v1501_v18, %v1250_v17  ;;  %v1266_v18 = vld [vmem:[%s2442_s0 + $0xe0] sm:$0xf] }
  0xbd   :  { %v631_v59 = vpop.f32.mrf.mxu2 }
  0xbe   :  { %v554_v30 = vpop.f32.mrf.mxu0  ;;  %v1929_v63 = vadd.f32 %v800_v61, %v631_v59 }
  0xbf   :  { %v724_v32 = vadd.f32 %v723_v55, %v554_v30  ;;  %v1243_v55 = vor.u32 %v1499_v52, %v1242_v51  ;;  %v1503_v51 = vld [vmem:[%s2442_s0 + $0xd4] sm:$0xf0] }
  0xc0   :  { %908 = vst [vmem:[%s2443_s2 + $0x118] sm:$0xff] %v1929_v63 }
  0xc1   :  { %877 = vst [vmem:[%s2443_s2 + $0x20] sm:$0xff] %v724_v32  ;;  %v940_v37 = vadd.f32 %v939_v21, %v724_v32  ;;  %v1010_v38 = vmul.f32 %v724_v32, %v724_v32  ;;  %593 = vmatmul.bf16.gmra.mxu0 %v1235_v27  ;;  %v1370_v32 = vld [vmem:[%s2442_s0 + $0x1b0] sm:$0xf] }
  0xc2   :  { %v733_v41 = vpop.f32.mrf.mxu1  ;;  %673 = vmatmul.bf16.gmra.mxu2 %v1363_v5  ;;  %v1379_v5 = vor.u32 %v1533_v1, %v1378_v0  ;;  %v1394_v1 = vld [vmem:[%s2442_s0 + $0x1e0] sm:$0xf] }
  0xc3   :  { %v1073_v43 = vadd.f32 %v1072_v26, %v1010_v38  ;;  %v1372_v38 = vld [vmem:[%s2442_s0 + $0x1b8] sm:$0xf0]  ;;  %v808_v45 = vpop.f32.mrf.mxu3  ;;  %v1395_v6 = vor.u32 %v1537_v2, %v1394_v1 }
  0xc4   :  { %v1375_v40 = vor.u32 %v1530_v34, %v1372_v38  ;;  %v1386_v34 = vld [vmem:[%s2442_s0 + $0x1d0] sm:$0xf] }
  0xc5   :  { %1456 = vmatmul.msk.bf16.gmra.mxu1 %vm438_vm0, %v1255_v33  ;;  %v634_v11 = vpop.f32.mrf.mxu2  ;;  %v1531_v33 = vld [vmem:[%s2442_s0 + $0x1b4] sm:$0xf0] }
  0xc6   :  { %v556_v44 = vpop.f32.mrf.mxu0  ;;  %v1966_v21 = vadd.f32 %v803_v13, %v634_v11  ;;  %1471 = vmatmul.msk.bf16.gmra.mxu3 %vm438_vm0, %v1375_v40  ;;  %v1388_v40 = vld [vmem:[%s2442_s0 + $0x1d8] sm:$0xf0] }
  0xc7   :  { %v726_v46 = vadd.f32 %v725_v62, %v556_v44  ;;  %v1263_v62 = vor.u32 %v1502_v56, %v1260_v57  ;;  %v1276_v56 = vld [vmem:[%s2442_s0 + $0xf8] sm:$0xf0] }
  0xc8   :  { %909 = vst [vmem:[%s2443_s2 + $0x120] sm:$0xff] %v1966_v21 }
  0xc9   :  { %878 = vst [vmem:[%s2443_s2 + $0x28] sm:$0xff] %v726_v46  ;;  %v941_v48 = vadd.f32 %v940_v37, %v726_v46  ;;  %v1011_v49 = vmul.f32 %v726_v46, %v726_v46  ;;  %v1371_v37 = vor.u32 %v1531_v33, %v1370_v32 }
  0xca   :  { %v1909_v50 = vpop.f32.mrf.mxu1 }
  0xcb   :  { %v1074_v53 = vadd.f32 %v1073_v43, %v1011_v49  ;;  %v1258_v49 = vld [vmem:[%s2442_s0 + $0xd0] sm:$0xf] }
  0xcd   :  { %v636_v26 = vpop.f32.mrf.mxu2 }
  0xce   :  { %v559_v58 = vpop.f32.mrf.mxu0  ;;  %v1978_v30 = vadd.f32 %v805_v28, %v636_v26 }
  0xcf   :  { %v729_v60 = vadd.f32 %v728_v15, %v559_v58 }
  0xd0   :  { %910 = vst [vmem:[%s2443_s2 + $0x128] sm:$0xff] %v1978_v30 }
  0xd1   :  { %879 = vst [vmem:[%s2443_s2 + $0x30] sm:$0xff] %v729_v60  ;;  %v942_v3 = vadd.f32 %v941_v48, %v729_v60  ;;  %v1012_v4 = vmul.f32 %v729_v60, %v729_v60  ;;  %598 = vmatmul.bf16.gmra.mxu0 %v1243_v55  ;;  %v1506_v55 = vld [vmem:[%s2442_s0 + $0xf4] sm:$0xf]  ;;  %v810_v60 = vpop.f32.mrf.mxu3 }
  0xd2   :  { %v1946_v7 = vpop.f32.mrf.mxu1  ;;  %678 = vmatmul.bf16.gmra.mxu2 %v1371_v37  ;;  %v1279_v61 = vor.u32 %v1506_v55, %v1276_v56  ;;  %v1507_v55 = vld [vmem:[%s2442_s0 + $0xf4] sm:$0xf0] }
  0xd3   :  { %v1075_v9 = vadd.f32 %v1074_v53, %v1012_v4 }
  0xd5   :  { %1457 = vmatmul.msk.bf16.gmra.mxu1 %vm438_vm0, %v1263_v62  ;;  %v639_v43 = vpop.f32.mrf.mxu2 }
  0xd6   :  { %v561_v10 = vpop.f32.mrf.mxu0  ;;  %v2015_v53 = vadd.f32 %v808_v45, %v639_v43  ;;  %1472 = vmatmul.msk.bf16.gmra.mxu3 %vm438_vm0, %v1383_v8 }
  0xd7   :  { %v731_v12 = vadd.f32 %v1873_v23, %v561_v10  ;;  %v1504_v23 = vld [vmem:[%s2442_s0 + $0xe4] sm:$0xf] }
  0xd8   :  { %v1271_v29 = vor.u32 %v1504_v23, %v1268_v24  ;;  %911 = vst [vmem:[%s2443_s2 + $0x130] sm:$0xff] %v2015_v53  ;;  %v1508_v24 = vld [vmem:[%s2442_s0 + $0x104] sm:$0xf] }
  0xd9   :  { %880 = vst [vmem:[%s2443_s2 + $0x38] sm:$0xff] %v731_v12  ;;  %v943_v14 = vadd.f32 %v942_v3, %v731_v12  ;;  %v1013_v15 = vmul.f32 %v731_v12, %v731_v12  ;;  %v813_v13 = vpop.f32.mrf.mxu3 }
  0xda   :  { %v1958_v16 = vpop.f32.mrf.mxu1 }
  0xdb   :  { %v1076_v20 = vadd.f32 %v1075_v9, %v1013_v15 }
  0xdd   :  { %v641_v58 = vpop.f32.mrf.mxu2 }
  0xde   :  { %v564_v25 = vpop.f32.mrf.mxu0  ;;  %v2028_v62 = vadd.f32 %v810_v60, %v641_v58 }
  0xdf   :  { %v734_v27 = vadd.f32 %v733_v41, %v564_v25  ;;  %v1284_v25 = vld [vmem:[%s2442_s0 + $0x108] sm:$0xf0] }
  0xe0   :  { %912 = vst [vmem:[%s2443_s2 + $0x138] sm:$0xff] %v2028_v62  ;;  %v1287_v32 = vor.u32 %v1508_v24, %v1284_v25 }
  0xe1   :  { %881 = vst [vmem:[%s2443_s2 + $0x40] sm:$0xff] %v734_v27  ;;  %v944_v35 = vadd.f32 %v943_v14, %v734_v27  ;;  %v1014_v36 = vmul.f32 %v734_v27, %v734_v27  ;;  %603 = vmatmul.bf16.gmra.mxu0 %v1251_v22 }
  0xe2   :  { %v1995_v39 = vpop.f32.mrf.mxu1  ;;  %683 = vmatmul.bf16.gmra.mxu2 %v1379_v5 }
  0xe3   :  { %v1077_v41 = vadd.f32 %v1076_v20, %v1014_v36  ;;  %v1505_v20 = vld [vmem:[%s2442_s0 + $0xe4] sm:$0xf0]  ;;  %v1534_v36 = vld [vmem:[%s2442_s0 + $0x1d4] sm:$0xf] }
  0xe5   :  { %1458 = vmatmul.msk.bf16.gmra.mxu1 %vm438_vm0, %v1271_v29  ;;  %v644_v11 = vpop.f32.mrf.mxu2  ;;  %v815_v29 = vpop.f32.mrf.mxu3 }
  0xe6   :  { %v566_v42 = vpop.f32.mrf.mxu0  ;;  %v2063_v23 = vadd.f32 %v813_v13, %v644_v11 }
  0xe7   :  { %v736_v44 = vadd.f32 %v1909_v50, %v566_v42  ;;  %v1259_v50 = vor.u32 %v1503_v51, %v1258_v49  ;;  %v1391_v42 = vor.u32 %v1534_v36, %v1388_v40 }
  0xe8   :  { %913 = vst [vmem:[%s2443_s2 + $0x140] sm:$0xff] %v2063_v23 }
  0xe9   :  { %882 = vst [vmem:[%s2443_s2 + $0x48] sm:$0xff] %v736_v44  ;;  %v945_v46 = vadd.f32 %v944_v35, %v736_v44  ;;  %v1015_v47 = vmul.f32 %v736_v44, %v736_v44  ;;  %v1535_v35 = vld [vmem:[%s2442_s0 + $0x1d4] sm:$0xf0]  ;;  %1473 = vmatmul.msk.bf16.gmra.mxu3 %vm438_vm0, %v1391_v42 }
  0xea   :  { %v2007_v48 = vpop.f32.mrf.mxu1 }
  0xeb   :  { %v1078_v52 = vadd.f32 %v1077_v41, %v1015_v47 }
  0xed   :  { %v646_v27 = vpop.f32.mrf.mxu2  ;;  %v818_v47 = vpop.f32.mrf.mxu3 }
  0xee   :  { %v569_v57 = vpop.f32.mrf.mxu0  ;;  %v2076_v33 = vadd.f32 %v815_v29, %v646_v27  ;;  %v1539_v29 = vld [vmem:[%s2442_s0 + $0x1f4] sm:$0xf0] }
  0xef   :  { %v739_v59 = vadd.f32 %v1946_v7, %v569_v57 }
  0xf0   :  { %914 = vst [vmem:[%s2443_s2 + $0x148] sm:$0xff] %v2076_v33 }
  0xf1   :  { %883 = vst [vmem:[%s2443_s2 + $0x50] sm:$0xff] %v739_v59  ;;  %v946_v3 = vadd.f32 %v945_v46, %v739_v59  ;;  %v1016_v4 = vmul.f32 %v739_v59, %v739_v59  ;;  %608 = vmatmul.bf16.gmra.mxu0 %v1259_v50  ;;  %v1274_v50 = vld [vmem:[%s2442_s0 + $0xf0] sm:$0xf] }
  0xf2   :  { %v748_v7 = vpop.f32.mrf.mxu1 }
  0xf3   :  { %v1079_v9 = vadd.f32 %v1078_v52, %v1016_v4 }
  0xf5   :  { %1459 = vmatmul.msk.bf16.gmra.mxu1 %vm438_vm0, %v1279_v61  ;;  %v649_v45 = vpop.f32.mrf.mxu2  ;;  %v820_v61 = vpop.f32.mrf.mxu3 }
  0xf6   :  { %v571_v10 = vpop.f32.mrf.mxu0  ;;  %v2109_v57 = vadd.f32 %v818_v47, %v649_v45 }
  0xf7   :  { %v741_v12 = vadd.f32 %v1958_v16, %v571_v10  ;;  %v1267_v16 = vor.u32 %v1505_v20, %v1266_v18 }
  0xf8   :  { %915 = vst [vmem:[%s2443_s2 + $0x150] sm:$0xff] %v2109_v57 }
  0xf9   :  { %884 = vst [vmem:[%s2443_s2 + $0x58] sm:$0xff] %v741_v12  ;;  %v947_v14 = vadd.f32 %v946_v3, %v741_v12  ;;  %v1017_v15 = vmul.f32 %v741_v12, %v741_v12  ;;  %v1536_v3 = vld [vmem:[%s2442_s0 + $0x1e4] sm:$0xf] }
  0xfa   :  { %v2055_v17 = vpop.f32.mrf.mxu1 }
  0xfb   :  { %v1080_v22 = vadd.f32 %v1079_v9, %v1017_v15 }
  0xfd   :  { %v651_v59 = vpop.f32.mrf.mxu2 }
  0xfe   :  { %v574_v26 = vpop.f32.mrf.mxu0  ;;  %v2115_v0 = vadd.f32 %v820_v61, %v651_v59 }
  0xff   :  { %v744_v28 = vadd.f32 %v1995_v39, %v574_v26  ;;  %v1387_v39 = vor.u32 %v1535_v35, %v1386_v34 }
 0x100   :  { %916 = vst [vmem:[%s2443_s2 + $0x158] sm:$0xff] %v2115_v0 }
 0x101   :  { %885 = vst [vmem:[%s2443_s2 + $0x60] sm:$0xff] %v744_v28  ;;  %v948_v37 = vadd.f32 %v947_v14, %v744_v28  ;;  %v1018_v38 = vmul.f32 %v744_v28, %v744_v28  ;;  %613 = vmatmul.bf16.gmra.mxu0 %v1267_v16  ;;  %688 = vmatmul.bf16.gmra.mxu2 %v1387_v39  ;;  %v823_v14 = vpop.f32.mrf.mxu3  ;;  %v1402_v28 = vld [vmem:[%s2442_s0 + $0x1f0] sm:$0xf] }
 0x102   :  { %v753_v41 = vpop.f32.mrf.mxu1  ;;  %v1403_v36 = vor.u32 %v1539_v29, %v1402_v28 }
 0x103   :  { %v1081_v43 = vadd.f32 %v1080_v22, %v1018_v38 }
 0x105   :  { %1460 = vmatmul.msk.bf16.gmra.mxu1 %vm438_vm0, %v1287_v32  ;;  %v654_v12 = vpop.f32.mrf.mxu2  ;;  %v1538_v32 = vld [vmem:[%s2442_s0 + $0x1f4] sm:$0xf] }
 0x106   :  { %v576_v44 = vpop.f32.mrf.mxu0  ;;  %v2141_v16 = vadd.f32 %v823_v14, %v654_v12 }
 0x107   :  { %v746_v46 = vadd.f32 %v2007_v48, %v576_v44  ;;  %v1275_v48 = vor.u32 %v1507_v55, %v1274_v50 }
 0x108   :  { %917 = vst [vmem:[%s2443_s2 + $0x160] sm:$0xff] %v2141_v16 }
 0x109   :  { %886 = vst [vmem:[%s2443_s2 + $0x68] sm:$0xff] %v746_v46  ;;  %v949_v49 = vadd.f32 %v948_v37, %v746_v46  ;;  %v1019_v51 = vmul.f32 %v746_v46, %v746_v46  ;;  %v1404_v37 = vld [vmem:[%s2442_s0 + $0x1f8] sm:$0xf0] }
 0x10a   :  { %v755_v52 = vpop.f32.mrf.mxu1  ;;  %v1407_v39 = vor.u32 %v1538_v32, %v1404_v37 }
 0x10b   :  { %v1082_v56 = vadd.f32 %v1081_v43, %v1019_v51 }
 0x10d   :  { %v656_v25 = vpop.f32.mrf.mxu2 }
 0x10e   :  { %v579_v58 = vpop.f32.mrf.mxu0 }
 0x10f   :  { %v749_v60 = vadd.f32 %v748_v7, %v579_v58  ;;  %v1396_v7 = vld [vmem:[%s2442_s0 + $0x1e8] sm:$0xf0] }
 0x110   :  { %v1399_v9 = vor.u32 %v1536_v3, %v1396_v7 }
 0x111   :  { %887 = vst [vmem:[%s2443_s2 + $0x70] sm:$0xff] %v749_v60  ;;  %v950_v4 = vadd.f32 %v949_v49, %v749_v60  ;;  %v1020_v5 = vmul.f32 %v749_v60, %v749_v60  ;;  %618 = vmatmul.bf16.gmra.mxu0 %v1275_v48  ;;  %693 = vmatmul.bf16.gmra.mxu2 %v1395_v6 }
 0x112   :  { %v758_v8 = vpop.f32.mrf.mxu1  ;;  %1474 = vmatmul.msk.bf16.gmra.mxu3 %vm438_vm0, %v1399_v9 }
 0x113   :  { %v1083_v10 = vadd.f32 %v1082_v56, %v1020_v5 }
 0x115   :  { %v659_v42 = vpop.f32.mrf.mxu2 }
 0x116   :  { %v581_v11 = vpop.f32.mrf.mxu0 }
 0x117   :  { %v751_v13 = vadd.f32 %v2055_v17, %v581_v11  ;;  %v825_v17 = vpop.f32.mrf.mxu3 }
 0x118   :  { %v2147_v27 = vadd.f32 %v825_v17, %v656_v25 }
 0x119   :  { %888 = vst [vmem:[%s2443_s2 + $0x78] sm:$0xff] %v751_v13  ;;  %v951_v15 = vadd.f32 %v950_v4, %v751_v13  ;;  %v1021_v18 = vmul.f32 %v751_v13, %v751_v13 }
 0x11a   :  { %v760_v20 = vpop.f32.mrf.mxu1  ;;  %918 = vst [vmem:[%s2443_s2 + $0x168] sm:$0xff] %v2147_v27 }
 0x11b   :  { %v1084_v22 = vadd.f32 %v1083_v10, %v1021_v18 }
 0x11d   :  { %v661_v55 = vpop.f32.mrf.mxu2 }
 0x11e   :  { %v584_v24 = vpop.f32.mrf.mxu0 }
 0x11f   :  { %v754_v26 = vadd.f32 %v753_v41, %v584_v24  ;;  %v828_v44 = vpop.f32.mrf.mxu3 }
 0x120   :  { %v2172_v51 = vadd.f32 %v828_v44, %v659_v42 }
 0x121   :  { %889 = vst [vmem:[%s2443_s2 + $0x80] sm:$0xff] %v754_v26  ;;  %v952_v34 = vadd.f32 %v951_v15, %v754_v26  ;;  %v1022_v35 = vmul.f32 %v754_v26, %v754_v26  ;;  %698 = vmatmul.bf16.gmra.mxu2 %v1403_v36 }
 0x122   :  { %v763_v38 = vpop.f32.mrf.mxu1  ;;  %1475 = vmatmul.msk.bf16.gmra.mxu3 %vm438_vm0, %v1407_v39  ;;  %919 = vst [vmem:[%s2443_s2 + $0x170] sm:$0xff] %v2172_v51 }
 0x123   :  { %v1085_v40 = vadd.f32 %v1084_v22, %v1022_v35 }
 0x125   :  { %v664_v2 = vpop.f32.mrf.mxu2 }
 0x126   :  { %v586_v41 = vpop.f32.mrf.mxu0 }
 0x127   :  { %v756_v43 = vadd.f32 %v755_v52, %v586_v41  ;;  %v830_v52 = vpop.f32.mrf.mxu3 }
 0x128   :  { %v2178_v48 = vadd.f32 %v830_v52, %v661_v55 }
 0x129   :  { %890 = vst [vmem:[%s2443_s2 + $0x88] sm:$0xff] %v756_v43  ;;  %v953_v45 = vadd.f32 %v952_v34, %v756_v43  ;;  %v1023_v46 = vmul.f32 %v756_v43, %v756_v43 }
 0x12a   :  { %v765_v47 = vpop.f32.mrf.mxu1  ;;  %920 = vst [vmem:[%s2443_s2 + $0x178] sm:$0xff] %v2178_v48 }
 0x12b   :  { %v1086_v49 = vadd.f32 %v1085_v40, %v1023_v46 }
 0x12d   :  { %v666_v11 = vpop.f32.mrf.mxu2 }
 0x12e   :  { %v589_v50 = vpop.f32.mrf.mxu0 }
 0x12f   :  { %v759_v56 = vadd.f32 %v758_v8, %v589_v50  ;;  %v833_v4 = vpop.f32.mrf.mxu3 }
 0x130   :  { %v2190_v9 = vadd.f32 %v833_v4, %v664_v2 }
 0x131   :  { %891 = vst [vmem:[%s2443_s2 + $0x90] sm:$0xff] %v759_v56  ;;  %v954_v58 = vadd.f32 %v953_v45, %v759_v56  ;;  %v1024_v59 = vmul.f32 %v759_v56, %v759_v56 }
 0x132   :  { %v768_v60 = vpop.f32.mrf.mxu1  ;;  %921 = vst [vmem:[%s2443_s2 + $0x180] sm:$0xff] %v2190_v9 }
 0x133   :  { %v1087_v61 = vadd.f32 %v1086_v49, %v1024_v59 }
 0x135   :  { %v669_v25 = vpop.f32.mrf.mxu2 }
 0x136   :  { %v591_v1 = vpop.f32.mrf.mxu0 }
 0x137   :  { %v761_v3 = vadd.f32 %v760_v20, %v591_v1  ;;  %v835_v13 = vpop.f32.mrf.mxu3 }
 0x138   :  { %v2196_v14 = vadd.f32 %v835_v13, %v666_v11 }
 0x139   :  { %892 = vst [vmem:[%s2443_s2 + $0x98] sm:$0xff] %v761_v3  ;;  %v955_v5 = vadd.f32 %v954_v58, %v761_v3  ;;  %v1025_v6 = vmul.f32 %v761_v3, %v761_v3 }
 0x13a   :  { %v770_v7 = vpop.f32.mrf.mxu1  ;;  %922 = vst [vmem:[%s2443_s2 + $0x188] sm:$0xff] %v2196_v14 }
 0x13b   :  { %v1088_v8 = vadd.f32 %v1087_v61, %v1025_v6 }
 0x13d   :  { %v671_v34 = vpop.f32.mrf.mxu2 }
 0x13e   :  { %v594_v10 = vpop.f32.mrf.mxu0 }
 0x13f   :  { %v764_v12 = vadd.f32 %v763_v38, %v594_v10  ;;  %v838_v17 = vpop.f32.mrf.mxu3 }
 0x140   :  { %v2215_v29 = vadd.f32 %v838_v17, %v669_v25 }
 0x141   :  { %893 = vst [vmem:[%s2443_s2 + $0xa0] sm:$0xff] %v764_v12  ;;  %v2201_v15 = vadd.f32 %v955_v5, %v764_v12  ;;  %v1026_v18 = vmul.f32 %v764_v12, %v764_v12 }
 0x142   :  { %v773_v20 = vpop.f32.mrf.mxu1  ;;  %923 = vst [vmem:[%s2443_s2 + $0x190] sm:$0xff] %v2215_v29 }
 0x143   :  { %v2207_v22 = vadd.f32 %v1088_v8, %v1026_v18 }
 0x145   :  { %v674_v40 = vpop.f32.mrf.mxu2 }
 0x146   :  { %v596_v24 = vpop.f32.mrf.mxu0 }
 0x147   :  { %v2209_v26 = vadd.f32 %v765_v47, %v596_v24  ;;  %v840_v36 = vpop.f32.mrf.mxu3 }
 0x148   :  { %v2223_v37 = vadd.f32 %v840_v36, %v671_v34 }
 0x149   :  { %894 = vst [vmem:[%s2443_s2 + $0xa8] sm:$0xff] %v2209_v26 }
 0x14a   :  { %v775_v28 = vpop.f32.mrf.mxu1  ;;  %924 = vst [vmem:[%s2443_s2 + $0x198] sm:$0xff] %v2223_v37 }
 0x14d   :  { %v676_v46 = vpop.f32.mrf.mxu2 }
 0x14e   :  { %v599_v32 = vpop.f32.mrf.mxu0 }
 0x14f   :  { %v2221_v35 = vadd.f32 %v768_v60, %v599_v32  ;;  %v843_v42 = vpop.f32.mrf.mxu3 }
 0x150   :  { %v2236_v44 = vadd.f32 %v843_v42, %v674_v40 }
 0x151   :  { %895 = vst [vmem:[%s2443_s2 + $0xb0] sm:$0xff] %v2221_v35  ;;  %v1028_v36 = vmul.f32 %v2221_v35, %v2221_v35 }
 0x152   :  { %v778_v38 = vpop.f32.mrf.mxu1  ;;  %925 = vst [vmem:[%s2443_s2 + $0x1a0] sm:$0xff] %v2236_v44 }
 0x155   :  { %v679_v52 = vpop.f32.mrf.mxu2 }
 0x156   :  { %v601_v39 = vpop.f32.mrf.mxu0 }
 0x157   :  { %v771_v41 = vadd.f32 %v770_v7, %v601_v39  ;;  %v845_v49 = vpop.f32.mrf.mxu3 }
 0x158   :  { %v2242_v50 = vadd.f32 %v845_v49, %v676_v46 }
 0x159   :  { %896 = vst [vmem:[%s2443_s2 + $0xb8] sm:$0xff] %v771_v41  ;;  %v1029_v40 = vmul.f32 %v771_v41, %v771_v41 }
 0x15a   :  { %v780_v43 = vpop.f32.mrf.mxu1  ;;  %926 = vst [vmem:[%s2443_s2 + $0x1a8] sm:$0xff] %v2242_v50 }
 0x15d   :  { %v681_v2 = vpop.f32.mrf.mxu2 }
 0x15e   :  { %v604_v45 = vpop.f32.mrf.mxu0 }
 0x15f   :  { %v774_v47 = vadd.f32 %v773_v20, %v604_v45  ;;  %v848_v59 = vpop.f32.mrf.mxu3 }
 0x160   :  { %v2254_v61 = vadd.f32 %v848_v59, %v679_v52 }
 0x161   :  { %897 = vst [vmem:[%s2443_s2 + $0xc0] sm:$0xff] %v774_v47 }
 0x162   :  { %v783_v55 = vpop.f32.mrf.mxu1  ;;  %927 = vst [vmem:[%s2443_s2 + $0x1b0] sm:$0xff] %v2254_v61 }
 0x165   :  { %v684_v8 = vpop.f32.mrf.mxu2 }
 0x166   :  { %v606_v56 = vpop.f32.mrf.mxu0 }
 0x167   :  { %v776_v58 = vadd.f32 %v775_v28, %v606_v56  ;;  %v850_v4 = vpop.f32.mrf.mxu3  ;;  %v1027_v28 = vmul.f32 %v2209_v26, %v2209_v26 }
 0x168   :  { %v2260_v5 = vadd.f32 %v850_v4, %v681_v2 }
 0x169   :  { %898 = vst [vmem:[%s2443_s2 + $0xc8] sm:$0xff] %v776_v58  ;;  %v1090_v39 = vadd.f32 %v2207_v22, %v1027_v28 }
 0x16a   :  { %v785_v60 = vpop.f32.mrf.mxu1  ;;  %928 = vst [vmem:[%s2443_s2 + $0x1b8] sm:$0xff] %v2260_v5 }
 0x16b   :  { %v1091_v49 = vadd.f32 %v1090_v39, %v1028_v36 }
 0x16d   :  { %v686_v18 = vpop.f32.mrf.mxu2 }
 0x16e   :  { %v609_v1 = vpop.f32.mrf.mxu0 }
 0x16f   :  { %v779_v3 = vadd.f32 %v778_v38, %v609_v1  ;;  %v853_v11 = vpop.f32.mrf.mxu3  ;;  %v957_v38 = vadd.f32 %v2201_v15, %v2209_v26  ;;  %v1092_v15 = vadd.f32 %v1091_v49, %v1029_v40  ;;  %v1031_v26 = vmul.f32 %v776_v58, %v776_v58 }
 0x170   :  { %v2272_v24 = vadd.f32 %v853_v11, %v684_v8 }
 0x171   :  { %899 = vst [vmem:[%s2443_s2 + $0xd0] sm:$0xff] %v779_v3  ;;  %v1032_v4 = vmul.f32 %v779_v3, %v779_v3 }
 0x172   :  { %v788_v6 = vpop.f32.mrf.mxu1  ;;  %929 = vst [vmem:[%s2443_s2 + $0x1c0] sm:$0xff] %v2272_v24 }
 0x176   :  { %v611_v7 = vpop.f32.mrf.mxu0 }
 0x177   :  { %v781_v10 = vadd.f32 %v780_v43, %v611_v7  ;;  %v855_v25 = vpop.f32.mrf.mxu3  ;;  %v958_v43 = vadd.f32 %v957_v38, %v2221_v35 }
 0x178   :  { %v2274_v17 = vadd.f32 %v855_v25, %v686_v18 }
 0x179   :  { %900 = vst [vmem:[%s2443_s2 + $0xd8] sm:$0xff] %v781_v10  ;;  %v959_v56 = vadd.f32 %v958_v43, %v771_v41  ;;  %v1033_v8 = vmul.f32 %v781_v10, %v781_v10 }
 0x17a   :  { %v790_v12 = vpop.f32.mrf.mxu1  ;;  %930 = vst [vmem:[%s2443_s2 + $0x1c8] sm:$0xff] %v2274_v17 }
 0x17b   :  { %v960_v59 = vadd.f32 %v959_v56, %v774_v47 }
 0x17d   :  { %v961_v2 = vadd.f32 %v960_v59, %v776_v58 }
 0x17e   :  { %v614_v13 = vpop.f32.mrf.mxu0 }
 0x17f   :  { %v784_v20 = vadd.f32 %v783_v55, %v614_v13  ;;  %v858_v46 = vpop.f32.mrf.mxu3  ;;  %v1030_v55 = vmul.f32 %v774_v47, %v774_v47  ;;  %v962_v7 = vadd.f32 %v961_v2, %v779_v3 }
 0x181   :  { %901 = vst [vmem:[%s2443_s2 + $0xe0] sm:$0xff] %v784_v20  ;;  %v1093_v1 = vadd.f32 %v1092_v15, %v1030_v55  ;;  %v1034_v28 = vmul.f32 %v784_v20, %v784_v20 }
 0x182   :  { %v793_v32 = vpop.f32.mrf.mxu1 }
 0x183   :  { %v794_v34 = vadd.f32 %v793_v32, %v1868_v19  ;;  %v1094_v35 = vadd.f32 %v1093_v1, %v1031_v26  ;;  %v1040_v1 = vmul.f32 %v1917_v54, %v1917_v54 }
 0x184   :  { %v689_v19 = vpop.f32.mrf.mxu2 }
 0x185   :  { %905 = vst [vmem:[%s2443_s2 + $0x100] sm:$0xff] %v794_v34  ;;  %v2306_v13 = vadd.f32 %v858_v46, %v689_v19  ;;  %v1095_v47 = vadd.f32 %v1094_v35, %v1032_v4  ;;  %v1038_v55 = vmul.f32 %v794_v34, %v794_v34 }
 0x186   :  { %v616_v42 = vpop.f32.mrf.mxu0 }
 0x187   :  { %v786_v45 = vadd.f32 %v785_v60, %v616_v42  ;;  %v860_v18 = vpop.f32.mrf.mxu3  ;;  %931 = vst [vmem:[%s2443_s2 + $0x1d0] sm:$0xff] %v2306_v13  ;;  %v1096_v58 = vadd.f32 %v1095_v47, %v1033_v8 }
 0x189   :  { %902 = vst [vmem:[%s2443_s2 + $0xe8] sm:$0xff] %v786_v45  ;;  %v1097_v32 = vadd.f32 %v1096_v58, %v1034_v28 }
 0x18a   :  { %v795_v52 = vpop.f32.mrf.mxu1 }
 0x18b   :  { %v796_v22 = vadd.f32 %v795_v52, %v1887_v31  ;;  %v963_v31 = vadd.f32 %v962_v7, %v781_v10 }
 0x18c   :  { %v691_v41 = vpop.f32.mrf.mxu2 }
 0x18d   :  { %906 = vst [vmem:[%s2443_s2 + $0x108] sm:$0xff] %v796_v22  ;;  %v2308_v25 = vadd.f32 %v860_v18, %v691_v41  ;;  %v964_v3 = vadd.f32 %v963_v31, %v784_v20  ;;  %v1039_v26 = vmul.f32 %v796_v22, %v796_v22  ;;  %v1041_v41 = vmul.f32 %v1929_v63, %v1929_v63 }
 0x18e   :  { %v619_v60 = vpop.f32.mrf.mxu0  ;;  %v1044_v31 = vmul.f32 %v2015_v53, %v2015_v53 }
 0x18f   :  { %v789_v11 = vadd.f32 %v788_v6, %v619_v60  ;;  %v1035_v6 = vmul.f32 %v786_v45, %v786_v45  ;;  %932 = vst [vmem:[%s2443_s2 + $0x1d8] sm:$0xff] %v2308_v25  ;;  %v965_v10 = vadd.f32 %v964_v3, %v786_v45 }
 0x191   :  { %903 = vst [vmem:[%s2443_s2 + $0xf0] sm:$0xff] %v789_v11  ;;  %v1036_v36 = vmul.f32 %v789_v11, %v789_v11  ;;  %v1098_v40 = vadd.f32 %v1097_v32, %v1035_v6  ;;  %v966_v42 = vadd.f32 %v965_v10, %v789_v11  ;;  %v1045_v6 = vmul.f32 %v2028_v62, %v2028_v62 }
 0x192   :  { %v1046_v10 = vmul.f32 %v2063_v23, %v2063_v23 }
 0x193   :  { %v1099_v46 = vadd.f32 %v1098_v40, %v1036_v36 }
 0x194   :  { %v694_v39 = vpop.f32.mrf.mxu2 }
 0x195   :  { %v863_v43 = vpop.f32.mrf.mxu3 }
 0x196   :  { %v621_v38 = vpop.f32.mrf.mxu0  ;;  %v2327_v4 = vadd.f32 %v863_v43, %v694_v39 }
 0x197   :  { %v791_v19 = vadd.f32 %v790_v12, %v621_v38  ;;  %v1047_v38 = vmul.f32 %v2076_v33, %v2076_v33 }
 0x198   :  { %933 = vst [vmem:[%s2443_s2 + $0x1e0] sm:$0xff] %v2327_v4 }
 0x199   :  { %904 = vst [vmem:[%s2443_s2 + $0xf8] sm:$0xff] %v791_v19  ;;  %v967_v20 = vadd.f32 %v966_v42, %v791_v19  ;;  %v1037_v49 = vmul.f32 %v791_v19, %v791_v19  ;;  %v1048_v42 = vmul.f32 %v2109_v57, %v2109_v57 }
 0x19b   :  { %v968_v56 = vadd.f32 %v967_v20, %v794_v34  ;;  %v1100_v15 = vadd.f32 %v1099_v46, %v1037_v49 }
 0x19c   :  { %v696_v59 = vpop.f32.mrf.mxu2 }
 0x19d   :  { %v969_v52 = vadd.f32 %v968_v56, %v796_v22  ;;  %v1101_v45 = vadd.f32 %v1100_v15, %v1038_v55  ;;  %v865_v35 = vpop.f32.mrf.mxu3 }
 0x19e   :  { %v2329_v60 = vadd.f32 %v865_v35, %v696_v59 }
 0x19f   :  { %v970_v12 = vadd.f32 %v969_v52, %v1917_v54  ;;  %v1102_v2 = vadd.f32 %v1101_v45, %v1039_v26  ;;  %v1042_v54 = vmul.f32 %v1966_v21, %v1966_v21  ;;  %v1052_v52 = vmul.f32 %v2172_v51, %v2172_v51 }
 0x1a0   :  { %934 = vst [vmem:[%s2443_s2 + $0x1e8] sm:$0xff] %v2329_v60 }
 0x1a1   :  { %v971_v34 = vadd.f32 %v970_v12, %v1929_v63  ;;  %v1103_v7 = vadd.f32 %v1102_v2, %v1040_v1  ;;  %v1043_v63 = vmul.f32 %v1978_v30, %v1978_v30  ;;  %v1053_v1 = vmul.f32 %v2178_v48, %v2178_v48 }
 0x1a3   :  { %v972_v22 = vadd.f32 %v971_v34, %v1966_v21  ;;  %v1104_v8 = vadd.f32 %v1103_v7, %v1041_v41 }
 0x1a4   :  { %v699_v47 = vpop.f32.mrf.mxu2 }
 0x1a5   :  { %v973_v11 = vadd.f32 %v972_v22, %v1978_v30  ;;  %v1105_v18 = vadd.f32 %v1104_v8, %v1042_v54  ;;  %v868_v3 = vpop.f32.mrf.mxu3 }
 0x1a6   :  { %v2363_v43 = vadd.f32 %v868_v3, %v699_v47 }
 0x1a7   :  { %v974_v28 = vadd.f32 %v973_v11, %v2015_v53  ;;  %v1106_v58 = vadd.f32 %v1105_v18, %v1043_v63 }
 0x1a8   :  { %935 = vst [vmem:[%s2443_s2 + $0x1f0] sm:$0xff] %v2363_v43 }
 0x1a9   :  { %v975_v21 = vadd.f32 %v974_v28, %v2028_v62  ;;  %v1107_v32 = vadd.f32 %v1106_v58, %v1044_v31 }
 0x1ab   :  { %v976_v30 = vadd.f32 %v975_v21, %v2063_v23  ;;  %v1108_v36 = vadd.f32 %v1107_v32, %v1045_v6  ;;  %v1049_v23 = vmul.f32 %v2115_v0, %v2115_v0  ;;  %v1062_v21 = vmul.f32 %v2272_v24, %v2272_v24 }
 0x1ac   :  { %v701_v40 = vpop.f32.mrf.mxu2 }
 0x1ad   :  { %v977_v39 = vadd.f32 %v976_v30, %v2076_v33  ;;  %v1109_v53 = vadd.f32 %v1108_v36, %v1046_v10  ;;  %v870_v46 = vpop.f32.mrf.mxu3  ;;  %v1050_v33 = vmul.f32 %v2141_v16, %v2141_v16  ;;  %v1063_v30 = vmul.f32 %v2274_v17, %v2274_v17 }
 0x1ae   :  { %v2365_v20 = vadd.f32 %v870_v46, %v701_v40 }
 0x1af   :  { %v978_v19 = vadd.f32 %v977_v39, %v2109_v57  ;;  %v1110_v62 = vadd.f32 %v1109_v53, %v1047_v38  ;;  %v1064_v38 = vmul.f32 %v2306_v13, %v2306_v13  ;;  %v1065_v53 = vmul.f32 %v2308_v25, %v2308_v25 }
 0x1b0   :  { %936 = vst [vmem:[%s2443_s2 + $0x1f8] sm:$0xff] %v2365_v20 }
 0x1b1   :  { %v979_v49 = vadd.f32 %v978_v19, %v2115_v0  ;;  %v1111_v55 = vadd.f32 %v1110_v62, %v1048_v42  ;;  %v1051_v0 = vmul.f32 %v2147_v27, %v2147_v27  ;;  %v1066_v42 = vmul.f32 %v2327_v4, %v2327_v4 }
 0x1b2   :  { %v1067_v62 = vmul.f32 %v2329_v60, %v2329_v60 }
 0x1b3   :  { %v1112_v57 = vadd.f32 %v1111_v55, %v1049_v23  ;;  %v980_v56 = vadd.f32 %v979_v49, %v2141_v16  ;;  %v1054_v16 = vmul.f32 %v2190_v9, %v2190_v9  ;;  %v1068_v23 = vmul.f32 %v2363_v43, %v2363_v43 }
 0x1b4   :  { %v1069_v55 = vmul.f32 %v2365_v20, %v2365_v20 }
 0x1b5   :  { %v981_v15 = vadd.f32 %v980_v56, %v2147_v27  ;;  %v1113_v26 = vadd.f32 %v1112_v57, %v1050_v33  ;;  %v1055_v27 = vmul.f32 %v2196_v14, %v2196_v14 }
 0x1b7   :  { %v982_v45 = vadd.f32 %v981_v15, %v2172_v51  ;;  %v1114_v59 = vadd.f32 %v1113_v26, %v1051_v0  ;;  %v1056_v51 = vmul.f32 %v2215_v29, %v2215_v29 }
 0x1b9   :  { %v983_v12 = vadd.f32 %v982_v45, %v2178_v48  ;;  %v1115_v2 = vadd.f32 %v1114_v59, %v1052_v52  ;;  %v1057_v48 = vmul.f32 %v2223_v37, %v2223_v37 }
 0x1bb   :  { %v984_v35 = vadd.f32 %v983_v12, %v2190_v9  ;;  %v1116_v41 = vadd.f32 %v1115_v2, %v1053_v1  ;;  %v1058_v9 = vmul.f32 %v2236_v44, %v2236_v44 }
 0x1bd   :  { %v985_v34 = vadd.f32 %v984_v35, %v2196_v14  ;;  %v1117_v7 = vadd.f32 %v1116_v41, %v1054_v16  ;;  %v1059_v14 = vmul.f32 %v2242_v50, %v2242_v50 }
 0x1bf   :  { %v986_v54 = vadd.f32 %v985_v34, %v2215_v29  ;;  %v1118_v22 = vadd.f32 %v1117_v7, %v1055_v27  ;;  %v1060_v29 = vmul.f32 %v2254_v61, %v2254_v61 }
 0x1c1   :  { %v987_v8 = vadd.f32 %v986_v54, %v2223_v37  ;;  %v1119_v63 = vadd.f32 %v1118_v22, %v1056_v51  ;;  %v1061_v37 = vmul.f32 %v2260_v5, %v2260_v5 }
 0x1c3   :  { %v988_v11 = vadd.f32 %v987_v8, %v2236_v44  ;;  %v1120_v18 = vadd.f32 %v1119_v63, %v1057_v48 }
 0x1c5   :  { %v989_v47 = vadd.f32 %v988_v11, %v2242_v50  ;;  %v1121_v31 = vadd.f32 %v1120_v18, %v1058_v9 }
 0x1c7   :  { %v990_v28 = vadd.f32 %v989_v47, %v2254_v61  ;;  %v1122_v58 = vadd.f32 %v1121_v31, %v1059_v14 }
 0x1c9   :  { %v991_v3 = vadd.f32 %v990_v28, %v2260_v5  ;;  %v1123_v6 = vadd.f32 %v1122_v58, %v1060_v29 }
 0x1cb   :  { %v992_v44 = vadd.f32 %v991_v3, %v2272_v24  ;;  %v1124_v32 = vadd.f32 %v1123_v6, %v1061_v37 }
 0x1cd   :  { %v1125_v50 = vadd.f32 %v1124_v32, %v1062_v21  ;;  %v993_v10 = vadd.f32 %v992_v44, %v2274_v17 }
 0x1cf   :  { %v1126_v61 = vadd.f32 %v1125_v50, %v1063_v30  ;;  %v994_v36 = vadd.f32 %v993_v10, %v2306_v13 }
 0x1d1   :  { %v1127_v5 = vadd.f32 %v1126_v61, %v1064_v38  ;;  %v995_v39 = vadd.f32 %v994_v36, %v2308_v25 }
 0x1d3   :  { %v1128_v24 = vadd.f32 %v1127_v5, %v1065_v53  ;;  %v996_v40 = vadd.f32 %v995_v39, %v2327_v4 }
 0x1d5   :  { %v1129_v19 = vadd.f32 %v1128_v24, %v1066_v42  ;;  %v997_v17 = vadd.f32 %v996_v40, %v2329_v60 }
 0x1d7   :  { %v1130_v46 = vadd.f32 %v1129_v19, %v1067_v62  ;;  %v998_v13 = vadd.f32 %v997_v17, %v2363_v43 }
 0x1d9   :  { %v1131_v49 = vadd.f32 %v1130_v46, %v1068_v23  ;;  %v999_v25 = vadd.f32 %v998_v13, %v2365_v20 }
 0x1db   :  { %v1000_v33 = vrot.slane %v999_v25, 4  ;;  %v1132_v4 = vadd.f32 %v1131_v49, %v1069_v55 }
 0x1dd   :  { %v1001_v57 = vadd.f32 %v1000_v33, %v999_v25  ;;  %v1133_v56 = vrot.slane %v1132_v4, 4 }
 0x1df   :  { %v1002_v0 = vrot.slane %v1001_v57, 2  ;;  %v1134_v15 = vadd.f32 %v1133_v56, %v1132_v4 }
 0x1e1   :  { %v1003_v26 = vadd.f32 %v1002_v0, %v1001_v57  ;;  %v1135_v60 = vrot.slane %v1134_v15, 2 }
 0x1e3   :  { %v1004_v52 = vrot.slane %v1003_v26, 1  ;;  %v1136_v45 = vadd.f32 %v1135_v60, %v1134_v15 }
 0x1e5   :  { %v1137_v59 = vrot.slane %v1136_v45, 1  ;;  %v1005_v1 = vadd.f32 %v1004_v52, %v1003_v26 }
 0x1e7   :  { %v1138_v43 = vadd.f32 %v1137_v59, %v1136_v45 }
 0x1e9   :  { %v1140_v12 = vsel %vm1139_vm1, %v1005_v1, %v1138_v43 }
 0x1ea   :  { %v1142_v2 = vsel %vm1141_vm2, %v1140_v12, 0.0 }
 0x1eb   :  { %1143 = vst [vmem:[%s2444_s3] sm:$0xff] %v1142_v2 }

// kernel: dcgan_generator_forward.17
= control target key start
LH: loop header
LB: loop body
LE: loop exit
PB: predicated region body
PF: predicated region fallthrough
CT: control target
= control target key end

     0   :  { %s1259_s9 = smov 0   ;;  %s1427_s0 = inlined_call_operand.vmem [shape: bf16[2048,72], index: 0, kind: input, shape index: {}]   ;;  %s1428_s1 = inlined_call_operand.vmem [shape: bf16[72,128], index: 1, kind: input, shape index: {}]   ;;  %s1429_s2 = inlined_call_operand.vmem [shape: f32[2048,128], index: 2, kind: output, shape index: {}]  }
   0x1 LB: > { %s862_s10 = sadd.s32 4294967295, %s1242_s9   ;;  %p866_p0 = scmp.ge.s32.totalorder %s1242_s9, 1  ;;  %s1242_s9 = sphi %s1259_s9, %s12_s9  }
   0x2   : > { %p113_p1 = scmp.lt.s32.totalorder %s1242_s9, 5 }
   0x4   : > { %p114_p2 = pnand %p866_p0, %p113_p1 }
   0x5   : > { %s867_s13 = sshll.u32 (!%p114_p2), %s862_s10, 6 }
   0x6   : > { %117 = sbr.rel (%p114_p2) target bundleno = 298 (0x12a), region = 28  ;;  %p136_p3 = scmp.lt.s32.totalorder (!%p114_p2), %s867_s13, 255 }
   0xb   : > { %v220_v0 = vld [vmem:[%s1428_s1 + $0x20] sm:$0xf]  ;;  %vm505_vm0 = vcmask 1043456   ;;  %v1084_v4 = vld [vmem:[%s1428_s1 + $0x18] sm:$0xff]  ;;  %v1083_v5 = vld [vmem:[%s1428_s1 + $0x10] sm:$0xff]  ;;  %s1431_s13 = smov (!%p136_p3, %s867_s13), 255 }
   0xc   : > { %v398_v1 = vunpack.c.l.b16 %v220_v0  ;;  %v1082_v6 = vld [vmem:[%s1428_s1 + $0x8] sm:$0xff]  ;;  %s868_s20 = sshll.u32 %s1431_s13, 2  ;;  %v1081_v7 = vld [vmem:[%s1428_s1] sm:$0xff]  ;;  %vm408_vm1 = vcmask 588800   ;;  %s870_s26 = sshll.u32 %s1431_s13, 3 }
   0xd   : > { %s1288_s25 = scalar_lea.vmem %s1427_s0, %s868_s20  ;;  %s1358_s29 = scalar_lea.vmem %s1429_s2, %s870_s26 }
   0xe   : > { %v403_v2 = vpack.c.b16 %v398_v1, %v398_v1  ;;  %v1049_v8 = vld [vmem:[%s1288_s25] sm:$0xff]  ;;  %v1050_v12 = vld [vmem:[%s1288_s25 + $0x8] sm:$0xff]  ;;  %v1051_v16 = vld [vmem:[%s1288_s25 + $0x10] sm:$0xff] }
   0xf   : > { %v1057_v9 = vld [vmem:[%s1288_s25 + $0x40] sm:$0xff]  ;;  %v1058_v13 = vld [vmem:[%s1288_s25 + $0x48] sm:$0xff]  ;;  %v1059_v17 = vld [vmem:[%s1288_s25 + $0x50] sm:$0xff] }
  0x10   : > { %v507_v3 = vsel %vm505_vm0, %v403_v2, 0  ;;  %v1065_v10 = vld [vmem:[%s1288_s25 + $0x80] sm:$0xff]  ;;  %v1066_v14 = vld [vmem:[%s1288_s25 + $0x88] sm:$0xff]  ;;  %v1067_v18 = vld [vmem:[%s1288_s25 + $0x90] sm:$0xff] }
  0x11   : > { %512 = vmatpush.bf16.msra.mxu0 %v507_v3  ;;  %1085 = vmatpush.bf16.msra.mxu1 %v507_v3  ;;  %v1073_v11 = vld [vmem:[%s1288_s25 + $0xc0] sm:$0xff]  ;;  %v1074_v15 = vld [vmem:[%s1288_s25 + $0xc8] sm:$0xff]  ;;  %v1075_v19 = vld [vmem:[%s1288_s25 + $0xd0] sm:$0xff] }
  0x12   : > { %1086 = vmatpush.bf16.msra.mxu2 %v507_v3  ;;  %1087 = vmatpush.bf16.msra.mxu3 %v507_v3  ;;  %v1052_v20 = vld [vmem:[%s1288_s25 + $0x18] sm:$0xff]  ;;  %v1053_v24 = vld [vmem:[%s1288_s25 + $0x20] sm:$0xff]  ;;  %v1054_v28 = vld [vmem:[%s1288_s25 + $0x28] sm:$0xff] }
  0x13   : > { %v1060_v21 = vld [vmem:[%s1288_s25 + $0x58] sm:$0xff]  ;;  %v1061_v25 = vld [vmem:[%s1288_s25 + $0x60] sm:$0xff]  ;;  %v1062_v29 = vld [vmem:[%s1288_s25 + $0x68] sm:$0xff] }
  0x14   : > { %v1068_v22 = vld [vmem:[%s1288_s25 + $0x98] sm:$0xff]  ;;  %v1069_v26 = vld [vmem:[%s1288_s25 + $0xa0] sm:$0xff]  ;;  %v1070_v30 = vld [vmem:[%s1288_s25 + $0xa8] sm:$0xff] }
  0x15   : > { %513 = vmatpush.bf16.msra.mxu0 %v1084_v4  ;;  %1088 = vmatpush.bf16.msra.mxu1 %v1084_v4  ;;  %v1076_v23 = vld [vmem:[%s1288_s25 + $0xd8] sm:$0xff]  ;;  %v1077_v27 = vld [vmem:[%s1288_s25 + $0xe0] sm:$0xff]  ;;  %v1078_v31 = vld [vmem:[%s1288_s25 + $0xe8] sm:$0xff] }
  0x16   : > { %1089 = vmatpush.bf16.msra.mxu2 %v1084_v4  ;;  %1090 = vmatpush.bf16.msra.mxu3 %v1084_v4  ;;  %v1055_v32 = vld [vmem:[%s1288_s25 + $0x30] sm:$0xff]  ;;  %v1056_v36 = vld [vmem:[%s1288_s25 + $0x38] sm:$0xff] }
  0x17   : > { %v1063_v33 = vld [vmem:[%s1288_s25 + $0x70] sm:$0xff]  ;;  %v1064_v37 = vld [vmem:[%s1288_s25 + $0x78] sm:$0xff] }
  0x18   : > { %v1071_v34 = vld [vmem:[%s1288_s25 + $0xb0] sm:$0xff]  ;;  %v1072_v38 = vld [vmem:[%s1288_s25 + $0xb8] sm:$0xff] }
  0x19   : > { %514 = vmatpush.bf16.msra.mxu0 %v1083_v5  ;;  %1091 = vmatpush.bf16.msra.mxu1 %v1083_v5  ;;  %v1079_v35 = vld [vmem:[%s1288_s25 + $0xf0] sm:$0xff]  ;;  %v1080_v39 = vld [vmem:[%s1288_s25 + $0xf8] sm:$0xff] }
  0x1a   : > { %1092 = vmatpush.bf16.msra.mxu2 %v1083_v5  ;;  %1093 = vmatpush.bf16.msra.mxu3 %v1083_v5 }
  0x1d   : > { %515 = vmatpush.bf16.msra.mxu0 %v1082_v6  ;;  %1094 = vmatpush.bf16.msra.mxu1 %v1082_v6 }
  0x1e   : > { %1095 = vmatpush.bf16.msra.mxu2 %v1082_v6  ;;  %1096 = vmatpush.bf16.msra.mxu3 %v1082_v6 }
  0x21   : > { %516 = vmatpush.bf16.msra.mxu0 %v1081_v7  ;;  %1097 = vmatpush.bf16.msra.mxu1 %v1081_v7 }
  0x22   : > { %1098 = vmatpush.bf16.msra.mxu2 %v1081_v7  ;;  %1099 = vmatpush.bf16.msra.mxu3 %v1081_v7 }
  0x24   : > { %1015 = vmatmul.msk.bf16.vlgmr.msra.gmra.mxu0 %vm408_vm1, %v1049_v8  ;;  %1023 = vmatmul.msk.bf16.vlgmr.msra.gmra.mxu1 %vm408_vm1, %v1057_v9 }
  0x25   : > { %1031 = vmatmul.msk.bf16.vlgmr.msra.gmra.mxu2 %vm408_vm1, %v1065_v10  ;;  %1039 = vmatmul.msk.bf16.vlgmr.msra.gmra.mxu3 %vm408_vm1, %v1073_v11 }
  0x34   : > { %1016 = vmatmul.msk.bf16.gmra.mxu0 %vm408_vm1, %v1050_v12  ;;  %1024 = vmatmul.msk.bf16.gmra.mxu1 %vm408_vm1, %v1058_v13 }
  0x35   : > { %1032 = vmatmul.msk.bf16.gmra.mxu2 %vm408_vm1, %v1066_v14  ;;  %1040 = vmatmul.msk.bf16.gmra.mxu3 %vm408_vm1, %v1074_v15 }
  0x44   : > { %1017 = vmatmul.msk.bf16.gmra.mxu0 %vm408_vm1, %v1051_v16  ;;  %1025 = vmatmul.msk.bf16.gmra.mxu1 %vm408_vm1, %v1059_v17 }
  0x45   : > { %1033 = vmatmul.msk.bf16.gmra.mxu2 %vm408_vm1, %v1067_v18  ;;  %1041 = vmatmul.msk.bf16.gmra.mxu3 %vm408_vm1, %v1075_v19 }
  0x54   : > { %1018 = vmatmul.msk.bf16.gmra.mxu0 %vm408_vm1, %v1052_v20  ;;  %1026 = vmatmul.msk.bf16.gmra.mxu1 %vm408_vm1, %v1060_v21 }
  0x55   : > { %1034 = vmatmul.msk.bf16.gmra.mxu2 %vm408_vm1, %v1068_v22  ;;  %1042 = vmatmul.msk.bf16.gmra.mxu3 %vm408_vm1, %v1076_v23 }
  0x64   : > { %1019 = vmatmul.msk.bf16.gmra.mxu0 %vm408_vm1, %v1053_v24  ;;  %1027 = vmatmul.msk.bf16.gmra.mxu1 %vm408_vm1, %v1061_v25 }
  0x65   : > { %1035 = vmatmul.msk.bf16.gmra.mxu2 %vm408_vm1, %v1069_v26  ;;  %1043 = vmatmul.msk.bf16.gmra.mxu3 %vm408_vm1, %v1077_v27 }
  0x74   : > { %1020 = vmatmul.msk.bf16.gmra.mxu0 %vm408_vm1, %v1054_v28  ;;  %1028 = vmatmul.msk.bf16.gmra.mxu1 %vm408_vm1, %v1062_v29 }
  0x75   : > { %1036 = vmatmul.msk.bf16.gmra.mxu2 %vm408_vm1, %v1070_v30  ;;  %1044 = vmatmul.msk.bf16.gmra.mxu3 %vm408_vm1, %v1078_v31 }
  0x84   : > { %1021 = vmatmul.msk.bf16.gmra.mxu0 %vm408_vm1, %v1055_v32  ;;  %1029 = vmatmul.msk.bf16.gmra.mxu1 %vm408_vm1, %v1063_v33 }
  0x85   : > { %1037 = vmatmul.msk.bf16.gmra.mxu2 %vm408_vm1, %v1071_v34  ;;  %1045 = vmatmul.msk.bf16.gmra.mxu3 %vm408_vm1, %v1079_v35 }
  0x94   : > { %1022 = vmatmul.msk.bf16.gmra.mxu0 %vm408_vm1, %v1056_v36  ;;  %1030 = vmatmul.msk.bf16.gmra.mxu1 %vm408_vm1, %v1064_v37 }
  0x95   : > { %1038 = vmatmul.msk.bf16.gmra.mxu2 %vm408_vm1, %v1072_v38  ;;  %1046 = vmatmul.msk.bf16.gmra.mxu3 %vm408_vm1, %v1080_v39 }
  0xa1   : > { %v518_v40 = vpop.f32.mrf.mxu0  ;;  %v558_v41 = vpop.f32.mrf.mxu1 }
  0xa2   : > { %1108 = vtanh.f32 %v518_v40 }
  0xa3   : > { %1110 = vtanh.f32 %v558_v41 }
  0xa8   : > { %v1109_v42 = vpop.eup %1108  ;;  %v598_v43 = vpop.f32.mrf.mxu2 }
  0xa9   : > { %v638_v44 = vpop.f32.mrf.mxu3  ;;  %v1111_v45 = vpop.eup %1110  ;;  %742 = vst [vmem:[%s1358_s29] sm:$0xff] %v1109_v42  ;;  %1112 = vtanh.f32 %v598_v43 }
  0xaa   : > { %v520_v46 = vpop.f32.mrf.mxu0  ;;  %v560_v47 = vpop.f32.mrf.mxu1  ;;  %758 = vst [vmem:[%s1358_s29 + $0x80] sm:$0xff] %v1111_v45  ;;  %1114 = vtanh.f32 %v638_v44 }
  0xab   : > { %1116 = vtanh.f32 %v520_v46 }
  0xac   : > { %1118 = vtanh.f32 %v560_v47 }
  0xaf   : > { %v1113_v48 = vpop.eup %1112 }
  0xb0   : > { %v1115_v49 = vpop.eup %1114  ;;  %774 = vst [vmem:[%s1358_s29 + $0x100] sm:$0xff] %v1113_v48  ;;  %v600_v50 = vpop.f32.mrf.mxu2 }
  0xb1   : > { %v640_v51 = vpop.f32.mrf.mxu3  ;;  %v1117_v52 = vpop.eup %1116  ;;  %790 = vst [vmem:[%s1358_s29 + $0x180] sm:$0xff] %v1115_v49  ;;  %1120 = vtanh.f32 %v600_v50 }
  0xb2   : > { %v523_v53 = vpop.f32.mrf.mxu0  ;;  %v563_v54 = vpop.f32.mrf.mxu1  ;;  %743 = vst [vmem:[%s1358_s29 + $0x8] sm:$0xff] %v1117_v52  ;;  %1122 = vtanh.f32 %v640_v51 }
  0xb3   : > { %v1119_v55 = vpop.eup %1118  ;;  %1124 = vtanh.f32 %v523_v53 }
  0xb4   : > { %759 = vst [vmem:[%s1358_s29 + $0x88] sm:$0xff] %v1119_v55  ;;  %1126 = vtanh.f32 %v563_v54 }
  0xb7   : > { %v1121_v56 = vpop.eup %1120 }
  0xb8   : > { %v1123_v57 = vpop.eup %1122  ;;  %775 = vst [vmem:[%s1358_s29 + $0x108] sm:$0xff] %v1121_v56  ;;  %v603_v58 = vpop.f32.mrf.mxu2 }
  0xb9   : > { %v643_v59 = vpop.f32.mrf.mxu3  ;;  %v1125_v60 = vpop.eup %1124  ;;  %791 = vst [vmem:[%s1358_s29 + $0x188] sm:$0xff] %v1123_v57  ;;  %1128 = vtanh.f32 %v603_v58 }
  0xba   : > { %v525_v61 = vpop.f32.mrf.mxu0  ;;  %v565_v62 = vpop.f32.mrf.mxu1  ;;  %744 = vst [vmem:[%s1358_s29 + $0x10] sm:$0xff] %v1125_v60  ;;  %1130 = vtanh.f32 %v643_v59 }
  0xbb   : > { %v1127_v63 = vpop.eup %1126  ;;  %1132 = vtanh.f32 %v525_v61 }
  0xbc   : > { %760 = vst [vmem:[%s1358_s29 + $0x90] sm:$0xff] %v1127_v63  ;;  %1134 = vtanh.f32 %v565_v62 }
  0xbf   : > { %v1129_v0 = vpop.eup %1128 }
  0xc0   : > { %v1131_v1 = vpop.eup %1130  ;;  %776 = vst [vmem:[%s1358_s29 + $0x110] sm:$0xff] %v1129_v0  ;;  %v605_v2 = vpop.f32.mrf.mxu2 }
  0xc1   : > { %v645_v3 = vpop.f32.mrf.mxu3  ;;  %v1133_v4 = vpop.eup %1132  ;;  %792 = vst [vmem:[%s1358_s29 + $0x190] sm:$0xff] %v1131_v1  ;;  %1136 = vtanh.f32 %v605_v2 }
  0xc2   : > { %v528_v5 = vpop.f32.mrf.mxu0  ;;  %v568_v6 = vpop.f32.mrf.mxu1  ;;  %745 = vst [vmem:[%s1358_s29 + $0x18] sm:$0xff] %v1133_v4  ;;  %1138 = vtanh.f32 %v645_v3 }
  0xc3   : > { %v1135_v7 = vpop.eup %1134  ;;  %1140 = vtanh.f32 %v528_v5 }
  0xc4   : > { %761 = vst [vmem:[%s1358_s29 + $0x98] sm:$0xff] %v1135_v7  ;;  %1142 = vtanh.f32 %v568_v6 }
  0xc7   : > { %v1137_v8 = vpop.eup %1136 }
  0xc8   : > { %v1139_v9 = vpop.eup %1138  ;;  %777 = vst [vmem:[%s1358_s29 + $0x118] sm:$0xff] %v1137_v8  ;;  %v608_v10 = vpop.f32.mrf.mxu2 }
  0xc9   : > { %v648_v11 = vpop.f32.mrf.mxu3  ;;  %v1141_v12 = vpop.eup %1140  ;;  %793 = vst [vmem:[%s1358_s29 + $0x198] sm:$0xff] %v1139_v9  ;;  %1144 = vtanh.f32 %v608_v10 }
  0xca   : > { %v530_v13 = vpop.f32.mrf.mxu0  ;;  %v570_v14 = vpop.f32.mrf.mxu1  ;;  %746 = vst [vmem:[%s1358_s29 + $0x20] sm:$0xff] %v1141_v12  ;;  %1146 = vtanh.f32 %v648_v11 }
  0xcb   : > { %v1143_v15 = vpop.eup %1142  ;;  %1148 = vtanh.f32 %v530_v13 }
  0xcc   : > { %762 = vst [vmem:[%s1358_s29 + $0xa0] sm:$0xff] %v1143_v15  ;;  %1150 = vtanh.f32 %v570_v14 }
  0xcf   : > { %v1145_v16 = vpop.eup %1144 }
  0xd0   : > { %v1147_v17 = vpop.eup %1146  ;;  %778 = vst [vmem:[%s1358_s29 + $0x120] sm:$0xff] %v1145_v16  ;;  %v610_v18 = vpop.f32.mrf.mxu2 }
  0xd1   : > { %v650_v19 = vpop.f32.mrf.mxu3  ;;  %v1149_v20 = vpop.eup %1148  ;;  %794 = vst [vmem:[%s1358_s29 + $0x1a0] sm:$0xff] %v1147_v17  ;;  %1152 = vtanh.f32 %v610_v18 }
  0xd2   : > { %v533_v21 = vpop.f32.mrf.mxu0  ;;  %v573_v22 = vpop.f32.mrf.mxu1  ;;  %747 = vst [vmem:[%s1358_s29 + $0x28] sm:$0xff] %v1149_v20  ;;  %1154 = vtanh.f32 %v650_v19 }
  0xd3   : > { %v1151_v23 = vpop.eup %1150  ;;  %1156 = vtanh.f32 %v533_v21 }
  0xd4   : > { %763 = vst [vmem:[%s1358_s29 + $0xa8] sm:$0xff] %v1151_v23  ;;  %1158 = vtanh.f32 %v573_v22 }
  0xd7   : > { %v1153_v24 = vpop.eup %1152 }
  0xd8   : > { %v1155_v25 = vpop.eup %1154  ;;  %779 = vst [vmem:[%s1358_s29 + $0x128] sm:$0xff] %v1153_v24  ;;  %v613_v26 = vpop.f32.mrf.mxu2 }
  0xd9   : > { %v653_v27 = vpop.f32.mrf.mxu3  ;;  %v1157_v28 = vpop.eup %1156  ;;  %795 = vst [vmem:[%s1358_s29 + $0x1a8] sm:$0xff] %v1155_v25  ;;  %1160 = vtanh.f32 %v613_v26 }
  0xda   : > { %v535_v29 = vpop.f32.mrf.mxu0  ;;  %v575_v30 = vpop.f32.mrf.mxu1  ;;  %748 = vst [vmem:[%s1358_s29 + $0x30] sm:$0xff] %v1157_v28  ;;  %1162 = vtanh.f32 %v653_v27 }
  0xdb   : > { %v1159_v31 = vpop.eup %1158  ;;  %1164 = vtanh.f32 %v535_v29 }
  0xdc   : > { %764 = vst [vmem:[%s1358_s29 + $0xb0] sm:$0xff] %v1159_v31  ;;  %1166 = vtanh.f32 %v575_v30 }
  0xdf   : > { %v1161_v32 = vpop.eup %1160 }
  0xe0   : > { %v1163_v33 = vpop.eup %1162  ;;  %780 = vst [vmem:[%s1358_s29 + $0x130] sm:$0xff] %v1161_v32  ;;  %v615_v34 = vpop.f32.mrf.mxu2 }
  0xe1   : > { %v655_v35 = vpop.f32.mrf.mxu3  ;;  %v1165_v36 = vpop.eup %1164  ;;  %796 = vst [vmem:[%s1358_s29 + $0x1b0] sm:$0xff] %v1163_v33  ;;  %1168 = vtanh.f32 %v615_v34 }
  0xe2   : > { %v538_v37 = vpop.f32.mrf.mxu0  ;;  %v578_v38 = vpop.f32.mrf.mxu1  ;;  %749 = vst [vmem:[%s1358_s29 + $0x38] sm:$0xff] %v1165_v36  ;;  %1170 = vtanh.f32 %v655_v35 }
  0xe3   : > { %v1167_v39 = vpop.eup %1166  ;;  %1172 = vtanh.f32 %v538_v37 }
  0xe4   : > { %765 = vst [vmem:[%s1358_s29 + $0xb8] sm:$0xff] %v1167_v39  ;;  %1174 = vtanh.f32 %v578_v38 }
  0xe7   : > { %v1169_v40 = vpop.eup %1168 }
  0xe8   : > { %v1171_v41 = vpop.eup %1170  ;;  %781 = vst [vmem:[%s1358_s29 + $0x138] sm:$0xff] %v1169_v40  ;;  %v618_v42 = vpop.f32.mrf.mxu2 }
  0xe9   : > { %v658_v43 = vpop.f32.mrf.mxu3  ;;  %v1173_v44 = vpop.eup %1172  ;;  %797 = vst [vmem:[%s1358_s29 + $0x1b8] sm:$0xff] %v1171_v41  ;;  %1176 = vtanh.f32 %v618_v42 }
  0xea   : > { %v540_v45 = vpop.f32.mrf.mxu0  ;;  %v580_v46 = vpop.f32.mrf.mxu1  ;;  %750 = vst [vmem:[%s1358_s29 + $0x40] sm:$0xff] %v1173_v44  ;;  %1178 = vtanh.f32 %v658_v43 }
  0xeb   : > { %v1175_v47 = vpop.eup %1174  ;;  %1180 = vtanh.f32 %v540_v45 }
  0xec   : > { %766 = vst [vmem:[%s1358_s29 + $0xc0] sm:$0xff] %v1175_v47  ;;  %1182 = vtanh.f32 %v580_v46 }
  0xef   : > { %v1177_v48 = vpop.eup %1176 }
  0xf0   : > { %v1179_v49 = vpop.eup %1178  ;;  %782 = vst [vmem:[%s1358_s29 + $0x140] sm:$0xff] %v1177_v48  ;;  %v620_v50 = vpop.f32.mrf.mxu2 }
  0xf1   : > { %v660_v51 = vpop.f32.mrf.mxu3  ;;  %v1181_v52 = vpop.eup %1180  ;;  %798 = vst [vmem:[%s1358_s29 + $0x1c0] sm:$0xff] %v1179_v49  ;;  %1184 = vtanh.f32 %v620_v50 }
  0xf2   : > { %v543_v53 = vpop.f32.mrf.mxu0  ;;  %v583_v54 = vpop.f32.mrf.mxu1  ;;  %751 = vst [vmem:[%s1358_s29 + $0x48] sm:$0xff] %v1181_v52  ;;  %1186 = vtanh.f32 %v660_v51 }
  0xf3   : > { %v1183_v55 = vpop.eup %1182  ;;  %1188 = vtanh.f32 %v543_v53 }
  0xf4   : > { %767 = vst [vmem:[%s1358_s29 + $0xc8] sm:$0xff] %v1183_v55  ;;  %1190 = vtanh.f32 %v583_v54 }
  0xf7   : > { %v1185_v56 = vpop.eup %1184 }
  0xf8   : > { %v1187_v57 = vpop.eup %1186  ;;  %783 = vst [vmem:[%s1358_s29 + $0x148] sm:$0xff] %v1185_v56  ;;  %v623_v58 = vpop.f32.mrf.mxu2 }
  0xf9   : > { %v663_v59 = vpop.f32.mrf.mxu3  ;;  %v1189_v60 = vpop.eup %1188  ;;  %799 = vst [vmem:[%s1358_s29 + $0x1c8] sm:$0xff] %v1187_v57  ;;  %1192 = vtanh.f32 %v623_v58 }
  0xfa   : > { %v545_v61 = vpop.f32.mrf.mxu0  ;;  %v585_v62 = vpop.f32.mrf.mxu1  ;;  %752 = vst [vmem:[%s1358_s29 + $0x50] sm:$0xff] %v1189_v60  ;;  %1194 = vtanh.f32 %v663_v59 }
  0xfb   : > { %v1191_v63 = vpop.eup %1190  ;;  %1196 = vtanh.f32 %v545_v61 }
  0xfc   : > { %768 = vst [vmem:[%s1358_s29 + $0xd0] sm:$0xff] %v1191_v63  ;;  %1198 = vtanh.f32 %v585_v62 }
  0xff   : > { %v1193_v0 = vpop.eup %1192 }
 0x100   : > { %v1195_v1 = vpop.eup %1194  ;;  %784 = vst [vmem:[%s1358_s29 + $0x150] sm:$0xff] %v1193_v0  ;;  %v625_v2 = vpop.f32.mrf.mxu2 }
 0x101   : > { %v665_v3 = vpop.f32.mrf.mxu3  ;;  %v1197_v4 = vpop.eup %1196  ;;  %800 = vst [vmem:[%s1358_s29 + $0x1d0] sm:$0xff] %v1195_v1  ;;  %1200 = vtanh.f32 %v625_v2 }
 0x102   : > { %v548_v5 = vpop.f32.mrf.mxu0  ;;  %v588_v6 = vpop.f32.mrf.mxu1  ;;  %753 = vst [vmem:[%s1358_s29 + $0x58] sm:$0xff] %v1197_v4  ;;  %1202 = vtanh.f32 %v665_v3 }
 0x103   : > { %v1199_v7 = vpop.eup %1198  ;;  %1204 = vtanh.f32 %v548_v5 }
 0x104   : > { %769 = vst [vmem:[%s1358_s29 + $0xd8] sm:$0xff] %v1199_v7  ;;  %1206 = vtanh.f32 %v588_v6 }
 0x107   : > { %v1201_v8 = vpop.eup %1200 }
 0x108   : > { %v1203_v9 = vpop.eup %1202  ;;  %785 = vst [vmem:[%s1358_s29 + $0x158] sm:$0xff] %v1201_v8  ;;  %v628_v10 = vpop.f32.mrf.mxu2 }
 0x109   : > { %v668_v11 = vpop.f32.mrf.mxu3  ;;  %v1205_v12 = vpop.eup %1204  ;;  %801 = vst [vmem:[%s1358_s29 + $0x1d8] sm:$0xff] %v1203_v9  ;;  %1208 = vtanh.f32 %v628_v10 }
 0x10a   : > { %v550_v13 = vpop.f32.mrf.mxu0  ;;  %v590_v14 = vpop.f32.mrf.mxu1  ;;  %754 = vst [vmem:[%s1358_s29 + $0x60] sm:$0xff] %v1205_v12  ;;  %1210 = vtanh.f32 %v668_v11 }
 0x10b   : > { %v1207_v15 = vpop.eup %1206  ;;  %1212 = vtanh.f32 %v550_v13 }
 0x10c   : > { %770 = vst [vmem:[%s1358_s29 + $0xe0] sm:$0xff] %v1207_v15  ;;  %1214 = vtanh.f32 %v590_v14 }
 0x10f   : > { %v1209_v16 = vpop.eup %1208 }
 0x110   : > { %v1211_v17 = vpop.eup %1210  ;;  %786 = vst [vmem:[%s1358_s29 + $0x160] sm:$0xff] %v1209_v16  ;;  %v630_v18 = vpop.f32.mrf.mxu2 }
 0x111   : > { %v670_v19 = vpop.f32.mrf.mxu3  ;;  %v1213_v20 = vpop.eup %1212  ;;  %802 = vst [vmem:[%s1358_s29 + $0x1e0] sm:$0xff] %v1211_v17  ;;  %1216 = vtanh.f32 %v630_v18 }
 0x112   : > { %v553_v21 = vpop.f32.mrf.mxu0  ;;  %v593_v22 = vpop.f32.mrf.mxu1  ;;  %755 = vst [vmem:[%s1358_s29 + $0x68] sm:$0xff] %v1213_v20  ;;  %1218 = vtanh.f32 %v670_v19 }
 0x113   : > { %v1215_v23 = vpop.eup %1214  ;;  %1220 = vtanh.f32 %v553_v21 }
 0x114   : > { %771 = vst [vmem:[%s1358_s29 + $0xe8] sm:$0xff] %v1215_v23  ;;  %1222 = vtanh.f32 %v593_v22 }
 0x117   : > { %v1217_v24 = vpop.eup %1216 }
 0x118   : > { %v1219_v25 = vpop.eup %1218  ;;  %787 = vst [vmem:[%s1358_s29 + $0x168] sm:$0xff] %v1217_v24  ;;  %v633_v26 = vpop.f32.mrf.mxu2 }
 0x119   : > { %v673_v27 = vpop.f32.mrf.mxu3  ;;  %v1221_v28 = vpop.eup %1220  ;;  %803 = vst [vmem:[%s1358_s29 + $0x1e8] sm:$0xff] %v1219_v25  ;;  %1224 = vtanh.f32 %v633_v26 }
 0x11a   : > { %v555_v29 = vpop.f32.mrf.mxu0  ;;  %v595_v30 = vpop.f32.mrf.mxu1  ;;  %756 = vst [vmem:[%s1358_s29 + $0x70] sm:$0xff] %v1221_v28  ;;  %1226 = vtanh.f32 %v673_v27 }
 0x11b   : > { %v1223_v31 = vpop.eup %1222  ;;  %1228 = vtanh.f32 %v555_v29 }
 0x11c   : > { %772 = vst [vmem:[%s1358_s29 + $0xf0] sm:$0xff] %v1223_v31  ;;  %1230 = vtanh.f32 %v595_v30 }
 0x11f   : > { %v1225_v32 = vpop.eup %1224 }
 0x120   : > { %v1227_v33 = vpop.eup %1226  ;;  %788 = vst [vmem:[%s1358_s29 + $0x170] sm:$0xff] %v1225_v32  ;;  %v635_v34 = vpop.f32.mrf.mxu2 }
 0x121   : > { %v675_v35 = vpop.f32.mrf.mxu3  ;;  %v1229_v36 = vpop.eup %1228  ;;  %804 = vst [vmem:[%s1358_s29 + $0x1f0] sm:$0xff] %v1227_v33  ;;  %1232 = vtanh.f32 %v635_v34 }
 0x122   : > { %v1231_v37 = vpop.eup %1230  ;;  %757 = vst [vmem:[%s1358_s29 + $0x78] sm:$0xff] %v1229_v36  ;;  %1234 = vtanh.f32 %v675_v35 }
 0x123   : > { %773 = vst [vmem:[%s1358_s29 + $0xf8] sm:$0xff] %v1231_v37 }
 0x127   : > { %v1233_v38 = vpop.eup %1232 }
 0x128   : > { %v1235_v39 = vpop.eup %1234  ;;  %789 = vst [vmem:[%s1358_s29 + $0x178] sm:$0xff] %v1233_v38 }
 0x129   : > { %805 = vst [vmem:[%s1358_s29 + $0x1f8] sm:$0xff] %v1235_v39 }
 0x12a PF: > { %s12_s9 = sadd.s32 1, %s1242_s9  }
 0x12b   : > { %p9_p4 = scmp.ge.s32.totalorder %s12_s9, 6  }
 0x12d   :  { %11 = sbr.rel (!%p9_p4) target bundleno = 1 (0x1), region = 58 }

</bundles_post_ra>
